<compile_context>
chip_gen: v5e
topology: v5e:2x2
jax: 0.10.0
libtpu: 0.0.40
codegen_flags: <defaults>
</compile_context>

<pallas_src>
import functools

import jax
import jax.numpy as jnp
from jax import lax
from jax.experimental import pallas as pl
from jax.experimental.pallas import tpu as pltpu

LN_EPS = 1e-5                      # torch.nn.LayerNorm default eps
GELU_C = 0.7978845608028654        # sqrt(2/pi), tanh-approx GELU constant


# ----------------------------------------------------------------------------
# Spectral filter construction (parameter setup, plain JAX glue)
# ----------------------------------------------------------------------------
def get_hankel(seq_len: int) -> jnp.ndarray:
    e = jnp.arange(1, seq_len + 1, dtype=jnp.float32)
    ipj = e[:, None] + e[None, :]
    return 2.0 / (ipj ** 3 - ipj)


def get_spectral_filters(seq_len: int, K: int) -> jnp.ndarray:
    Z = get_hankel(seq_len)
    sigma, phi = jnp.linalg.eigh(Z)          # ascending, same as torch
    phi_k = phi[:, -K:] * (sigma[-K:] ** 0.25)
    return phi_k.astype(jnp.float32)         # (L, K)


# ----------------------------------------------------------------------------
# The Pallas kernel: full SpectralAttentionLayer forward for one batch element
# ----------------------------------------------------------------------------
def _layer_kernel(x_ref,
                  ln1_w_ref, ln1_b_ref,
                  m_in_ref, conv_T_ref, m_filt_ref,
                  wq_w_ref, wq_b_ref, wk_w_ref, wk_b_ref,
                  wv_w_ref, wv_b_ref, wg_w_ref, wg_b_ref,
                  wo_w_ref, wo_b_ref,
                  ln2_w_ref, ln2_b_ref,
                  w1_w_ref, w1_b_ref, w3_w_ref, w3_b_ref,
                  w2_w_ref, w2_b_ref,
                  out_ref, *, num_heads: int):
    x = x_ref[0]                                   # (L, D) float32
    L, D = x.shape
    h = D // num_heads
    K = conv_T_ref.shape[0]

    def layer_norm(z, w, b):                       # f32 VPU/EUP math
        mu = jnp.mean(z, axis=-1, keepdims=True)
        var = jnp.mean((z - mu) ** 2, axis=-1, keepdims=True)
        return (z - mu) * lax.rsqrt(var + LN_EPS) * w + b

    # ---- spec_attn_norm ----
    xn = layer_norm(x, ln1_w_ref[0], ln1_b_ref[0])
    xn_bf = xn.astype(jnp.bfloat16)                # single cast reused by 5 matmuls

    # ---- STU spectral features: K-factorized causal Toeplitz conv (MXU) ----
    u_proj = jnp.dot(xn_bf, m_in_ref[...],
                     preferred_element_type=jnp.float32)          # (L, r=D) f32
    u_proj_bf = u_proj.astype(jnp.bfloat16)
    x_tilde = jnp.zeros((L, D), jnp.float32)
    for kk in range(K):                            # static indices; one f32 acc live
        contrib = jnp.dot(conv_T_ref[kk], u_proj_bf,
                          preferred_element_type=jnp.float32)     # (L, D)
        x_tilde = x_tilde + contrib * m_filt_ref[kk]              # VPU scale (1, D)

    # ---- q / k / v / gate projections (bf16 MXU inputs, f32 accumulate) ----
    q = jnp.dot(xn_bf, wq_w_ref[...], preferred_element_type=jnp.float32) + wq_b_ref[0]
    k = jnp.dot(xn_bf, wk_w_ref[...], preferred_element_type=jnp.float32) + wk_b_ref[0]
    v = jnp.dot(xn_bf, wv_w_ref[...], preferred_element_type=jnp.float32) + wv_b_ref[0]
    gate = jax.nn.sigmoid(
        jnp.dot(xn_bf, wg_w_ref[...], preferred_element_type=jnp.float32) + wg_b_ref[0])

    q_bf = q.astype(jnp.bfloat16)
    k_bf = k.astype(jnp.bfloat16)
    v_bf = v.astype(jnp.bfloat16)

    # ---- causal "linear attention":
    #   Y_h[t, n] = sum_{s<=t} (q_h[t] . v_h[s]) * k_h[s, n]
    # (identical to einsum('bhtp,bhtn->bhtpn') + cumsum + einsum in the module)
    causal = (lax.broadcasted_iota(jnp.int32, (L, L), 1)
              <= lax.broadcasted_iota(jnp.int32, (L, L), 0))      # bool, s <= t

    head_outs = []                                 # per-head slices, no full-D acc chain
    for hd in range(num_heads):
        sl = slice(hd * h, (hd + 1) * h)           # static channel slice
        q_h, k_h, v_h = q_bf[:, sl], k_bf[:, sl], v_bf[:, sl]
        scores = lax.dot_general(q_h, v_h, (((1,), (1,)), ((), ())),
                                 preferred_element_type=jnp.float32)   # (L, L)
        scores = jnp.where(causal, scores, 0.0).astype(jnp.bfloat16)
        head_outs.append(jnp.dot(scores, k_h, preferred_element_type=jnp.float32))
    y_attn = jnp.concatenate(head_outs, axis=-1)   # (L, D) f32

    # ---- gated combination + output projection (SimpleSpectralAttention) ----
    y_comb = x_tilde + (y_attn - x_tilde) * gate
    attn_out = jnp.dot(y_comb.astype(jnp.bfloat16), wo_w_ref[...],
                       preferred_element_type=jnp.float32) + wo_b_ref[0]
    x1 = x + attn_out                                                  # residual 1

    # ---- MLP block: w2(gelu_tanh(w1(z)) * w3(z)) with mlp_norm + residual ----
    x1n = layer_norm(x1, ln2_w_ref[0], ln2_b_ref[0])
    x1n_bf = x1n.astype(jnp.bfloat16)
    h1 = jnp.dot(x1n_bf, w1_w_ref[...], preferred_element_type=jnp.float32) + w1_b_ref[0]
    h3 = jnp.dot(x1n_bf, w3_w_ref[...], preferred_element_type=jnp.float32) + w3_b_ref[0]
    g1 = 0.5 * h1 * (1.0 + jnp.tanh(GELU_C * (h1 + 0.044715 * h1 * h1 * h1)))
    mlp_out = jnp.dot((g1 * h3).astype(jnp.bfloat16), w2_w_ref[...],
                      preferred_element_type=jnp.float32) + w2_b_ref[0]

    out_ref[0] = (x1 + mlp_out).astype(out_ref.dtype)                  # residual 2


# ----------------------------------------------------------------------------
# Wrapper: BlockSpecs / grid over batch
# ----------------------------------------------------------------------------
PARAM_ORDER = [
    "ln1_w", "ln1_b", "m_in", "conv_T", "m_filt",
    "wq_w", "wq_b", "wk_w", "wk_b", "wv_w", "wv_b", "wg_w", "wg_b",
    "wo_w", "wo_b", "ln2_w", "ln2_b",
    "w1_w", "w1_b", "w3_w", "w3_b", "w2_w", "w2_b",
]


def spectral_attention_layer(x, params, num_heads):
    B, L, D = x.shape
    K = params["conv_T"].shape[0]
    kern = functools.partial(_layer_kernel, num_heads=num_heads)

    def rep_spec(shape):
        nd = len(shape)
        return pl.BlockSpec(shape, lambda b, _n=nd: (0,) * _n)

    in_specs = [pl.BlockSpec((1, L, D), lambda b: (b, 0, 0))]
    args = [x]
    for name in PARAM_ORDER:
        p = params[name]
        in_specs.append(rep_spec(p.shape))
        args.append(p)

    # Advisory cost estimate (matmuls + conv + attention; transcendentals from
    # sigmoid gate + tanh GELU).
    flops = 2 * B * (18 * L * D * D + (K + 2) * L * L * D)
    transcendentals = 5 * B * L * D
    bytes_accessed = 2 * x.size * x.dtype.itemsize + sum(
        int(p.size) * p.dtype.itemsize for p in args[1:])

    return pl.pallas_call(
        kern,
        out_shape=jax.ShapeDtypeStruct((B, L, D), jnp.float32),
        grid=(B,),
        in_specs=in_specs,
        out_specs=pl.BlockSpec((1, L, D), lambda b: (b, 0, 0)),
        compiler_params=pltpu.CompilerParams(
            dimension_semantics=("parallel",),          # B>=2 -> both v7x TCs busy
            vmem_limit_bytes=48 * 1024 * 1024),          # explicit budget (<= v7x 64 MiB)
        cost_estimate=pl.CostEstimate(
            flops=int(flops),
            transcendentals=int(transcendentals),
            bytes_accessed=int(bytes_accessed)),
    )(*args)


# ----------------------------------------------------------------------------
# Deterministic parameter init (mirrors module __init__ shapes; r = d_model)
# Returns (kernel params: bf16 matmul weights) and (raw f32 params for the ref).
# ----------------------------------------------------------------------------
def init_params(key, L, D, K):
    r = D  # tensordot rank == d_model so x_tilde broadcasts against (B, L, D)
    keys = jax.random.split(key, 10)

    def linear(kk, fan_in, fan_out):
        kw, kb = jax.random.split(kk)
        bound = 1.0 / (fan_in ** 0.5)
        w = jax.random.uniform(kw, (fan_in, fan_out), jnp.float32, -bound, bound)
        b = jax.random.uniform(kb, (1, fan_out), jnp.float32, -bound, bound)
        return w, b

    wq_w, wq_b = linear(keys[0], D, D)
    wk_w, wk_b = linear(keys[1], D, D)
    wv_w, wv_b = linear(keys[2], D, D)
    wg_w, wg_b = linear(keys[3], D, D)
    wo_w, wo_b = linear(keys[4], D, D)
    w1_w, w1_b = linear(keys[5], D, 4 * D)
    w3_w, w3_b = linear(keys[6], D, 4 * D)
    w2_w, w2_b = linear(keys[7], 4 * D, D)

    m_inputs = jax.random.normal(keys[8], (D, r), jnp.float32) / (D ** 0.5)
    m_filters = jax.random.normal(keys[9], (K, r), jnp.float32) / (K ** 0.5)
    phi = get_spectral_filters(L, K)                          # (L, K)

    # K-factorized causal Toeplitz taps for the spectral conv:
    #   conv_T[k, t, s] = (1 + (-1)^(t-s)) * phi[t-s, k]  for s <= t, else 0
    coef = jnp.where(jnp.arange(L) % 2 == 0, 2.0, 0.0)        # 1 + (-1)^d
    taps = (coef[:, None] * phi).T                            # (K, L)
    diff = jnp.arange(L)[:, None] - jnp.arange(L)[None, :]    # (L, L)
    conv_T = jnp.where(diff[None, :, :] >= 0,
                       taps[:, jnp.clip(diff, 0, L - 1)], 0.0)  # (K, L, L)

    ones = jnp.ones((1, D), jnp.float32)
    zeros = jnp.zeros((1, D), jnp.float32)
    bf = lambda a: a.astype(jnp.bfloat16)

    params = dict(
        ln1_w=ones, ln1_b=zeros,
        m_in=bf(m_inputs), conv_T=bf(conv_T),
        m_filt=m_filters.reshape(K, 1, r),                    # f32 VPU scale rows
        wq_w=bf(wq_w), wq_b=wq_b, wk_w=bf(wk_w), wk_b=wk_b,
        wv_w=bf(wv_w), wv_b=wv_b, wg_w=bf(wg_w), wg_b=wg_b,
        wo_w=bf(wo_w), wo_b=wo_b,
        ln2_w=ones, ln2_b=zeros,
        w1_w=bf(w1_w), w1_b=w1_b, w3_w=bf(w3_w), w3_b=w3_b,
        w2_w=bf(w2_w), w2_b=w2_b,
    )
    raw = dict(
        ln1_w=ones, ln1_b=zeros, ln2_w=ones, ln2_b=zeros,
        m_inputs=m_inputs, m_filters=m_filters, phi=phi,
        wq_w=wq_w, wq_b=wq_b, wk_w=wk_w, wk_b=wk_b,
        wv_w=wv_w, wv_b=wv_b, wg_w=wg_w, wg_b=wg_b,
        wo_w=wo_w, wo_b=wo_b,
        w1_w=w1_w, w1_b=w1_b, w3_w=w3_w, w3_b=w3_b, w2_w=w2_w, w2_b=w2_b,
    )
    return params, raw


# ----------------------------------------------------------------------------
# Pure-JAX f32 reference: original PyTorch formulation (cumsum einsum attention
# and the spectral_plus + spectral_minus causal convolution from bld_convfft).
# ----------------------------------------------------------------------------
def reference(x, p, num_heads):
    B, L, D = x.shape
    hdim = D // num_heads

    def ln(z, w, b):
        mu = z.mean(-1, keepdims=True)
        var = ((z - mu) ** 2).mean(-1, keepdims=True)
        return (z - mu) / jnp.sqrt(var + LN_EPS) * w + b

    xn = ln(x, p["ln1_w"], p["ln1_b"])

    # STU features (tensordot path): linear causal conv, plus + minus branches.
    u_proj = xn @ p["m_inputs"]
    phi_proj = p["phi"] @ p["m_filters"]                      # (L, D)
    sgn = jnp.where(jnp.arange(L) % 2 == 0, 1.0, -1.0)
    diff = jnp.arange(L)[:, None] - jnp.arange(L)[None, :]
    toe = jnp.where((diff >= 0)[:, :, None],
                    phi_proj[jnp.clip(diff, 0, L - 1)], 0.0)  # (L, L, D)
    plus = jnp.einsum("tsc,bsc->btc", toe, u_proj)
    minus = sgn[None, :, None] * jnp.einsum("tsc,bsc->btc", toe,
                                            u_proj * sgn[None, :, None])
    x_tilde = plus + minus

    q = xn @ p["wq_w"] + p["wq_b"]
    k = xn @ p["wk_w"] + p["wk_b"]
    v = xn @ p["wv_w"] + p["wv_b"]
    g = jax.nn.sigmoid(xn @ p["wg_w"] + p["wg_b"])

    qh = q.reshape(B, L, num_heads, hdim).transpose(0, 2, 1, 3)
    kh = k.reshape(B, L, num_heads, hdim).transpose(0, 2, 1, 3)
    vh = v.reshape(B, L, num_heads, hdim).transpose(0, 2, 1, 3)
    Z = jnp.einsum("bhtp,bhtn->bhtpn", vh, kh)
    Hc = jnp.cumsum(Z, axis=2)
    Y = jnp.einsum("bhtp,bhtpn->bhtn", qh, Hc)
    y_attn = Y.transpose(0, 2, 1, 3).reshape(B, L, D)

    y_comb = x_tilde + (y_attn - x_tilde) * g
    x1 = x + y_comb @ p["wo_w"] + p["wo_b"]

    x1n = ln(x1, p["ln2_w"], p["ln2_b"])
    h1 = x1n @ p["w1_w"] + p["w1_b"]
    h3 = x1n @ p["w3_w"] + p["w3_b"]
    g1 = 0.5 * h1 * (1.0 + jnp.tanh(GELU_C * (h1 + 0.044715 * h1 ** 3)))
    return x1 + (g1 * h3) @ p["w2_w"] + p["w2_b"]


if __name__ == "__main__":
    # Small but TPU-aligned toy config: D lane-dense (128), L multiple of 8.
    B, L, D, K, H = 2, 32, 128, 8, 4     # batch, seq_len, d_model, filters, heads
    key = jax.random.PRNGKey(0)
    kx, kp = jax.random.split(key)
    x = jax.random.normal(kx, (B, L, D), jnp.float32)
    params, raw = init_params(kp, L, D, K)

    out = spectral_attention_layer(x, params, H)
    out = jax.block_until_ready(out)
    assert out.shape == (B, L, D)

    ref = reference(x, raw, H)
    # Kernel runs all matmuls with bf16 operands (f32 accumulation); compare to
    # the pure-f32 reference with a tolerance scaled to the output magnitude.
    max_err = float(jnp.max(jnp.abs(out - ref)))
    scale = float(jnp.max(jnp.abs(ref)))
    if not (max_err <= 3e-2 * max(scale, 1.0)):
        raise AssertionError(
            f"Pallas kernel does not match JAX reference: "
            f"max_err={max_err:.4f}, ref_scale={scale:.4f}")
    print("KERNEL_OK")
</pallas_src>

<mosaic_0001>
module attributes {stable_mosaic.version = 11 : i64} {
  func.func @_layer_kernel(%arg0: i32, %arg1: memref<1x32x128xf32, #tpu.memory_space<vmem>>, %arg2: memref<1x128xf32, #tpu.memory_space<vmem>>, %arg3: memref<1x128xf32, #tpu.memory_space<vmem>>, %arg4: memref<128x128xbf16, #tpu.memory_space<vmem>>, %arg5: memref<8x32x32xbf16, #tpu.memory_space<vmem>>, %arg6: memref<8x1x128xf32, #tpu.memory_space<vmem>>, %arg7: memref<128x128xbf16, #tpu.memory_space<vmem>>, %arg8: memref<1x128xf32, #tpu.memory_space<vmem>>, %arg9: memref<128x128xbf16, #tpu.memory_space<vmem>>, %arg10: memref<1x128xf32, #tpu.memory_space<vmem>>, %arg11: memref<128x128xbf16, #tpu.memory_space<vmem>>, %arg12: memref<1x128xf32, #tpu.memory_space<vmem>>, %arg13: memref<128x128xbf16, #tpu.memory_space<vmem>>, %arg14: memref<1x128xf32, #tpu.memory_space<vmem>>, %arg15: memref<128x128xbf16, #tpu.memory_space<vmem>>, %arg16: memref<1x128xf32, #tpu.memory_space<vmem>>, %arg17: memref<1x128xf32, #tpu.memory_space<vmem>>, %arg18: memref<1x128xf32, #tpu.memory_space<vmem>>, %arg19: memref<128x512xbf16, #tpu.memory_space<vmem>>, %arg20: memref<1x512xf32, #tpu.memory_space<vmem>>, %arg21: memref<128x512xbf16, #tpu.memory_space<vmem>>, %arg22: memref<1x512xf32, #tpu.memory_space<vmem>>, %arg23: memref<512x128xbf16, #tpu.memory_space<vmem>>, %arg24: memref<1x128xf32, #tpu.memory_space<vmem>>, %arg25: memref<1x32x128xf32, #tpu.memory_space<vmem>>) attributes {dimension_semantics = [#tpu.dimension_semantics<parallel>], iteration_bounds = array<i64: 2>, scalar_prefetch = 0 : i64, scratch_operands = 0 : i64, tpu.core_type = #tpu.core_type<tc>, window_params = [{transform_indices = @transform_0, window_bounds = array<i64: 1, 32, 128>}, {pipeline_mode = #tpu.pipeline_mode<synchronous>, transform_indices = @transform_1, window_bounds = array<i64: 1, 128>}, {pipeline_mode = #tpu.pipeline_mode<synchronous>, transform_indices = @transform_2, window_bounds = array<i64: 1, 128>}, {pipeline_mode = #tpu.pipeline_mode<synchronous>, transform_indices = @transform_3, window_bounds = array<i64: 128, 128>}, {pipeline_mode = #tpu.pipeline_mode<synchronous>, transform_indices = @transform_4, window_bounds = array<i64: 8, 32, 32>}, {pipeline_mode = #tpu.pipeline_mode<synchronous>, transform_indices = @transform_5, window_bounds = array<i64: 8, 1, 128>}, {pipeline_mode = #tpu.pipeline_mode<synchronous>, transform_indices = @transform_6, window_bounds = array<i64: 128, 128>}, {pipeline_mode = #tpu.pipeline_mode<synchronous>, transform_indices = @transform_7, window_bounds = array<i64: 1, 128>}, {pipeline_mode = #tpu.pipeline_mode<synchronous>, transform_indices = @transform_8, window_bounds = array<i64: 128, 128>}, {pipeline_mode = #tpu.pipeline_mode<synchronous>, transform_indices = @transform_9, window_bounds = array<i64: 1, 128>}, {pipeline_mode = #tpu.pipeline_mode<synchronous>, transform_indices = @transform_10, window_bounds = array<i64: 128, 128>}, {pipeline_mode = #tpu.pipeline_mode<synchronous>, transform_indices = @transform_11, window_bounds = array<i64: 1, 128>}, {pipeline_mode = #tpu.pipeline_mode<synchronous>, transform_indices = @transform_12, window_bounds = array<i64: 128, 128>}, {pipeline_mode = #tpu.pipeline_mode<synchronous>, transform_indices = @transform_13, window_bounds = array<i64: 1, 128>}, {pipeline_mode = #tpu.pipeline_mode<synchronous>, transform_indices = @transform_14, window_bounds = array<i64: 128, 128>}, {pipeline_mode = #tpu.pipeline_mode<synchronous>, transform_indices = @transform_15, window_bounds = array<i64: 1, 128>}, {pipeline_mode = #tpu.pipeline_mode<synchronous>, transform_indices = @transform_16, window_bounds = array<i64: 1, 128>}, {pipeline_mode = #tpu.pipeline_mode<synchronous>, transform_indices = @transform_17, window_bounds = array<i64: 1, 128>}, {pipeline_mode = #tpu.pipeline_mode<synchronous>, transform_indices = @transform_18, window_bounds = array<i64: 128, 512>}, {pipeline_mode = #tpu.pipeline_mode<synchronous>, transform_indices = @transform_19, window_bounds = array<i64: 1, 512>}, {pipeline_mode = #tpu.pipeline_mode<synchronous>, transform_indices = @transform_20, window_bounds = array<i64: 128, 512>}, {pipeline_mode = #tpu.pipeline_mode<synchronous>, transform_indices = @transform_21, window_bounds = array<i64: 1, 512>}, {pipeline_mode = #tpu.pipeline_mode<synchronous>, transform_indices = @transform_22, window_bounds = array<i64: 512, 128>}, {pipeline_mode = #tpu.pipeline_mode<synchronous>, transform_indices = @transform_23, window_bounds = array<i64: 1, 128>}, {transform_indices = @transform_24, window_bounds = array<i64: 1, 32, 128>}]} {
    %c0 = arith.constant 0 : index
    %c0_0 = arith.constant 0 : index
    %c0_1 = arith.constant 0 : index
    %0 = vector.load %arg1[%c0, %c0_0, %c0_1] : memref<1x32x128xf32, #tpu.memory_space<vmem>>, vector<1x32x128xf32>
    %1 = vector.shape_cast %0 : vector<1x32x128xf32> to vector<32x128xf32>
    %c0_2 = arith.constant 0 : index
    %c0_3 = arith.constant 0 : index
    %2 = vector.load %arg2[%c0_2, %c0_3] : memref<1x128xf32, #tpu.memory_space<vmem>>, vector<1x128xf32>
    %3 = vector.shape_cast %2 : vector<1x128xf32> to vector<128xf32>
    %c0_4 = arith.constant 0 : index
    %c0_5 = arith.constant 0 : index
    %4 = vector.load %arg3[%c0_4, %c0_5] : memref<1x128xf32, #tpu.memory_space<vmem>>, vector<1x128xf32>
    %5 = vector.shape_cast %4 : vector<1x128xf32> to vector<128xf32>
    %cst = arith.constant dense<0.000000e+00> : vector<32xf32>
    %6 = vector.multi_reduction <add>, %1, %cst [1] : vector<32x128xf32> to vector<32xf32>
    %7 = vector.shape_cast %6 : vector<32xf32> to vector<32x1xf32>
    %cst_6 = arith.constant 1.280000e+02 : f32
    %8 = vector.broadcast %cst_6 : f32 to vector<32x1xf32>
    %9 = arith.divf %7, %8 : vector<32x1xf32>
    %10 = vector.broadcast %9 : vector<32x1xf32> to vector<32x128xf32>
    %11 = arith.subf %1, %10 : vector<32x128xf32>
    %12 = arith.mulf %11, %11 : vector<32x128xf32>
    %cst_7 = arith.constant dense<0.000000e+00> : vector<32xf32>
    %13 = vector.multi_reduction <add>, %12, %cst_7 [1] : vector<32x128xf32> to vector<32xf32>
    %14 = vector.shape_cast %13 : vector<32xf32> to vector<32x1xf32>
    %cst_8 = arith.constant 1.280000e+02 : f32
    %15 = vector.broadcast %cst_8 : f32 to vector<32x1xf32>
    %16 = arith.divf %14, %15 : vector<32x1xf32>
    %17 = vector.broadcast %9 : vector<32x1xf32> to vector<32x128xf32>
    %18 = arith.subf %1, %17 : vector<32x128xf32>
    %cst_9 = arith.constant 9.99999974E-6 : f32
    %19 = vector.broadcast %cst_9 : f32 to vector<32x1xf32>
    %20 = arith.addf %16, %19 : vector<32x1xf32>
    %21 = math.rsqrt %20 : vector<32x1xf32>
    %22 = vector.broadcast %21 : vector<32x1xf32> to vector<32x128xf32>
    %23 = arith.mulf %18, %22 : vector<32x128xf32>
    %24 = vector.shape_cast %3 : vector<128xf32> to vector<1x128xf32>
    %25 = vector.broadcast %24 : vector<1x128xf32> to vector<32x128xf32>
    %26 = arith.mulf %23, %25 : vector<32x128xf32>
    %27 = vector.shape_cast %5 : vector<128xf32> to vector<1x128xf32>
    %28 = vector.broadcast %27 : vector<1x128xf32> to vector<32x128xf32>
    %29 = arith.addf %26, %28 : vector<32x128xf32>
    %30 = arith.truncf %29 : vector<32x128xf32> to vector<32x128xbf16>
    %c0_10 = arith.constant 0 : index
    %c0_11 = arith.constant 0 : index
    %31 = vector.load %arg4[%c0_10, %c0_11] : memref<128x128xbf16, #tpu.memory_space<vmem>>, vector<128x128xbf16>
    %cst_12 = arith.constant dense<0.000000e+00> : vector<32x128xf32>
    %32 = tpu.matmul %30, %31, %cst_12 {dimension_numbers = #tpu.dot_dimension_numbers<[1], [0], [0], [1], [0, 0, 1, 1], [], []>} : vector<32x128xbf16>, vector<128x128xbf16>, vector<32x128xf32> -> vector<32x128xf32>
    %33 = arith.truncf %32 : vector<32x128xf32> to vector<32x128xbf16>
    %cst_13 = arith.constant 0.000000e+00 : f32
    %34 = vector.broadcast %cst_13 : f32 to vector<32x128xf32>
    %c0_14 = arith.constant 0 : index
    %c0_15 = arith.constant 0 : index
    %c0_16 = arith.constant 0 : index
    %35 = vector.load %arg5[%c0_14, %c0_15, %c0_16] : memref<8x32x32xbf16, #tpu.memory_space<vmem>>, vector<1x32x32xbf16>
    %36 = vector.shape_cast %35 : vector<1x32x32xbf16> to vector<32x32xbf16>
    %cst_17 = arith.constant dense<0.000000e+00> : vector<32x128xf32>
    %37 = tpu.matmul %36, %33, %cst_17 {dimension_numbers = #tpu.dot_dimension_numbers<[1], [0], [0], [1], [0, 0, 1, 1], [], []>} : vector<32x32xbf16>, vector<32x128xbf16>, vector<32x128xf32> -> vector<32x128xf32>
    %c0_18 = arith.constant 0 : index
    %c0_19 = arith.constant 0 : index
    %c0_20 = arith.constant 0 : index
    %38 = vector.load %arg6[%c0_18, %c0_19, %c0_20] : memref<8x1x128xf32, #tpu.memory_space<vmem>>, vector<1x1x128xf32>
    %39 = vector.shape_cast %38 : vector<1x1x128xf32> to vector<1x128xf32>
    %40 = vector.broadcast %39 : vector<1x128xf32> to vector<32x128xf32>
    %41 = arith.mulf %37, %40 : vector<32x128xf32>
    %42 = arith.addf %34, %41 : vector<32x128xf32>
    %c1 = arith.constant 1 : index
    %c0_21 = arith.constant 0 : index
    %c0_22 = arith.constant 0 : index
    %43 = vector.load %arg5[%c1, %c0_21, %c0_22] : memref<8x32x32xbf16, #tpu.memory_space<vmem>>, vector<1x32x32xbf16>
    %44 = vector.shape_cast %43 : vector<1x32x32xbf16> to vector<32x32xbf16>
    %cst_23 = arith.constant dense<0.000000e+00> : vector<32x128xf32>
    %45 = tpu.matmul %44, %33, %cst_23 {dimension_numbers = #tpu.dot_dimension_numbers<[1], [0], [0], [1], [0, 0, 1, 1], [], []>} : vector<32x32xbf16>, vector<32x128xbf16>, vector<32x128xf32> -> vector<32x128xf32>
    %c1_24 = arith.constant 1 : index
    %c0_25 = arith.constant 0 : index
    %c0_26 = arith.constant 0 : index
    %46 = vector.load %arg6[%c1_24, %c0_25, %c0_26] : memref<8x1x128xf32, #tpu.memory_space<vmem>>, vector<1x1x128xf32>
    %47 = vector.shape_cast %46 : vector<1x1x128xf32> to vector<1x128xf32>
    %48 = vector.broadcast %47 : vector<1x128xf32> to vector<32x128xf32>
    %49 = arith.mulf %45, %48 : vector<32x128xf32>
    %50 = arith.addf %42, %49 : vector<32x128xf32>
    %c2 = arith.constant 2 : index
    %c0_27 = arith.constant 0 : index
    %c0_28 = arith.constant 0 : index
    %51 = vector.load %arg5[%c2, %c0_27, %c0_28] : memref<8x32x32xbf16, #tpu.memory_space<vmem>>, vector<1x32x32xbf16>
    %52 = vector.shape_cast %51 : vector<1x32x32xbf16> to vector<32x32xbf16>
    %cst_29 = arith.constant dense<0.000000e+00> : vector<32x128xf32>
    %53 = tpu.matmul %52, %33, %cst_29 {dimension_numbers = #tpu.dot_dimension_numbers<[1], [0], [0], [1], [0, 0, 1, 1], [], []>} : vector<32x32xbf16>, vector<32x128xbf16>, vector<32x128xf32> -> vector<32x128xf32>
    %c2_30 = arith.constant 2 : index
    %c0_31 = arith.constant 0 : index
    %c0_32 = arith.constant 0 : index
    %54 = vector.load %arg6[%c2_30, %c0_31, %c0_32] : memref<8x1x128xf32, #tpu.memory_space<vmem>>, vector<1x1x128xf32>
    %55 = vector.shape_cast %54 : vector<1x1x128xf32> to vector<1x128xf32>
    %56 = vector.broadcast %55 : vector<1x128xf32> to vector<32x128xf32>
    %57 = arith.mulf %53, %56 : vector<32x128xf32>
    %58 = arith.addf %50, %57 : vector<32x128xf32>
    %c3 = arith.constant 3 : index
    %c0_33 = arith.constant 0 : index
    %c0_34 = arith.constant 0 : index
    %59 = vector.load %arg5[%c3, %c0_33, %c0_34] : memref<8x32x32xbf16, #tpu.memory_space<vmem>>, vector<1x32x32xbf16>
    %60 = vector.shape_cast %59 : vector<1x32x32xbf16> to vector<32x32xbf16>
    %cst_35 = arith.constant dense<0.000000e+00> : vector<32x128xf32>
    %61 = tpu.matmul %60, %33, %cst_35 {dimension_numbers = #tpu.dot_dimension_numbers<[1], [0], [0], [1], [0, 0, 1, 1], [], []>} : vector<32x32xbf16>, vector<32x128xbf16>, vector<32x128xf32> -> vector<32x128xf32>
    %c3_36 = arith.constant 3 : index
    %c0_37 = arith.constant 0 : index
    %c0_38 = arith.constant 0 : index
    %62 = vector.load %arg6[%c3_36, %c0_37, %c0_38] : memref<8x1x128xf32, #tpu.memory_space<vmem>>, vector<1x1x128xf32>
    %63 = vector.shape_cast %62 : vector<1x1x128xf32> to vector<1x128xf32>
    %64 = vector.broadcast %63 : vector<1x128xf32> to vector<32x128xf32>
    %65 = arith.mulf %61, %64 : vector<32x128xf32>
    %66 = arith.addf %58, %65 : vector<32x128xf32>
    %c4 = arith.constant 4 : index
    %c0_39 = arith.constant 0 : index
    %c0_40 = arith.constant 0 : index
    %67 = vector.load %arg5[%c4, %c0_39, %c0_40] : memref<8x32x32xbf16, #tpu.memory_space<vmem>>, vector<1x32x32xbf16>
    %68 = vector.shape_cast %67 : vector<1x32x32xbf16> to vector<32x32xbf16>
    %cst_41 = arith.constant dense<0.000000e+00> : vector<32x128xf32>
    %69 = tpu.matmul %68, %33, %cst_41 {dimension_numbers = #tpu.dot_dimension_numbers<[1], [0], [0], [1], [0, 0, 1, 1], [], []>} : vector<32x32xbf16>, vector<32x128xbf16>, vector<32x128xf32> -> vector<32x128xf32>
    %c4_42 = arith.constant 4 : index
    %c0_43 = arith.constant 0 : index
    %c0_44 = arith.constant 0 : index
    %70 = vector.load %arg6[%c4_42, %c0_43, %c0_44] : memref<8x1x128xf32, #tpu.memory_space<vmem>>, vector<1x1x128xf32>
    %71 = vector.shape_cast %70 : vector<1x1x128xf32> to vector<1x128xf32>
    %72 = vector.broadcast %71 : vector<1x128xf32> to vector<32x128xf32>
    %73 = arith.mulf %69, %72 : vector<32x128xf32>
    %74 = arith.addf %66, %73 : vector<32x128xf32>
    %c5 = arith.constant 5 : index
    %c0_45 = arith.constant 0 : index
    %c0_46 = arith.constant 0 : index
    %75 = vector.load %arg5[%c5, %c0_45, %c0_46] : memref<8x32x32xbf16, #tpu.memory_space<vmem>>, vector<1x32x32xbf16>
    %76 = vector.shape_cast %75 : vector<1x32x32xbf16> to vector<32x32xbf16>
    %cst_47 = arith.constant dense<0.000000e+00> : vector<32x128xf32>
    %77 = tpu.matmul %76, %33, %cst_47 {dimension_numbers = #tpu.dot_dimension_numbers<[1], [0], [0], [1], [0, 0, 1, 1], [], []>} : vector<32x32xbf16>, vector<32x128xbf16>, vector<32x128xf32> -> vector<32x128xf32>
    %c5_48 = arith.constant 5 : index
    %c0_49 = arith.constant 0 : index
    %c0_50 = arith.constant 0 : index
    %78 = vector.load %arg6[%c5_48, %c0_49, %c0_50] : memref<8x1x128xf32, #tpu.memory_space<vmem>>, vector<1x1x128xf32>
    %79 = vector.shape_cast %78 : vector<1x1x128xf32> to vector<1x128xf32>
    %80 = vector.broadcast %79 : vector<1x128xf32> to vector<32x128xf32>
    %81 = arith.mulf %77, %80 : vector<32x128xf32>
    %82 = arith.addf %74, %81 : vector<32x128xf32>
    %c6 = arith.constant 6 : index
    %c0_51 = arith.constant 0 : index
    %c0_52 = arith.constant 0 : index
    %83 = vector.load %arg5[%c6, %c0_51, %c0_52] : memref<8x32x32xbf16, #tpu.memory_space<vmem>>, vector<1x32x32xbf16>
    %84 = vector.shape_cast %83 : vector<1x32x32xbf16> to vector<32x32xbf16>
    %cst_53 = arith.constant dense<0.000000e+00> : vector<32x128xf32>
    %85 = tpu.matmul %84, %33, %cst_53 {dimension_numbers = #tpu.dot_dimension_numbers<[1], [0], [0], [1], [0, 0, 1, 1], [], []>} : vector<32x32xbf16>, vector<32x128xbf16>, vector<32x128xf32> -> vector<32x128xf32>
    %c6_54 = arith.constant 6 : index
    %c0_55 = arith.constant 0 : index
    %c0_56 = arith.constant 0 : index
    %86 = vector.load %arg6[%c6_54, %c0_55, %c0_56] : memref<8x1x128xf32, #tpu.memory_space<vmem>>, vector<1x1x128xf32>
    %87 = vector.shape_cast %86 : vector<1x1x128xf32> to vector<1x128xf32>
    %88 = vector.broadcast %87 : vector<1x128xf32> to vector<32x128xf32>
    %89 = arith.mulf %85, %88 : vector<32x128xf32>
    %90 = arith.addf %82, %89 : vector<32x128xf32>
    %c7 = arith.constant 7 : index
    %c0_57 = arith.constant 0 : index
    %c0_58 = arith.constant 0 : index
    %91 = vector.load %arg5[%c7, %c0_57, %c0_58] : memref<8x32x32xbf16, #tpu.memory_space<vmem>>, vector<1x32x32xbf16>
    %92 = vector.shape_cast %91 : vector<1x32x32xbf16> to vector<32x32xbf16>
    %cst_59 = arith.constant dense<0.000000e+00> : vector<32x128xf32>
    %93 = tpu.matmul %92, %33, %cst_59 {dimension_numbers = #tpu.dot_dimension_numbers<[1], [0], [0], [1], [0, 0, 1, 1], [], []>} : vector<32x32xbf16>, vector<32x128xbf16>, vector<32x128xf32> -> vector<32x128xf32>
    %c7_60 = arith.constant 7 : index
    %c0_61 = arith.constant 0 : index
    %c0_62 = arith.constant 0 : index
    %94 = vector.load %arg6[%c7_60, %c0_61, %c0_62] : memref<8x1x128xf32, #tpu.memory_space<vmem>>, vector<1x1x128xf32>
    %95 = vector.shape_cast %94 : vector<1x1x128xf32> to vector<1x128xf32>
    %96 = vector.broadcast %95 : vector<1x128xf32> to vector<32x128xf32>
    %97 = arith.mulf %93, %96 : vector<32x128xf32>
    %98 = arith.addf %90, %97 : vector<32x128xf32>
    %c0_63 = arith.constant 0 : index
    %c0_64 = arith.constant 0 : index
    %99 = vector.load %arg7[%c0_63, %c0_64] : memref<128x128xbf16, #tpu.memory_space<vmem>>, vector<128x128xbf16>
    %cst_65 = arith.constant dense<0.000000e+00> : vector<32x128xf32>
    %100 = tpu.matmul %30, %99, %cst_65 {dimension_numbers = #tpu.dot_dimension_numbers<[1], [0], [0], [1], [0, 0, 1, 1], [], []>} : vector<32x128xbf16>, vector<128x128xbf16>, vector<32x128xf32> -> vector<32x128xf32>
    %c0_66 = arith.constant 0 : index
    %c0_67 = arith.constant 0 : index
    %101 = vector.load %arg8[%c0_66, %c0_67] : memref<1x128xf32, #tpu.memory_space<vmem>>, vector<1x128xf32>
    %102 = vector.shape_cast %101 : vector<1x128xf32> to vector<128xf32>
    %103 = vector.shape_cast %102 : vector<128xf32> to vector<1x128xf32>
    %104 = vector.broadcast %103 : vector<1x128xf32> to vector<32x128xf32>
    %105 = arith.addf %100, %104 : vector<32x128xf32>
    %c0_68 = arith.constant 0 : index
    %c0_69 = arith.constant 0 : index
    %106 = vector.load %arg9[%c0_68, %c0_69] : memref<128x128xbf16, #tpu.memory_space<vmem>>, vector<128x128xbf16>
    %cst_70 = arith.constant dense<0.000000e+00> : vector<32x128xf32>
    %107 = tpu.matmul %30, %106, %cst_70 {dimension_numbers = #tpu.dot_dimension_numbers<[1], [0], [0], [1], [0, 0, 1, 1], [], []>} : vector<32x128xbf16>, vector<128x128xbf16>, vector<32x128xf32> -> vector<32x128xf32>
    %c0_71 = arith.constant 0 : index
    %c0_72 = arith.constant 0 : index
    %108 = vector.load %arg10[%c0_71, %c0_72] : memref<1x128xf32, #tpu.memory_space<vmem>>, vector<1x128xf32>
    %109 = vector.shape_cast %108 : vector<1x128xf32> to vector<128xf32>
    %110 = vector.shape_cast %109 : vector<128xf32> to vector<1x128xf32>
    %111 = vector.broadcast %110 : vector<1x128xf32> to vector<32x128xf32>
    %112 = arith.addf %107, %111 : vector<32x128xf32>
    %c0_73 = arith.constant 0 : index
    %c0_74 = arith.constant 0 : index
    %113 = vector.load %arg11[%c0_73, %c0_74] : memref<128x128xbf16, #tpu.memory_space<vmem>>, vector<128x128xbf16>
    %cst_75 = arith.constant dense<0.000000e+00> : vector<32x128xf32>
    %114 = tpu.matmul %30, %113, %cst_75 {dimension_numbers = #tpu.dot_dimension_numbers<[1], [0], [0], [1], [0, 0, 1, 1], [], []>} : vector<32x128xbf16>, vector<128x128xbf16>, vector<32x128xf32> -> vector<32x128xf32>
    %c0_76 = arith.constant 0 : index
    %c0_77 = arith.constant 0 : index
    %115 = vector.load %arg12[%c0_76, %c0_77] : memref<1x128xf32, #tpu.memory_space<vmem>>, vector<1x128xf32>
    %116 = vector.shape_cast %115 : vector<1x128xf32> to vector<128xf32>
    %117 = vector.shape_cast %116 : vector<128xf32> to vector<1x128xf32>
    %118 = vector.broadcast %117 : vector<1x128xf32> to vector<32x128xf32>
    %119 = arith.addf %114, %118 : vector<32x128xf32>
    %c0_78 = arith.constant 0 : index
    %c0_79 = arith.constant 0 : index
    %120 = vector.load %arg13[%c0_78, %c0_79] : memref<128x128xbf16, #tpu.memory_space<vmem>>, vector<128x128xbf16>
    %cst_80 = arith.constant dense<0.000000e+00> : vector<32x128xf32>
    %121 = tpu.matmul %30, %120, %cst_80 {dimension_numbers = #tpu.dot_dimension_numbers<[1], [0], [0], [1], [0, 0, 1, 1], [], []>} : vector<32x128xbf16>, vector<128x128xbf16>, vector<32x128xf32> -> vector<32x128xf32>
    %c0_81 = arith.constant 0 : index
    %c0_82 = arith.constant 0 : index
    %122 = vector.load %arg14[%c0_81, %c0_82] : memref<1x128xf32, #tpu.memory_space<vmem>>, vector<1x128xf32>
    %123 = vector.shape_cast %122 : vector<1x128xf32> to vector<128xf32>
    %124 = vector.shape_cast %123 : vector<128xf32> to vector<1x128xf32>
    %125 = vector.broadcast %124 : vector<1x128xf32> to vector<32x128xf32>
    %126 = arith.addf %121, %125 : vector<32x128xf32>
    %127 = arith.negf %126 : vector<32x128xf32>
    %128 = math.exp %127 : vector<32x128xf32>
    %cst_83 = arith.constant 1.000000e+00 : f32
    %129 = vector.broadcast %cst_83 : f32 to vector<32x128xf32>
    %130 = arith.addf %129, %128 : vector<32x128xf32>
    %131 = arith.divf %129, %130 : vector<32x128xf32>
    %132 = arith.truncf %105 : vector<32x128xf32> to vector<32x128xbf16>
    %133 = arith.truncf %112 : vector<32x128xf32> to vector<32x128xbf16>
    %134 = arith.truncf %119 : vector<32x128xf32> to vector<32x128xbf16>
    %135 = tpu.iota {dimensions = array<i32: 1>} : vector<32x32xi32>
    %136 = tpu.iota {dimensions = array<i32: 0>} : vector<32x32xi32>
    %137 = arith.cmpi sle, %135, %136 : vector<32x32xi32>
    %138 = vector.extract_strided_slice %132 {offsets = [0, 0], sizes = [32, 32], strides = [1, 1]} : vector<32x128xbf16> to vector<32x32xbf16>
    %139 = vector.extract_strided_slice %133 {offsets = [0, 0], sizes = [32, 32], strides = [1, 1]} : vector<32x128xbf16> to vector<32x32xbf16>
    %140 = vector.extract_strided_slice %134 {offsets = [0, 0], sizes = [32, 32], strides = [1, 1]} : vector<32x128xbf16> to vector<32x32xbf16>
    %cst_84 = arith.constant dense<0.000000e+00> : vector<32x32xf32>
    %141 = tpu.matmul %138, %140, %cst_84 {dimension_numbers = #tpu.dot_dimension_numbers<[1], [1], [0], [0], [0, 0, 1, 0], [], []>} : vector<32x32xbf16>, vector<32x32xbf16>, vector<32x32xf32> -> vector<32x32xf32>
    %cst_85 = arith.constant 0.000000e+00 : f32
    %142 = vector.broadcast %cst_85 : f32 to vector<32x32xf32>
    %143 = arith.select %137, %141, %142 : vector<32x32xi1>, vector<32x32xf32>
    %144 = arith.truncf %143 : vector<32x32xf32> to vector<32x32xbf16>
    %cst_86 = arith.constant dense<0.000000e+00> : vector<32x32xf32>
    %145 = tpu.matmul %144, %139, %cst_86 {dimension_numbers = #tpu.dot_dimension_numbers<[1], [0], [0], [1], [0, 0, 1, 1], [], []>} : vector<32x32xbf16>, vector<32x32xbf16>, vector<32x32xf32> -> vector<32x32xf32>
    %146 = vector.extract_strided_slice %132 {offsets = [0, 32], sizes = [32, 32], strides = [1, 1]} : vector<32x128xbf16> to vector<32x32xbf16>
    %147 = vector.extract_strided_slice %133 {offsets = [0, 32], sizes = [32, 32], strides = [1, 1]} : vector<32x128xbf16> to vector<32x32xbf16>
    %148 = vector.extract_strided_slice %134 {offsets = [0, 32], sizes = [32, 32], strides = [1, 1]} : vector<32x128xbf16> to vector<32x32xbf16>
    %cst_87 = arith.constant dense<0.000000e+00> : vector<32x32xf32>
    %149 = tpu.matmul %146, %148, %cst_87 {dimension_numbers = #tpu.dot_dimension_numbers<[1], [1], [0], [0], [0, 0, 1, 0], [], []>} : vector<32x32xbf16>, vector<32x32xbf16>, vector<32x32xf32> -> vector<32x32xf32>
    %cst_88 = arith.constant 0.000000e+00 : f32
    %150 = vector.broadcast %cst_88 : f32 to vector<32x32xf32>
    %151 = arith.select %137, %149, %150 : vector<32x32xi1>, vector<32x32xf32>
    %152 = arith.truncf %151 : vector<32x32xf32> to vector<32x32xbf16>
    %cst_89 = arith.constant dense<0.000000e+00> : vector<32x32xf32>
    %153 = tpu.matmul %152, %147, %cst_89 {dimension_numbers = #tpu.dot_dimension_numbers<[1], [0], [0], [1], [0, 0, 1, 1], [], []>} : vector<32x32xbf16>, vector<32x32xbf16>, vector<32x32xf32> -> vector<32x32xf32>
    %154 = vector.extract_strided_slice %132 {offsets = [0, 64], sizes = [32, 32], strides = [1, 1]} : vector<32x128xbf16> to vector<32x32xbf16>
    %155 = vector.extract_strided_slice %133 {offsets = [0, 64], sizes = [32, 32], strides = [1, 1]} : vector<32x128xbf16> to vector<32x32xbf16>
    %156 = vector.extract_strided_slice %134 {offsets = [0, 64], sizes = [32, 32], strides = [1, 1]} : vector<32x128xbf16> to vector<32x32xbf16>
    %cst_90 = arith.constant dense<0.000000e+00> : vector<32x32xf32>
    %157 = tpu.matmul %154, %156, %cst_90 {dimension_numbers = #tpu.dot_dimension_numbers<[1], [1], [0], [0], [0, 0, 1, 0], [], []>} : vector<32x32xbf16>, vector<32x32xbf16>, vector<32x32xf32> -> vector<32x32xf32>
    %cst_91 = arith.constant 0.000000e+00 : f32
    %158 = vector.broadcast %cst_91 : f32 to vector<32x32xf32>
    %159 = arith.select %137, %157, %158 : vector<32x32xi1>, vector<32x32xf32>
    %160 = arith.truncf %159 : vector<32x32xf32> to vector<32x32xbf16>
    %cst_92 = arith.constant dense<0.000000e+00> : vector<32x32xf32>
    %161 = tpu.matmul %160, %155, %cst_92 {dimension_numbers = #tpu.dot_dimension_numbers<[1], [0], [0], [1], [0, 0, 1, 1], [], []>} : vector<32x32xbf16>, vector<32x32xbf16>, vector<32x32xf32> -> vector<32x32xf32>
    %162 = vector.extract_strided_slice %132 {offsets = [0, 96], sizes = [32, 32], strides = [1, 1]} : vector<32x128xbf16> to vector<32x32xbf16>
    %163 = vector.extract_strided_slice %133 {offsets = [0, 96], sizes = [32, 32], strides = [1, 1]} : vector<32x128xbf16> to vector<32x32xbf16>
    %164 = vector.extract_strided_slice %134 {offsets = [0, 96], sizes = [32, 32], strides = [1, 1]} : vector<32x128xbf16> to vector<32x32xbf16>
    %cst_93 = arith.constant dense<0.000000e+00> : vector<32x32xf32>
    %165 = tpu.matmul %162, %164, %cst_93 {dimension_numbers = #tpu.dot_dimension_numbers<[1], [1], [0], [0], [0, 0, 1, 0], [], []>} : vector<32x32xbf16>, vector<32x32xbf16>, vector<32x32xf32> -> vector<32x32xf32>
    %cst_94 = arith.constant 0.000000e+00 : f32
    %166 = vector.broadcast %cst_94 : f32 to vector<32x32xf32>
    %167 = arith.select %137, %165, %166 : vector<32x32xi1>, vector<32x32xf32>
    %168 = arith.truncf %167 : vector<32x32xf32> to vector<32x32xbf16>
    %cst_95 = arith.constant dense<0.000000e+00> : vector<32x32xf32>
    %169 = tpu.matmul %168, %163, %cst_95 {dimension_numbers = #tpu.dot_dimension_numbers<[1], [0], [0], [1], [0, 0, 1, 1], [], []>} : vector<32x32xbf16>, vector<32x32xbf16>, vector<32x32xf32> -> vector<32x32xf32>
    %170 = tpu.concatenate %145, %153, %161, %169 in 1 : vector<32x32xf32>, vector<32x32xf32>, vector<32x32xf32>, vector<32x32xf32> -> vector<32x128xf32>
    %171 = arith.subf %170, %98 : vector<32x128xf32>
    %172 = arith.mulf %171, %131 : vector<32x128xf32>
    %173 = arith.addf %98, %172 : vector<32x128xf32>
    %174 = arith.truncf %173 : vector<32x128xf32> to vector<32x128xbf16>
    %c0_96 = arith.constant 0 : index
    %c0_97 = arith.constant 0 : index
    %175 = vector.load %arg15[%c0_96, %c0_97] : memref<128x128xbf16, #tpu.memory_space<vmem>>, vector<128x128xbf16>
    %cst_98 = arith.constant dense<0.000000e+00> : vector<32x128xf32>
    %176 = tpu.matmul %174, %175, %cst_98 {dimension_numbers = #tpu.dot_dimension_numbers<[1], [0], [0], [1], [0, 0, 1, 1], [], []>} : vector<32x128xbf16>, vector<128x128xbf16>, vector<32x128xf32> -> vector<32x128xf32>
    %c0_99 = arith.constant 0 : index
    %c0_100 = arith.constant 0 : index
    %177 = vector.load %arg16[%c0_99, %c0_100] : memref<1x128xf32, #tpu.memory_space<vmem>>, vector<1x128xf32>
    %178 = vector.shape_cast %177 : vector<1x128xf32> to vector<128xf32>
    %179 = vector.shape_cast %178 : vector<128xf32> to vector<1x128xf32>
    %180 = vector.broadcast %179 : vector<1x128xf32> to vector<32x128xf32>
    %181 = arith.addf %176, %180 : vector<32x128xf32>
    %182 = arith.addf %1, %181 : vector<32x128xf32>
    %c0_101 = arith.constant 0 : index
    %c0_102 = arith.constant 0 : index
    %183 = vector.load %arg17[%c0_101, %c0_102] : memref<1x128xf32, #tpu.memory_space<vmem>>, vector<1x128xf32>
    %184 = vector.shape_cast %183 : vector<1x128xf32> to vector<128xf32>
    %c0_103 = arith.constant 0 : index
    %c0_104 = arith.constant 0 : index
    %185 = vector.load %arg18[%c0_103, %c0_104] : memref<1x128xf32, #tpu.memory_space<vmem>>, vector<1x128xf32>
    %186 = vector.shape_cast %185 : vector<1x128xf32> to vector<128xf32>
    %cst_105 = arith.constant dense<0.000000e+00> : vector<32xf32>
    %187 = vector.multi_reduction <add>, %182, %cst_105 [1] : vector<32x128xf32> to vector<32xf32>
    %188 = vector.shape_cast %187 : vector<32xf32> to vector<32x1xf32>
    %cst_106 = arith.constant 1.280000e+02 : f32
    %189 = vector.broadcast %cst_106 : f32 to vector<32x1xf32>
    %190 = arith.divf %188, %189 : vector<32x1xf32>
    %191 = vector.broadcast %190 : vector<32x1xf32> to vector<32x128xf32>
    %192 = arith.subf %182, %191 : vector<32x128xf32>
    %193 = arith.mulf %192, %192 : vector<32x128xf32>
    %cst_107 = arith.constant dense<0.000000e+00> : vector<32xf32>
    %194 = vector.multi_reduction <add>, %193, %cst_107 [1] : vector<32x128xf32> to vector<32xf32>
    %195 = vector.shape_cast %194 : vector<32xf32> to vector<32x1xf32>
    %cst_108 = arith.constant 1.280000e+02 : f32
    %196 = vector.broadcast %cst_108 : f32 to vector<32x1xf32>
    %197 = arith.divf %195, %196 : vector<32x1xf32>
    %198 = vector.broadcast %190 : vector<32x1xf32> to vector<32x128xf32>
    %199 = arith.subf %182, %198 : vector<32x128xf32>
    %cst_109 = arith.constant 9.99999974E-6 : f32
    %200 = vector.broadcast %cst_109 : f32 to vector<32x1xf32>
    %201 = arith.addf %197, %200 : vector<32x1xf32>
    %202 = math.rsqrt %201 : vector<32x1xf32>
    %203 = vector.broadcast %202 : vector<32x1xf32> to vector<32x128xf32>
    %204 = arith.mulf %199, %203 : vector<32x128xf32>
    %205 = vector.shape_cast %184 : vector<128xf32> to vector<1x128xf32>
    %206 = vector.broadcast %205 : vector<1x128xf32> to vector<32x128xf32>
    %207 = arith.mulf %204, %206 : vector<32x128xf32>
    %208 = vector.shape_cast %186 : vector<128xf32> to vector<1x128xf32>
    %209 = vector.broadcast %208 : vector<1x128xf32> to vector<32x128xf32>
    %210 = arith.addf %207, %209 : vector<32x128xf32>
    %211 = arith.truncf %210 : vector<32x128xf32> to vector<32x128xbf16>
    %c0_110 = arith.constant 0 : index
    %c0_111 = arith.constant 0 : index
    %212 = vector.load %arg19[%c0_110, %c0_111] : memref<128x512xbf16, #tpu.memory_space<vmem>>, vector<128x512xbf16>
    %cst_112 = arith.constant dense<0.000000e+00> : vector<32x512xf32>
    %213 = tpu.matmul %211, %212, %cst_112 {dimension_numbers = #tpu.dot_dimension_numbers<[1], [0], [0], [1], [0, 0, 1, 1], [], []>} : vector<32x128xbf16>, vector<128x512xbf16>, vector<32x512xf32> -> vector<32x512xf32>
    %c0_113 = arith.constant 0 : index
    %c0_114 = arith.constant 0 : index
    %214 = vector.load %arg20[%c0_113, %c0_114] : memref<1x512xf32, #tpu.memory_space<vmem>>, vector<1x512xf32>
    %215 = vector.shape_cast %214 : vector<1x512xf32> to vector<512xf32>
    %216 = vector.shape_cast %215 : vector<512xf32> to vector<1x512xf32>
    %217 = vector.broadcast %216 : vector<1x512xf32> to vector<32x512xf32>
    %218 = arith.addf %213, %217 : vector<32x512xf32>
    %c0_115 = arith.constant 0 : index
    %c0_116 = arith.constant 0 : index
    %219 = vector.load %arg21[%c0_115, %c0_116] : memref<128x512xbf16, #tpu.memory_space<vmem>>, vector<128x512xbf16>
    %cst_117 = arith.constant dense<0.000000e+00> : vector<32x512xf32>
    %220 = tpu.matmul %211, %219, %cst_117 {dimension_numbers = #tpu.dot_dimension_numbers<[1], [0], [0], [1], [0, 0, 1, 1], [], []>} : vector<32x128xbf16>, vector<128x512xbf16>, vector<32x512xf32> -> vector<32x512xf32>
    %c0_118 = arith.constant 0 : index
    %c0_119 = arith.constant 0 : index
    %221 = vector.load %arg22[%c0_118, %c0_119] : memref<1x512xf32, #tpu.memory_space<vmem>>, vector<1x512xf32>
    %222 = vector.shape_cast %221 : vector<1x512xf32> to vector<512xf32>
    %223 = vector.shape_cast %222 : vector<512xf32> to vector<1x512xf32>
    %224 = vector.broadcast %223 : vector<1x512xf32> to vector<32x512xf32>
    %225 = arith.addf %220, %224 : vector<32x512xf32>
    %cst_120 = arith.constant 5.000000e-01 : f32
    %226 = vector.broadcast %cst_120 : f32 to vector<32x512xf32>
    %227 = arith.mulf %226, %218 : vector<32x512xf32>
    %cst_121 = arith.constant 4.471500e-02 : f32
    %228 = vector.broadcast %cst_121 : f32 to vector<32x512xf32>
    %229 = arith.mulf %228, %218 : vector<32x512xf32>
    %230 = arith.mulf %229, %218 : vector<32x512xf32>
    %231 = arith.mulf %230, %218 : vector<32x512xf32>
    %232 = arith.addf %218, %231 : vector<32x512xf32>
    %cst_122 = arith.constant 0.797884583 : f32
    %233 = vector.broadcast %cst_122 : f32 to vector<32x512xf32>
    %234 = arith.mulf %233, %232 : vector<32x512xf32>
    %235 = math.tanh %234 : vector<32x512xf32>
    %cst_123 = arith.constant 1.000000e+00 : f32
    %236 = vector.broadcast %cst_123 : f32 to vector<32x512xf32>
    %237 = arith.addf %236, %235 : vector<32x512xf32>
    %238 = arith.mulf %227, %237 : vector<32x512xf32>
    %239 = arith.mulf %238, %225 : vector<32x512xf32>
    %240 = arith.truncf %239 : vector<32x512xf32> to vector<32x512xbf16>
    %c0_124 = arith.constant 0 : index
    %c0_125 = arith.constant 0 : index
    %241 = vector.load %arg23[%c0_124, %c0_125] : memref<512x128xbf16, #tpu.memory_space<vmem>>, vector<512x128xbf16>
    %cst_126 = arith.constant dense<0.000000e+00> : vector<32x128xf32>
    %242 = tpu.matmul %240, %241, %cst_126 {dimension_numbers = #tpu.dot_dimension_numbers<[1], [0], [0], [1], [0, 0, 1, 1], [], []>} : vector<32x512xbf16>, vector<512x128xbf16>, vector<32x128xf32> -> vector<32x128xf32>
    %c0_127 = arith.constant 0 : index
    %c0_128 = arith.constant 0 : index
    %243 = vector.load %arg24[%c0_127, %c0_128] : memref<1x128xf32, #tpu.memory_space<vmem>>, vector<1x128xf32>
    %244 = vector.shape_cast %243 : vector<1x128xf32> to vector<128xf32>
    %245 = vector.shape_cast %244 : vector<128xf32> to vector<1x128xf32>
    %246 = vector.broadcast %245 : vector<1x128xf32> to vector<32x128xf32>
    %247 = arith.addf %242, %246 : vector<32x128xf32>
    %248 = arith.addf %182, %247 : vector<32x128xf32>
    %c0_129 = arith.constant 0 : index
    %c0_130 = arith.constant 0 : index
    %c0_131 = arith.constant 0 : index
    %249 = vector.load %arg25[%c0_129, %c0_130, %c0_131] : memref<1x32x128xf32, #tpu.memory_space<vmem>>, vector<1x32x128xf32>
    %250 = vector.shape_cast %249 : vector<1x32x128xf32> to vector<32x128xf32>
    %251 = vector.shape_cast %248 : vector<32x128xf32> to vector<1x32x128xf32>
    tpu.vector_store %arg25[%c0_129, %c0_130, %c0_131], %251 {strides = array<i32>} : memref<1x32x128xf32, #tpu.memory_space<vmem>>, vector<1x32x128xf32>,
    return
  }
  func.func @transform_0(%arg0: i32) -> (i32, i32, i32) {
    %c0_i32 = arith.constant 0 : i32
    %c0_i32_0 = arith.constant 0 : i32
    %c0_i32_1 = arith.constant 0 : i32
    return %arg0, %c0_i32, %c0_i32_0 : i32, i32, i32
  }
  func.func @transform_1(%arg0: i32) -> (i32, i32) {
    %c0_i32 = arith.constant 0 : i32
    %c0_i32_0 = arith.constant 0 : i32
    %c0_i32_1 = arith.constant 0 : i32
    return %c0_i32, %c0_i32_0 : i32, i32
  }
  func.func @transform_2(%arg0: i32) -> (i32, i32) {
    %c0_i32 = arith.constant 0 : i32
    %c0_i32_0 = arith.constant 0 : i32
    %c0_i32_1 = arith.constant 0 : i32
    return %c0_i32, %c0_i32_0 : i32, i32
  }
  func.func @transform_3(%arg0: i32) -> (i32, i32) {
    %c0_i32 = arith.constant 0 : i32
    %c0_i32_0 = arith.constant 0 : i32
    %c0_i32_1 = arith.constant 0 : i32
    return %c0_i32, %c0_i32_0 : i32, i32
  }
  func.func @transform_4(%arg0: i32) -> (i32, i32, i32) {
    %c0_i32 = arith.constant 0 : i32
    %c0_i32_0 = arith.constant 0 : i32
    %c0_i32_1 = arith.constant 0 : i32
    %c0_i32_2 = arith.constant 0 : i32
    return %c0_i32, %c0_i32_0, %c0_i32_1 : i32, i32, i32
  }
  func.func @transform_5(%arg0: i32) -> (i32, i32, i32) {
    %c0_i32 = arith.constant 0 : i32
    %c0_i32_0 = arith.constant 0 : i32
    %c0_i32_1 = arith.constant 0 : i32
    %c0_i32_2 = arith.constant 0 : i32
    return %c0_i32, %c0_i32_0, %c0_i32_1 : i32, i32, i32
  }
  func.func @transform_6(%arg0: i32) -> (i32, i32) {
    %c0_i32 = arith.constant 0 : i32
    %c0_i32_0 = arith.constant 0 : i32
    %c0_i32_1 = arith.constant 0 : i32
    return %c0_i32, %c0_i32_0 : i32, i32
  }
  func.func @transform_7(%arg0: i32) -> (i32, i32) {
    %c0_i32 = arith.constant 0 : i32
    %c0_i32_0 = arith.constant 0 : i32
    %c0_i32_1 = arith.constant 0 : i32
    return %c0_i32, %c0_i32_0 : i32, i32
  }
  func.func @transform_8(%arg0: i32) -> (i32, i32) {
    %c0_i32 = arith.constant 0 : i32
    %c0_i32_0 = arith.constant 0 : i32
    %c0_i32_1 = arith.constant 0 : i32
    return %c0_i32, %c0_i32_0 : i32, i32
  }
  func.func @transform_9(%arg0: i32) -> (i32, i32) {
    %c0_i32 = arith.constant 0 : i32
    %c0_i32_0 = arith.constant 0 : i32
    %c0_i32_1 = arith.constant 0 : i32
    return %c0_i32, %c0_i32_0 : i32, i32
  }
  func.func @transform_10(%arg0: i32) -> (i32, i32) {
    %c0_i32 = arith.constant 0 : i32
    %c0_i32_0 = arith.constant 0 : i32
    %c0_i32_1 = arith.constant 0 : i32
    return %c0_i32, %c0_i32_0 : i32, i32
  }
  func.func @transform_11(%arg0: i32) -> (i32, i32) {
    %c0_i32 = arith.constant 0 : i32
    %c0_i32_0 = arith.constant 0 : i32
    %c0_i32_1 = arith.constant 0 : i32
    return %c0_i32, %c0_i32_0 : i32, i32
  }
  func.func @transform_12(%arg0: i32) -> (i32, i32) {
    %c0_i32 = arith.constant 0 : i32
    %c0_i32_0 = arith.constant 0 : i32
    %c0_i32_1 = arith.constant 0 : i32
    return %c0_i32, %c0_i32_0 : i32, i32
  }
  func.func @transform_13(%arg0: i32) -> (i32, i32) {
    %c0_i32 = arith.constant 0 : i32
    %c0_i32_0 = arith.constant 0 : i32
    %c0_i32_1 = arith.constant 0 : i32
    return %c0_i32, %c0_i32_0 : i32, i32
  }
  func.func @transform_14(%arg0: i32) -> (i32, i32) {
    %c0_i32 = arith.constant 0 : i32
    %c0_i32_0 = arith.constant 0 : i32
    %c0_i32_1 = arith.constant 0 : i32
    return %c0_i32, %c0_i32_0 : i32, i32
  }
  func.func @transform_15(%arg0: i32) -> (i32, i32) {
    %c0_i32 = arith.constant 0 : i32
    %c0_i32_0 = arith.constant 0 : i32
    %c0_i32_1 = arith.constant 0 : i32
    return %c0_i32, %c0_i32_0 : i32, i32
  }
  func.func @transform_16(%arg0: i32) -> (i32, i32) {
    %c0_i32 = arith.constant 0 : i32
    %c0_i32_0 = arith.constant 0 : i32
    %c0_i32_1 = arith.constant 0 : i32
    return %c0_i32, %c0_i32_0 : i32, i32
  }
  func.func @transform_17(%arg0: i32) -> (i32, i32) {
    %c0_i32 = arith.constant 0 : i32
    %c0_i32_0 = arith.constant 0 : i32
    %c0_i32_1 = arith.constant 0 : i32
    return %c0_i32, %c0_i32_0 : i32, i32
  }
  func.func @transform_18(%arg0: i32) -> (i32, i32) {
    %c0_i32 = arith.constant 0 : i32
    %c0_i32_0 = arith.constant 0 : i32
    %c0_i32_1 = arith.constant 0 : i32
    return %c0_i32, %c0_i32_0 : i32, i32
  }
  func.func @transform_19(%arg0: i32) -> (i32, i32) {
    %c0_i32 = arith.constant 0 : i32
    %c0_i32_0 = arith.constant 0 : i32
    %c0_i32_1 = arith.constant 0 : i32
    return %c0_i32, %c0_i32_0 : i32, i32
  }
  func.func @transform_20(%arg0: i32) -> (i32, i32) {
    %c0_i32 = arith.constant 0 : i32
    %c0_i32_0 = arith.constant 0 : i32
    %c0_i32_1 = arith.constant 0 : i32
    return %c0_i32, %c0_i32_0 : i32, i32
  }
  func.func @transform_21(%arg0: i32) -> (i32, i32) {
    %c0_i32 = arith.constant 0 : i32
    %c0_i32_0 = arith.constant 0 : i32
    %c0_i32_1 = arith.constant 0 : i32
    return %c0_i32, %c0_i32_0 : i32, i32
  }
  func.func @transform_22(%arg0: i32) -> (i32, i32) {
    %c0_i32 = arith.constant 0 : i32
    %c0_i32_0 = arith.constant 0 : i32
    %c0_i32_1 = arith.constant 0 : i32
    return %c0_i32, %c0_i32_0 : i32, i32
  }
  func.func @transform_23(%arg0: i32) -> (i32, i32) {
    %c0_i32 = arith.constant 0 : i32
    %c0_i32_0 = arith.constant 0 : i32
    %c0_i32_1 = arith.constant 0 : i32
    return %c0_i32, %c0_i32_0 : i32, i32
  }
  func.func @transform_24(%arg0: i32) -> (i32, i32, i32) {
    %c0_i32 = arith.constant 0 : i32
    %c0_i32_0 = arith.constant 0 : i32
    %c0_i32_1 = arith.constant 0 : i32
    return %arg0, %c0_i32, %c0_i32_0 : i32, i32, i32
  }
}

</mosaic_0001>

<bundles_post_ra>
// kernel: tpu_custom_call.1
= control target key start
LH: loop header
LB: loop body
LE: loop exit
PB: predicated region body
PF: predicated region fallthrough
CT: control target
= control target key end

     0   :  { %s6837_s0 = inlined_call_operand.hbm [shape: f32[2,32,128], index: 0, kind: input, shape index: {}]   ;;  %s6838_s1 = inlined_call_operand.hbm [shape: f32[1,128], index: 1, kind: input, shape index: {}]   ;;  %s6839_s2 = inlined_call_operand.hbm [shape: f32[1,128], index: 2, kind: input, shape index: {}]   ;;  %s6840_s3 = inlined_call_operand.hbm [shape: bf16[128,128], index: 3, kind: input, shape index: {}]   ;;  %s6841_s4 = inlined_call_operand.hbm [shape: bf16[8,32,32], index: 4, kind: input, shape index: {}]   ;;  %s6842_s5 = inlined_call_operand.hbm [shape: f32[8,1,128], index: 5, kind: input, shape index: {}]   ;;  %s6843_s6 = inlined_call_operand.hbm [shape: bf16[128,128], index: 6, kind: input, shape index: {}]   ;;  %s6844_s7 = inlined_call_operand.hbm [shape: f32[1,128], index: 7, kind: input, shape index: {}]   ;;  %s6845_s8 = inlined_call_operand.hbm [shape: bf16[128,128], index: 8, kind: input, shape index: {}]   ;;  %s6846_s9 = inlined_call_operand.hbm [shape: f32[1,128], index: 9, kind: input, shape index: {}]   ;;  %s6847_s10 = inlined_call_operand.hbm [shape: bf16[128,128], index: 10, kind: input, shape index: {}]   ;;  %s6848_s11 = inlined_call_operand.vmem [shape: f32[1,128], index: 11, kind: input, shape index: {}]   ;;  %s6849_s12 = inlined_call_operand.hbm [shape: bf16[128,128], index: 12, kind: input, shape index: {}]   ;;  %s6850_s13 = inlined_call_operand.vmem [shape: f32[1,128], index: 13, kind: input, shape index: {}]   ;;  %s6851_s14 = inlined_call_operand.hbm [shape: bf16[128,128], index: 14, kind: input, shape index: {}]   ;;  %s6852_s15 = inlined_call_operand.vmem [shape: f32[1,128], index: 15, kind: input, shape index: {}]   ;;  %s6853_s16 = inlined_call_operand.vmem [shape: f32[1,128], index: 16, kind: input, shape index: {}]   ;;  %s6854_s17 = inlined_call_operand.vmem [shape: f32[1,128], index: 17, kind: input, shape index: {}]   ;;  %s6855_s18 = inlined_call_operand.hbm [shape: bf16[128,512], index: 18, kind: input, shape index: {}]   ;;  %s6856_s19 = inlined_call_operand.vmem [shape: f32[1,512], index: 19, kind: input, shape index: {}]   ;;  %s6857_s20 = inlined_call_operand.hbm [shape: bf16[128,512], index: 20, kind: input, shape index: {}]   ;;  %s6858_s21 = inlined_call_operand.vmem [shape: f32[1,512], index: 21, kind: input, shape index: {}]   ;;  %s6859_s22 = inlined_call_operand.hbm [shape: bf16[512,128], index: 22, kind: input, shape index: {}]   ;;  %s6860_s23 = inlined_call_operand.vmem [shape: f32[1,128], index: 23, kind: input, shape index: {}]   ;;  %s6861_s24 = inlined_call_operand.hbm [shape: f32[2,32,128], index: 24, kind: output, shape index: {}]  }
   0x1   :  { %6868 = sst [smem:[#allocation39_spill]] %s6837_s0 }
   0x2   :  { %6869 = sst [smem:[#allocation40_spill]] %s6838_s1 }
   0x3   :  { %6870 = sst [smem:[#allocation41_spill]] %s6839_s2 }
   0x4   :  { %6871 = sst [smem:[#allocation42_spill]] %s6840_s3 }
   0x5   :  { %6872 = sst [smem:[#allocation43_spill]] %s6841_s4 }
   0x6   :  { %6873 = sst [smem:[#allocation44_spill]] %s6842_s5 }
   0x7   :  { %6874 = sst [smem:[#allocation45_spill]] %s6843_s6 }
   0x8   :  { %6875 = sst [smem:[#allocation46_spill]] %s6844_s7 }
   0x9   :  { %6876 = sst [smem:[#allocation47_spill]] %s6845_s8 }
   0xa   :  { %6877 = sst [smem:[#allocation48_spill]] %s6846_s9 }
   0xb   :  { %6878 = sst [smem:[#allocation49_spill]] %s6847_s10 }
   0xc   :  { %6879 = sst [smem:[#allocation50_spill]] %s6849_s12 }
   0xd   :  { %6880 = sst [smem:[#allocation51_spill]] %s6850_s13 }
   0xe   :  { %6881 = sst [smem:[#allocation52_spill]] %s6852_s15 }
   0xf   :  { %6882 = sst [smem:[#allocation53_spill]] %s6853_s16 }
  0x10   :  { %6883 = sst [smem:[#allocation54_spill]] %s6854_s17 }
  0x11   :  { %6884 = sst [smem:[#allocation55_spill]] %s6856_s19 }
  0x12   :  { %6885 = sst [smem:[#allocation56_spill]] %s6858_s21 }
  0x13   :  { %6886 = sst [smem:[#allocation57_spill]] %s6860_s23 }
  0x14   :  { %6887 = sst [smem:[#allocation58_spill]] %s6861_s24 }
  0x15   :  { %29 = vsyncpa [#allocation3], 0 }
  0x16   :  { %31 = vsyncpa [#allocation3 + $0x1], 0 }
  0x17   :  { %32 = vsyncpa [#allocation6], 0 }
  0x18   :  { %33 = vsyncpa [#allocation9], 0 }
  0x19   :  { %34 = vsyncpa [#allocation12], 0 }
  0x1a   :  { %35 = vsyncpa [#allocation15], 0 }
  0x1b   :  { %36 = vsyncpa [#allocation18], 0 }
  0x1c   :  { %37 = vsyncpa [#allocation21], 0 }
  0x1d   :  { %38 = vsyncpa [#allocation24], 0 }
  0x1e   :  { %39 = vsyncpa [#allocation27], 0 }
  0x1f   :  { %40 = vsyncpa [#allocation4], 0 }
  0x20   :  { %42 = vsyncpa [#allocation4 + $0x1], 0  ;;  %s5865_s5 = smov 0   ;;  %s5867_s26 = smov 0  }
  0x21   :  { %s5869_s27 = smov 0   ;;  %s5871_s28 = smov 0  }
  0x22 LB: > { %s6888_s29 = sld [smem:[#allocation40_spill]]  ;;  %s5889_s7 = sadd.s32 4294967295, %s5710_s28   ;;  %s5710_s28 = sphi %s5871_s28, %s6927_s28   ;;  %s5706_s27 = sphi %s5869_s27, %s6926_s27   ;;  %s5702_s26 = sphi %s5867_s26, %s6925_s26   ;;  %s5698_s5 = sphi %s5865_s5, %s6924_s5  }
  0x23   : > { %p3951_p0 = scmp.ge.s32.totalorder %s5710_s28, 1  ;;  %p69_p1 = scmp.eq.s32.totalorder %s5889_s7, 0 }
  0x24   : > { %p588_p2 = scmp.lt.s32.totalorder %s5710_s28, 3  ;;  %s5712_s3 = smov [#allocation5]  }
  0x25   : > { %s602_s25 = sshll.u32 %s5712_s3, 4  ;;  %s6890_s1 = sld [smem:[#allocation42_spill]]  ;;  %s603_s25 = int_to_ptr.vmem [resolvable:$true] %s602_s25 }
  0x26   : > { %p5894_p3 = pnand %p3951_p0, %p588_p2  ;;  %s6864_s3 = smov 64  }
  0x27   : > { %s6866_s23 = smov 4   ;;  %s5716_s19 = smov [#allocation11]  }
  0x28   : > { %s600_s0 = sshll.u32 %s6888_s29, 4  ;;  %p4898_p5 = pneg %p5894_p3  ;;  %s601_s0 = int_to_ptr.hbm [resolvable:$true] %s600_s0 }
  0x29   : > { %s5713_s29 = smov [#allocation8]   ;;  %s653_s17 = sshll.u32 %s5716_s19, 4  ;;  %s654_s17 = int_to_ptr.vmem [resolvable:$true] %s653_s17 }
  0x2a   : > { %p5906_p6 = pnand %p4898_p5, %p69_p1  ;;  %s625_s24 = sshll.u32 %s5713_s29, 4  ;;  %s626_s24 = int_to_ptr.vmem [resolvable:$true] %s625_s24 }
  0x2b   : > { %s623_s6 = sshll.u32 %s6890_s1, 4  ;;  %s6892_s1 = sld [smem:[#allocation44_spill]]  ;;  %s624_s6 = int_to_ptr.hbm [resolvable:$true] %s623_s6 }
  0x2c   : > { %4901 = dma.hbm_to_vmem [thread:$0]  (!%p5906_p6), %s601_s0, 16, %s603_s25, [#allocation6]  }
  0x2d   : > { %4907 = dma.hbm_to_vmem [thread:$0]  (!%p5906_p6), %s624_s6, 1024, %s626_s24, [#allocation9], %s6864_s3, %s6864_s3, %s6866_s23  }
  0x2e   : > { %s6893_s15 = sld [smem:[#allocation46_spill]]  ;;  %s5717_s25 = smov 16  }
  0x2f   : > { %s5718_s13 = smov 1   ;;  %s5719_s24 = smov [#allocation14]  }
  0x30   : > { %s682_s6 = sshll.u32 %s5719_s24, 4  ;;  %s6894_s9 = sld [smem:[#allocation48_spill]]  ;;  %s683_s6 = int_to_ptr.vmem [resolvable:$true] %s682_s6 }
  0x31   : > { %s651_s21 = sshll.u32 %s6892_s1, 4  ;;  %s6895_s12 = sld [smem:[#allocation50_spill]]  ;;  %s652_s21 = int_to_ptr.hbm [resolvable:$true] %s651_s21 }
  0x32   : > { %4913 = dma.hbm_to_vmem [thread:$0]  (!%p5906_p6), %s652_s21, 128, %s654_s17, [#allocation12], %s5717_s25, %s5717_s25, %s5718_s13  }
  0x33   : > { %s5720_s29 = smov [#allocation17]   ;;  %s5721_s13 = smov [#allocation20]  }
  0x34   : > { %s680_s0 = sshll.u32 %s6893_s15, 4  ;;  %s708_s3 = sshll.u32 %s5720_s29, 4  ;;  %s681_s0 = int_to_ptr.hbm [resolvable:$true] %s680_s0  ;;  %s709_s3 = int_to_ptr.vmem [resolvable:$true] %s708_s3 }
  0x35   : > { %4919 = dma.hbm_to_vmem [thread:$0]  (!%p5906_p6), %s681_s0, 16, %s683_s6, [#allocation15]  }
  0x36   : > { %s706_s19 = sshll.u32 %s6894_s9, 4  ;;  %s736_s17 = sshll.u32 %s5721_s13, 4  ;;  %s707_s19 = int_to_ptr.hbm [resolvable:$true] %s706_s19  ;;  %s737_s17 = int_to_ptr.vmem [resolvable:$true] %s736_s17 }
  0x37   : > { %s734_s1 = sshll.u32 %s6895_s12, 4  ;;  %s774_s8 = sshll.u32 %s6855_s18, 4  ;;  %s735_s1 = int_to_ptr.hbm [resolvable:$true] %s734_s1  ;;  %s775_s8 = int_to_ptr.hbm [resolvable:$true] %s774_s8 }
  0x38   : > { %4925 = dma.hbm_to_vmem [thread:$0]  (!%p5906_p6), %s707_s19, 16, %s709_s3, [#allocation18]  }
  0x39   : > { %s6896_s0 = smov 64   ;;  %s5722_s6 = smov [#allocation23]  }
  0x3a   : > { %4931 = dma.hbm_to_vmem [thread:$0]  (!%p5906_p6), %s735_s1, 1024, %s737_s17, [#allocation21], %s6896_s0, %s6896_s0, %s6866_s23  }
  0x3b   : > { %s776_s4 = sshll.u32 %s5722_s6, 4  ;;  %s6897_s29 = sld [smem:[#allocation41_spill]]  ;;  %s777_s4 = int_to_ptr.vmem [resolvable:$true] %s776_s4 }
  0x3c   : > { %s5723_s19 = smov 256   ;;  %s6898_s24 = sld [smem:[#allocation43_spill]] }
  0x3d   : > { %4937 = dma.hbm_to_vmem [thread:$0]  (!%p5906_p6), %s775_s8, 4096, %s777_s4, [#allocation24], %s5723_s19, %s5723_s19, %s5717_s25  }
  0x3e   : > { %s5724_s1 = smov [#allocation7]   ;;  %s5725_s6 = smov [#allocation10]  }
  0x3f   : > { %s614_s17 = sshll.u32 %s5724_s1, 4  ;;  %s639_s15 = sshll.u32 %s5725_s6, 4  ;;  %s615_s17 = int_to_ptr.vmem [resolvable:$true] %s614_s17  ;;  %s640_s15 = int_to_ptr.vmem [resolvable:$true] %s639_s15 }
  0x40   : > { %s6899_s23 = sld [smem:[#allocation45_spill]]  ;;  %s6900_s8 = smov 4  }
  0x41   : > { %s612_s3 = sshll.u32 %s6897_s29, 4  ;;  %s6901_s21 = sld [smem:[#allocation47_spill]]  ;;  %s613_s3 = int_to_ptr.hbm [resolvable:$true] %s612_s3 }
  0x42   : > { %s637_s9 = sshll.u32 %s6898_s24, 4  ;;  %s5726_s1 = smov [#allocation13]   ;;  %s638_s9 = int_to_ptr.hbm [resolvable:$true] %s637_s9 }
  0x43   : > { %4904 = dma.hbm_to_vmem [thread:$0]  (!%p5906_p6), %s613_s3, 16, %s615_s17, [#allocation6]  }
  0x44   : > { %4910 = dma.hbm_to_vmem [thread:$0]  (!%p5906_p6), %s638_s9, 2048, %s640_s15, [#allocation9], %s6896_s0, %s6896_s0, %s6900_s8  }
  0x45   : > { %s667_s3 = sshll.u32 %s5726_s1, 4  ;;  %s6902_s10 = sld [smem:[#allocation49_spill]]  ;;  %s668_s3 = int_to_ptr.vmem [resolvable:$true] %s667_s3 }
  0x46   : > { %s665_s12 = sshll.u32 %s6899_s23, 4  ;;  %s5727_s23 = smov [#allocation16]   ;;  %s666_s12 = int_to_ptr.hbm [resolvable:$true] %s665_s12 }
  0x47   : > { %s691_s24 = sshll.u32 %s6901_s21, 4  ;;  %s693_s17 = sshll.u32 %s5727_s23, 4  ;;  %s692_s24 = int_to_ptr.hbm [resolvable:$true] %s691_s24  ;;  %s694_s17 = int_to_ptr.vmem [resolvable:$true] %s693_s17 }
  0x48   : > { %4916 = dma.hbm_to_vmem [thread:$0]  (!%p5906_p6), %s666_s12, 1024, %s668_s3, [#allocation12], %s6896_s0, %s6896_s0, %s6900_s8  }
  0x49   : > { %4922 = dma.hbm_to_vmem [thread:$0]  (!%p5906_p6), %s692_s24, 1024, %s694_s17, [#allocation15], %s6896_s0, %s6896_s0, %s6900_s8  }
  0x4a   : > { %s751_s4 = sshll.u32 %s6851_s14, 4  ;;  %s5728_s13 = smov [#allocation19]   ;;  %s752_s4 = int_to_ptr.hbm [resolvable:$true] %s751_s4 }
  0x4b   : > { %s717_s9 = sshll.u32 %s6902_s10, 4  ;;  %s719_s12 = sshll.u32 %s5728_s13, 4  ;;  %s718_s9 = int_to_ptr.hbm [resolvable:$true] %s717_s9  ;;  %s720_s12 = int_to_ptr.vmem [resolvable:$true] %s719_s12 }
  0x4c   : > { %4928 = dma.hbm_to_vmem [thread:$0]  (!%p5906_p6), %s718_s9, 1024, %s720_s12, [#allocation18], %s6896_s0, %s6896_s0, %s6900_s8  }
  0x4d   : > { %s5729_s21 = smov [#allocation22]   ;;  %s791_s23 = sshll.u32 %s6857_s20, 4  ;;  %s792_s23 = int_to_ptr.hbm [resolvable:$true] %s791_s23 }
  0x4e   : > { %s753_s1 = sshll.u32 %s5729_s21, 4  ;;  %s808_s16 = sshll.u32 %s6859_s22, 4  ;;  %s754_s1 = int_to_ptr.vmem [resolvable:$true] %s753_s1  ;;  %s809_s16 = int_to_ptr.hbm [resolvable:$true] %s808_s16 }
  0x4f   : > { %4934 = dma.hbm_to_vmem [thread:$0]  (!%p5906_p6), %s752_s4, 1024, %s754_s1, [#allocation21], %s6896_s0, %s6896_s0, %s6900_s8  }
  0x50   : > { %s5730_s9 = smov [#allocation25]   ;;  %s5731_s29 = smov [#allocation26]  }
  0x51   : > { %s793_s15 = sshll.u32 %s5730_s9, 4  ;;  %s810_s4 = sshll.u32 %s5731_s29, 4  ;;  %s794_s15 = int_to_ptr.vmem [resolvable:$true] %s793_s15  ;;  %s811_s4 = int_to_ptr.vmem [resolvable:$true] %s810_s4 }
  0x52   : > { %4940 = dma.hbm_to_vmem [thread:$0]  (!%p5906_p6), %s792_s23, 4096, %s794_s15, [#allocation24], %s5723_s19, %s5723_s19, %s5717_s25  }
  0x53   : > { %4943 = dma.hbm_to_vmem [thread:$0]  (!%p5906_p6), %s809_s16, 4096, %s811_s4, [#allocation27], %s6896_s0, %s6896_s0, %s6900_s8  }
  0x54   : > { %s3950_s13 = sadd.s32 4294967294, %s5710_s28   ;;  %s6013_s12 = sadd.s32 1, %s5710_s28  }
  0x55   : > { %s52_s21 = ssub.s32 %s5710_s28, %s6013_s12  ;;  %s55_s1 = sadd.s32 1, %s5706_s27 }
  0x56   : > { %p53_p7 = scmp.eq.s32.totalorder %s52_s21, 0  ;;  %p62_p8 = scmp.ne.s32.totalorder %s5706_s27, %s5702_s26 }
  0x57   : > { %p63_p9 = scmp.eq.s32.totalorder %s5710_s28, 0  ;;  %p68_p10 = scmp.ne.s32.totalorder %s5702_s26, %s5698_s5 }
  0x58   : > { %s6024_s25 = scalar_select %p53_p7, %s5706_s27, %s55_s1  }
  0x59   : > { %p6026_p11 = por %p63_p9, %p62_p8  ;;  %p6032_p12 = por %p69_p1, %p68_p10 }
  0x5a   : > { %p575_p13 = scmp.eq.s32.totalorder %s5889_s7, 1  ;;  %p581_p0 = scmp.eq.s32.totalorder %s3950_s13, 1 }
  0x5b   : > { %p4967_p2 = scmp.lt.s32.totalorder %s5710_s28, 2  ;;  %s827_s19 = sand.u32 1, %s5706_s27  }
  0x5c   : > { %p6039_p5 = por %p575_p13, %p62_p8  ;;  %p6043_p6 = por %p581_p0, %p68_p10 }
  0x5d   : > { %s3968_s24 = sshll.u32 %s827_s19, 5  ;;  %s4670_s23 = sshll.u32 %s5710_s28, 5 }
  0x5e   : > { %s6907_s16 = sld [smem:[#allocation39_spill]]  ;;  %s831_s15 = scalar_lea.vmem [#allocation2], %s3968_s24 }
  0x5f   : > { %s839_s29 = sshll.u32 %s831_s15, 4  ;;  %p6053_p7 = pnand %p4967_p2, %p6026_p11  ;;  %s840_s29 = int_to_ptr.vmem [resolvable:$true] %s839_s29 }
  0x60   : > { %s828_s21 = scalar_lea.sflag [#allocation3], %s827_s19 }
  0x61   : > { %p5586_p9 = pneg %p6053_p7 }
  0x64   : > { %s836_s9 = scalar_lea.hbm %s6907_s16, %s4670_s23  ;;  %s5589_s17 = scalar_lea.hbm %s6907_s16, 64 }
  0x65   : > { %s837_s4 = sshll.u32 %s836_s9, 4  ;;  %s838_s4 = int_to_ptr.hbm [resolvable:$true] %s837_s4 }
  0x66   : > { %s5582_s1 = sshra.s32 %s838_s4, 4  ;;  %s5583_s1 = int_to_ptr.hbm [resolvable:$true] %s5582_s1 }
  0x67   : > { %s5584_s10 = scalar_lea.hbm %s5583_s1, 32  ;;  %p5590_p11 = scmp.lt.s32.totalorder %s5583_s1, %s6907_s16 }
  0x68   : > { %p5585_p8 = scmp.ne.s32.totalorder %s5583_s1, %s5584_s10  ;;  %p5591_p0 = scmp.lt.s32.totalorder %s5589_s17, %s5584_s10 }
  0x6a   : > { %p5587_p10 = pnand %p5586_p9, %p5585_p8  ;;  %p5592_p2 = por %p5591_p0, %p5590_p11 }
  0x6c   : > { %p5588_p13 = pneg %p5587_p10 }
  0x6e   : > { %p5593_p4 = pnand %p5592_p2, %p5588_p13 }
  0x70   : > { %5596 = shalt.err (!%p5593_p4)
}
  0x71   : > { %s5732_s19 = smov 128   ;;  %s5733_s9 = smov 8  }
  0x72   : > { %4947 = dma.hbm_to_vmem [thread:$0]  (!%p6053_p7), %s838_s4, 512, %s840_s29, %s828_s21, %s5732_s19, %s5732_s19, %s5733_s9  }
  0x73   : > { %851 = sbr.rel (%p5894_p3) target bundleno = 2084 (0x824), region = 116  ;;  %s6070_s15 = sand.u32 (!%p5894_p3), 1, %s5702_s26  }
  0x74   : > { %s3972_s1 = sshll.u32 (!%p5894_p3), %s6070_s15, 5  ;;  %s854_s10 = scalar_lea.sflag (!%p5894_p3), [#allocation3], %s6070_s15 }
  0x75   : > { %s6076_s24 = scalar_lea.vmem (!%p5894_p3), [#allocation2], %s3972_s1 }
  0x78   : > { %5657 = dma.done.wait (%p6032_p12), %s854_s10, 512  }
  0x79   : > { %5659 = vsyncadd (%p6032_p12), %s854_s10, 4294966784 }
  0x7a   : > { %5661 = dma.done.wait (%p69_p1), [#allocation6], 32  }
  0x7b   : > { %5663 = vsyncadd (%p69_p1), [#allocation6], 4294967264 }
  0x7c   : > { %5665 = dma.done.wait (%p69_p1), [#allocation9], 3072  }
  0x7d   : > { %5667 = vsyncadd (%p69_p1), [#allocation9], 4294964224 }
  0x7e   : > { %5669 = dma.done.wait (%p69_p1), [#allocation12], 1152  }
  0x7f   : > { %5671 = vsyncadd (%p69_p1), [#allocation12], 4294966144 }
  0x80   : > { %5673 = dma.done.wait (%p69_p1), [#allocation15], 1040  }
  0x81   : > { %5675 = vsyncadd (%p69_p1), [#allocation15], 4294966256 }
  0x82   : > { %5677 = dma.done.wait (%p69_p1), [#allocation18], 1040  }
  0x83   : > { %5679 = vsyncadd (%p69_p1), [#allocation18], 4294966256 }
  0x84   : > { %5681 = dma.done.wait (%p69_p1), [#allocation21], 2048  }
  0x85   : > { %5683 = vsyncadd (%p69_p1), [#allocation21], 4294965248 }
  0x86   : > { %5685 = dma.done.wait (%p69_p1), [#allocation24], 8192  }
  0x87   : > { %5687 = vsyncadd (%p69_p1), [#allocation24], 4294959104 }
  0x88   : > { %5689 = dma.done.wait (%p69_p1), [#allocation27], 4096  }
  0x89   : > { %5691 = vsyncadd (%p69_p1), [#allocation27], 4294963200  ;;  %v1001_v0 = vld [vmem:[%s6076_s24 + $0x10] sm:$0xff]  ;;  %v999_v1 = vld [vmem:[%s6076_s24] sm:$0xff]  ;;  %v5734_v4 = vmov 128.0   ;;  %vm1207_vm13 = vcmask 261120  }
  0x8a   : > { %1009 = vadd.xlane.f32.xlu1 %v1001_v0  ;;  %1005 = vadd.xlane.f32.xlu0 %v999_v1  ;;  %v1002_v2 = vld [vmem:[%s6076_s24 + $0x18] sm:$0xff]  ;;  %v1000_v3 = vld [vmem:[%s6076_s24 + $0x8] sm:$0xff]  ;;  %5062 = vrcp.f32 %v5734_v4  ;;  %s5735_s29 = smov 96   ;;  %s5736_s4 = smov 64  }
  0x8b   : > { %v4678_v27 = vld [vmem:[#allocation8 + $0x38] sm:$0xff]  ;;  %v4677_v28 = vld [vmem:[#allocation8 + $0x30] sm:$0xff]  ;;  %v4676_v29 = vld [vmem:[#allocation8 + $0x28] sm:$0xff]  ;;  %s5737_s13 = smov 32   ;;  %s6909_s17 = sld [smem:[#allocation51_spill]] }
  0x8c   : > { %1172 = vmatpush.bf16.msra.mxu0 %v4678_v27  ;;  %v4675_v30 = vld [vmem:[#allocation8 + $0x20] sm:$0xff]  ;;  %v4674_v31 = vld [vmem:[#allocation8 + $0x18] sm:$0xff]  ;;  %v4673_v32 = vld [vmem:[#allocation8 + $0x10] sm:$0xff]  ;;  %s6914_s19 = sld [smem:[#allocation52_spill]]  ;;  %s6794_s10 = scalar_lea.vmem [#allocation28], %s3972_s1 }
  0x8d   : > { %v4672_v33 = vld [vmem:[#allocation8 + $0x8] sm:$0xff]  ;;  %v4671_v38 = vld [vmem:[#allocation8] sm:$0xff]  ;;  %s6919_s21 = sld [smem:[#allocation55_spill]]  ;;  %s4831_s1 = sshll.u32 %s5889_s7, 5 }
  0x8e   : > { %s6920_s6 = sld [smem:[#allocation56_spill]]  ;;  %s3719_s7 = scalar_lea.sflag [#allocation4], %s6070_s15 }
  0x8f   : > { %s6921_s9 = sld [smem:[#allocation57_spill]] }
  0x90   : > { %v5063_v5 = vpop.eup %5062  ;;  %1173 = vmatpush.bf16.msra.mxu0 %v4677_v28  ;;  %s6922_s0 = sld [smem:[#allocation58_spill]] }
  0x91   : > { %v1014_v6 = vmul.f32 128.0, %v5063_v5  ;;  %vm1018_vm0 = vweird.f32 %v5063_v5 }
  0x92   : > { %1011 = vadd.xlane.f32.xlu1 %v1002_v2  ;;  %1007 = vadd.xlane.f32.xlu0 %v1000_v3 }
  0x93   : > { %v1015_v7 = vsub.f32 1.0, %v1014_v6 }
  0x94   : > { %1174 = vmatpush.bf16.msra.mxu0 %v4676_v29 }
  0x95   : > { %v1016_v8 = vmul.f32 %v5063_v5, %v1015_v7 }
  0x96   : > { %s5632_s2 = scalar_lea.hbm %s6922_s0, 64 }
  0x97   : > { %v1017_v9 = vadd.f32 %v5063_v5, %v1016_v8  ;;  %v5045_v8 = vld [vmem:[#allocation7] ss:$0 sm:$0xff] }
  0x98   : > { %1175 = vmatpush.bf16.msra.mxu0 %v4675_v30 }
  0x99   : > { %v6118_v10 = vsel %vm1018_vm0, %v5063_v5, %v1017_v9 }
  0x9c   : > { %1176 = vmatpush.bf16.msra.mxu0 %v4674_v31 }
  0xa0   : > { %1177 = vmatpush.bf16.msra.mxu0 %v4673_v32 }
  0xa4   : > { %1178 = vmatpush.bf16.msra.mxu0 %v4672_v33 }
  0xa8   : > { %1179 = vmatpush.bf16.msra.mxu0 %v4671_v38  ;;  %v4718_v38 = vld [vmem:[#allocation19 + $0x38] sm:$0xff] }
  0xfd   : > { %v1010_v11 = vpop.xlane.xlu1 %1009  ;;  %v1006_v12 = vpop.xlane.xlu0 %1005 }
  0xfe   : > { %v1022_v13 = vmul.f32 %v6118_v10, %v1010_v11  ;;  %v1020_v14 = vmul.f32 %v6118_v10, %v1006_v12 }
 0x100   : > { %v6122_v15 = vsub.f32 %v1001_v0, %v1022_v13  ;;  %v6124_v16 = vsub.f32 %v999_v1, %v1020_v14 }
 0x102   : > { %v1030_v17 = vmul.f32 %v6122_v15, %v6122_v15  ;;  %v1028_v18 = vmul.f32 %v6124_v16, %v6124_v16 }
 0x104   : > { %1036 = vadd.xlane.f32.xlu0 %v1030_v17  ;;  %1032 = vadd.xlane.f32.xlu2 %v1028_v18 }
 0x105   : > { %v1012_v19 = vpop.xlane.xlu1 %1011  ;;  %v1008_v20 = vpop.xlane.xlu0 %1007 }
 0x106   : > { %v1023_v21 = vmul.f32 %v6118_v10, %v1012_v19  ;;  %v1021_v22 = vmul.f32 %v6118_v10, %v1008_v20 }
 0x108   : > { %v6132_v23 = vsub.f32 %v1002_v2, %v1023_v21  ;;  %v6134_v24 = vsub.f32 %v1000_v3, %v1021_v22  ;;  %v5044_v2 = vld [vmem:[#allocation5] ss:$0 sm:$0xff] }
 0x10a   : > { %v1031_v25 = vmul.f32 %v6132_v23, %v6132_v23  ;;  %v1029_v26 = vmul.f32 %v6134_v24, %v6134_v24 }
 0x10c   : > { %1038 = vadd.xlane.f32.xlu1 %v1031_v25  ;;  %1034 = vadd.xlane.f32.xlu2 %v1029_v26 }
 0x177   : > { %v1033_v34 = vpop.xlane.xlu2 %1032  ;;  %v1037_v36 = vpop.xlane.xlu0 %1036 }
 0x178   : > { %v1040_v35 = vmul.f32 %v1033_v34, %v6118_v10  ;;  %v1042_v39 = vmul.f32 %v1037_v36, %v6118_v10  ;;  %v4681_v36 = vld [vmem:[#allocation10 + $0x10] sm:$0xff] }
 0x17a   : > { %v1044_v37 = vadd.f32 1e-05, %v1040_v35  ;;  %v1046_v40 = vadd.f32 1e-05, %v1042_v39  ;;  %v4679_v35 = vld [vmem:[#allocation10] sm:$0xff] }
 0x17b   : > { %v4702_v39 = vld [vmem:[#allocation13 + $0x38] sm:$0xff] }
 0x17c   : > { %5064 = vrsqrt.f32 %v1044_v37  ;;  %vm1054_vm2 = vweird.f32 %v1044_v37  ;;  %vm1074_vm9 = vweird.f32 %v1046_v40 }
 0x17d   : > { %5066 = vrsqrt.f32 %v1046_v40 }
 0x17f   : > { %v1039_v41 = vpop.xlane.xlu1 %1038  ;;  %v1035_v42 = vpop.xlane.xlu2 %1034 }
 0x180   : > { %v1043_v43 = vmul.f32 %v1039_v41, %v6118_v10  ;;  %v1041_v44 = vmul.f32 %v1035_v42, %v6118_v10  ;;  %v4701_v41 = vld [vmem:[#allocation13 + $0x30] sm:$0xff] }
 0x181   : > { %v4716_v42 = vld [vmem:[#allocation19 + $0x28] sm:$0xff] }
 0x182   : > { %v5065_v45 = vpop.eup %5064  ;;  %v1047_v46 = vadd.f32 1e-05, %v1043_v43  ;;  %v1045_v47 = vadd.f32 1e-05, %v1041_v44  ;;  %v4700_v43 = vld [vmem:[#allocation13 + $0x28] sm:$0xff] }
 0x183   : > { %v1049_v48 = vmul.f32 %v5065_v45, %v1044_v37  ;;  %v5067_v51 = vpop.eup %5066  ;;  %vm1055_vm1 = vweird.f32 %v5065_v45  ;;  %v4691_v37 = vld [vmem:[#allocation10 + $0x60] sm:$0xff]  ;;  %v4715_v44 = vld [vmem:[#allocation19 + $0x20] sm:$0xff] }
 0x184   : > { %5068 = vrsqrt.f32 %v1047_v46  ;;  %v1069_v57 = vmul.f32 %v5067_v51, %v1046_v40  ;;  %vm1056_vm3 = vmor %vm1054_vm2, %vm1055_vm1  ;;  %vm1064_vm5 = vweird.f32 %v1045_v47  ;;  %vm1084_vm7 = vweird.f32 %v1047_v46  ;;  %v4717_v40 = vld [vmem:[#allocation19 + $0x30] sm:$0xff] }
 0x185   : > { %v1050_v49 = vmul.f32 %v5065_v45, %v1049_v48  ;;  %5070 = vrsqrt.f32 %v1045_v47  ;;  %vm1075_vm10 = vweird.f32 %v5067_v51  ;;  %v4692_v48 = vld [vmem:[#allocation10 + $0x68] sm:$0xff]  ;;  %vm2437_vm2 = vcmask 523264  }
 0x186   : > { %v1070_v62 = vmul.f32 %v5067_v51, %v1069_v57  ;;  %vm1076_vm12 = vmor %vm1074_vm9, %vm1075_vm10  ;;  %v4697_v57 = vld [vmem:[#allocation13 + $0x10] sm:$0xff] }
 0x187   : > { %v1051_v50 = vmul.f32 0.5, %v1050_v49  ;;  %v4699_v49 = vld [vmem:[#allocation13 + $0x20] sm:$0xff] }
 0x188   : > { %v1071_v4 = vmul.f32 0.5, %v1070_v62  ;;  %v4711_v62 = vld [vmem:[#allocation19] sm:$0xff] }
 0x189   : > { %v1052_v52 = vsub.f32 1.5, %v1051_v50  ;;  %v4714_v50 = vld [vmem:[#allocation19 + $0x18] sm:$0xff] }
 0x18a   : > { %v5069_v53 = vpop.eup %5068  ;;  %v1072_v12 = vsub.f32 1.5, %v1071_v4  ;;  %v4723_v4 = vld [vmem:[#allocation20 + $0x20] sm:$0xff] }
 0x18b   : > { %v5071_v54 = vpop.eup %5070  ;;  %v1079_v55 = vmul.f32 %v5069_v53, %v1047_v46  ;;  %v1053_v56 = vmul.f32 %v5065_v45, %v1052_v52  ;;  %vm1085_vm8 = vweird.f32 %v5069_v53  ;;  %v4682_v46 = vld [vmem:[#allocation10 + $0x18] sm:$0xff]  ;;  %v4726_v52 = vld [vmem:[#allocation20 + $0x38] sm:$0xff] }
 0x18c   : > { %v1059_v58 = vmul.f32 %v5071_v54, %v1045_v47  ;;  %vm1065_vm4 = vweird.f32 %v5071_v54  ;;  %vm1086_vm11 = vmor %vm1084_vm7, %vm1085_vm8  ;;  %v1073_v18 = vmul.f32 %v5067_v51, %v1072_v12  ;;  %v4683_v47 = vld [vmem:[#allocation10 + $0x20] sm:$0xff]  ;;  %v4703_v12 = vld [vmem:[#allocation16] sm:$0xff] }
 0x18d   : > { %v1080_v59 = vmul.f32 %v5069_v53, %v1079_v55  ;;  %v1057_v61 = vsel %vm1056_vm3, %v5065_v45, %v1053_v56  ;;  %vm1066_vm6 = vmor %vm1064_vm5, %vm1065_vm4  ;;  %v4685_v45 = vld [vmem:[#allocation10 + $0x30] sm:$0xff]  ;;  %v4709_v55 = vld [vmem:[#allocation16 + $0x30] sm:$0xff]  ;;  %vm2442_vm3 = vcmask 785408  }
 0x18e   : > { %v1060_v60 = vmul.f32 %v5071_v54, %v1059_v58  ;;  %v1088_v3 = vmul.f32 %v1057_v61, %v6124_v16  ;;  %v1077_v21 = vsel %vm1076_vm12, %v5067_v51, %v1073_v18  ;;  %v4710_v51 = vld [vmem:[#allocation16 + $0x38] sm:$0xff]  ;;  %v4712_v58 = vld [vmem:[#allocation19 + $0x8] sm:$0xff] }
 0x18f   : > { %v1081_v0 = vmul.f32 0.5, %v1080_v59  ;;  %v4725_v56 = vld [vmem:[#allocation20 + $0x30] sm:$0xff]  ;;  %v4708_v59 = vld [vmem:[#allocation16 + $0x28] sm:$0xff] }
 0x190   : > { %v1061_v63 = vmul.f32 0.5, %v1060_v60  ;;  %v1095_v9 = vmul.f32 %v5044_v2, %v1088_v3  ;;  %v4724_v60 = vld [vmem:[#allocation20 + $0x28] sm:$0xff]  ;;  %v4695_v3 = vld [vmem:[#allocation13] sm:$0xff] }
 0x191   : > { %v1082_v6 = vsub.f32 1.5, %v1081_v0  ;;  %v4696_v61 = vld [vmem:[#allocation13 + $0x8] sm:$0xff]  ;;  %v4686_v0 = vld [vmem:[#allocation10 + $0x38] sm:$0xff] }
 0x192   : > { %v1062_v1 = vsub.f32 1.5, %v1061_v63  ;;  %v1102_v17 = vadd.f32 %v5045_v8, %v1095_v9  ;;  %v4707_v63 = vld [vmem:[#allocation16 + $0x20] sm:$0xff]  ;;  %v4704_v9 = vld [vmem:[#allocation16 + $0x8] sm:$0xff] }
 0x193   : > { %v1083_v14 = vmul.f32 %v5069_v53, %v1082_v6  ;;  %v4722_v6 = vld [vmem:[#allocation20 + $0x18] sm:$0xff]  ;;  %v4694_v18 = vld [vmem:[#allocation10 + $0x78] sm:$0xff] }
 0x194   : > { %v1063_v5 = vmul.f32 %v5071_v54, %v1062_v1  ;;  %v4684_v1 = vld [vmem:[#allocation10 + $0x28] sm:$0xff] }
 0x195   : > { %v1087_v20 = vsel %vm1086_vm11, %v5069_v53, %v1083_v14  ;;  %v4698_v53 = vld [vmem:[#allocation13 + $0x18] sm:$0xff]  ;;  %v4688_v14 = vld [vmem:[#allocation10 + $0x48] sm:$0xff] }
 0x196   : > { %v1067_v7 = vsel %vm1066_vm6, %v5071_v54, %v1063_v5  ;;  %v1091_v22 = vmul.f32 %v1087_v20, %v6132_v23  ;;  %v4713_v54 = vld [vmem:[#allocation19 + $0x10] sm:$0xff] }
 0x197   : > { %v1089_v11 = vmul.f32 %v1067_v7, %v6134_v24  ;;  %v1090_v24 = vmul.f32 %v1077_v21, %v6122_v15  ;;  %v4680_v15 = vld [vmem:[#allocation10 + $0x8] sm:$0xff]  ;;  %v4705_v7 = vld [vmem:[#allocation16 + $0x10] sm:$0xff] }
 0x198   : > { %v1098_v25 = vmul.f32 %v5044_v2, %v1091_v22  ;;  %v4706_v5 = vld [vmem:[#allocation16 + $0x18] sm:$0xff]  ;;  %v4690_v20 = vld [vmem:[#allocation10 + $0x58] sm:$0xff]  ;;  %v6178_v22 = vld [vmem:[#allocation11] ss:$0 sm:$0xff] }
 0x199   : > { %v1096_v13 = vmul.f32 %v5044_v2, %v1089_v11  ;;  %v1097_v26 = vmul.f32 %v5044_v2, %v1090_v24  ;;  %v4687_v2 = vld [vmem:[#allocation10 + $0x40] sm:$0xff]  ;;  %v4720_v11 = vld [vmem:[#allocation20 + $0x8] sm:$0xff] }
 0x19a   : > { %v1105_v27 = vadd.f32 %v5045_v8, %v1098_v25  ;;  %v6182_v25 = vld [vmem:[#allocation11 + $0x1] ss:$0 sm:$0xff] }
 0x19b   : > { %v1103_v16 = vadd.f32 %v5045_v8, %v1096_v13  ;;  %v1104_v28 = vadd.f32 %v5045_v8, %v1097_v26  ;;  %v4721_v8 = vld [vmem:[#allocation20 + $0x10] sm:$0xff]  ;;  %v4693_v13 = vld [vmem:[#allocation10 + $0x70] sm:$0xff] }
 0x19d   : > { %v6146_v19 = vpack.c.bf16 %v1103_v16, %v1102_v17  ;;  %v6151_v29 = vpack.c.bf16 %v1105_v27, %v1104_v28  ;;  %v4689_v17 = vld [vmem:[#allocation10 + $0x50] sm:$0xff] }
 0x19e   : > { %v4719_v16 = vld [vmem:[#allocation20] sm:$0xff] }
 0x19f   : > { %1180 = vmatmul.bf16.vlgmr.msra.gmra.mxu0 %v6146_v19 }
 0x1af   : > { %1185 = vmatmul.bf16.gmra.mxu0 %v6151_v29 }
 0x21c   : > { %v1181_v30 = vpop.f32.mrf.mxu0 }
 0x224   : > { %v1183_v31 = vpop.f32.mrf.mxu0 }
 0x225   : > { %v1191_v23 = vpack.c.bf16 %v1183_v31, %v1181_v30 }
 0x22c   : > { %v1186_v32 = vpop.f32.mrf.mxu0 }
 0x234   : > { %v1188_v33 = vpop.f32.mrf.mxu0 }
 0x235   : > { %v1192_v34 = vpack.c.bf16 %v1188_v33, %v1186_v32 }
 0x237   : > { %1220 = vmatpush.bf16.msra.mxu1 %v1192_v34  ;;  %4832 = vmatpush.bf16.msra.mxu3 %v1192_v34 }
 0x238   : > { %1272 = vmatpush.bf16.msra.mxu2 %v1192_v34  ;;  %1537 = vmatpush.bf16.msrb.mxu0 %v1192_v34 }
 0x23b   : > { %1221 = vmatpush.bf16.msra.mxu1 %v1191_v23  ;;  %4833 = vmatpush.bf16.msra.mxu3 %v1191_v23 }
 0x23c   : > { %1273 = vmatpush.bf16.msra.mxu2 %v1191_v23  ;;  %1538 = vmatpush.bf16.msrb.mxu0 %v1191_v23 }
 0x23e   : > { %4029 = vmatmul.msk.bf16.vlgmr.msra.gmra.mxu1 %vm1207_vm13, %v4679_v35  ;;  %4030 = vmatmul.msk.bf16.vlgmr.msra.gmra.mxu3 %vm1207_vm13, %v4680_v15  ;;  %v6196_v35 = vld [vmem:[#allocation11 + $0x3] ss:$0 sm:$0xff]  ;;  %v6198_v15 = vld [vmem:[#allocation11 + $0x2] ss:$0 sm:$0xff] }
 0x23f   : > { %1325 = vmatpush.bf16.msrb.mxu3 %v1192_v34  ;;  %1378 = vmatpush.bf16.msrb.mxu1 %v1192_v34 }
 0x240   : > { %1431 = vmatpush.bf16.msrb.mxu2 %v1192_v34  ;;  %4089 = vmatmul.msk.bf16.vlgmr.msrb.gmra.mxu0 %vm1207_vm13, %v4691_v37 }
 0x241   : > { %4039 = vmatmul.msk.bf16.vlgmr.msra.gmra.mxu2 %vm1207_vm13, %v4681_v36  ;;  %1858 = vmatpush.bf16.msra.mxu0 %v4718_v38 }
 0x243   : > { %1326 = vmatpush.bf16.msrb.mxu3 %v1191_v23  ;;  %1379 = vmatpush.bf16.msrb.mxu1 %v1191_v23 }
 0x244   : > { %1432 = vmatpush.bf16.msrb.mxu2 %v1191_v23 }
 0x245   : > { %1859 = vmatpush.bf16.msra.mxu0 %v4717_v40 }
 0x247   : > { %1484 = vmatpush.bf16.msra.mxu3 %v1192_v34  ;;  %1590 = vmatpush.bf16.msra.mxu1 %v1192_v34 }
 0x248   : > { %1684 = vmatpush.bf16.msra.mxu2 %v4702_v39 }
 0x249   : > { %1860 = vmatpush.bf16.msra.mxu0 %v4716_v42 }
 0x24b   : > { %1485 = vmatpush.bf16.msra.mxu3 %v1191_v23  ;;  %1591 = vmatpush.bf16.msra.mxu1 %v1191_v23 }
 0x24c   : > { %1685 = vmatpush.bf16.msra.mxu2 %v4701_v41 }
 0x24d   : > { %1861 = vmatpush.bf16.msra.mxu0 %v4715_v44 }
 0x24e   : > { %4059 = vmatmul.msk.bf16.vlgmr.msrb.gmra.mxu1 %vm1207_vm13, %v4685_v45  ;;  %4049 = vmatmul.msk.bf16.vlgmr.msrb.gmra.mxu3 %vm1207_vm13, %v4683_v47 }
 0x24f   : > { %1771 = vmatpush.bf16.msrb.mxu3 %v4710_v51  ;;  %1945 = vmatpush.bf16.msrb.mxu1 %v4726_v52  ;;  %v5051_v51 = vld [vmem:[%s6848_s11] ss:$0 sm:$0xff]  ;;  %v6215_v52 = vld [vmem:[#allocation11 + $0x4] ss:$0 sm:$0xff] }
 0x250   : > { %1686 = vmatpush.bf16.msra.mxu2 %v4700_v43  ;;  %4090 = vmatmul.msk.bf16.gmra.mxu0 %vm1207_vm13, %v4692_v48 }
 0x251   : > { %4040 = vmatmul.msk.bf16.gmra.mxu2 %vm1207_vm13, %v4682_v46  ;;  %1862 = vmatpush.bf16.msra.mxu0 %v4714_v50 }
 0x253   : > { %1772 = vmatpush.bf16.msrb.mxu3 %v4709_v55  ;;  %1946 = vmatpush.bf16.msrb.mxu1 %v4725_v56 }
 0x254   : > { %1687 = vmatpush.bf16.msra.mxu2 %v4699_v49 }
 0x255   : > { %1863 = vmatpush.bf16.msra.mxu0 %v4713_v54 }
 0x257   : > { %1773 = vmatpush.bf16.msrb.mxu3 %v4708_v59  ;;  %1947 = vmatpush.bf16.msrb.mxu1 %v4724_v60 }
 0x258   : > { %1688 = vmatpush.bf16.msra.mxu2 %v4698_v53 }
 0x259   : > { %1864 = vmatpush.bf16.msra.mxu0 %v4712_v58 }
 0x25b   : > { %1774 = vmatpush.bf16.msrb.mxu3 %v4707_v63  ;;  %1948 = vmatpush.bf16.msrb.mxu1 %v4723_v4 }
 0x25c   : > { %1689 = vmatpush.bf16.msra.mxu2 %v4697_v57 }
 0x25d   : > { %1865 = vmatpush.bf16.msra.mxu0 %v4711_v62 }
 0x25e   : > { %4060 = vmatmul.msk.bf16.gmra.mxu1 %vm1207_vm13, %v4686_v0  ;;  %4050 = vmatmul.msk.bf16.gmra.mxu3 %vm1207_vm13, %v4684_v1 }
 0x25f   : > { %1775 = vmatpush.bf16.msrb.mxu3 %v4706_v5  ;;  %1949 = vmatpush.bf16.msrb.mxu1 %v4722_v6 }
 0x260   : > { %1690 = vmatpush.bf16.msra.mxu2 %v4696_v61  ;;  %1866 = vmatmul.bf16.vlgmr.msra.gmra.mxu0 %v6146_v19 }
 0x261   : > { %4069 = vmatmul.msk.bf16.vlgmr.msrb.gmra.mxu2 %vm1207_vm13, %v4687_v2 }
 0x263   : > { %1776 = vmatpush.bf16.msrb.mxu3 %v4705_v7  ;;  %1950 = vmatpush.bf16.msrb.mxu1 %v4721_v8 }
 0x264   : > { %1691 = vmatpush.bf16.msra.mxu2 %v4695_v3 }
 0x267   : > { %1777 = vmatpush.bf16.msrb.mxu3 %v4704_v9  ;;  %1951 = vmatpush.bf16.msrb.mxu1 %v4720_v11  ;;  %v6230_v11 = vld [vmem:[#allocation11 + $0x5] ss:$0 sm:$0xff] }
 0x26b   : > { %1778 = vmatpush.bf16.msrb.mxu3 %v4703_v12  ;;  %1952 = vmatpush.bf16.msrb.mxu1 %v4719_v16  ;;  %v6232_v12 = vld [vmem:[#allocation11 + $0x6] ss:$0 sm:$0xff] }
 0x26e   : > { %4099 = vmatmul.msk.bf16.vlgmr.msra.gmra.mxu1 %vm1207_vm13, %v4693_v13  ;;  %4079 = vmatmul.msk.bf16.vlgmr.msra.gmra.mxu3 %vm1207_vm13, %v4689_v17  ;;  %v6234_v13 = vld [vmem:[#allocation11 + $0x7] ss:$0 sm:$0xff] }
 0x270   : > { %1871 = vmatmul.bf16.gmra.mxu0 %v6151_v29 }
 0x271   : > { %4070 = vmatmul.msk.bf16.gmra.mxu2 %vm1207_vm13, %v4688_v14 }
 0x27e   : > { %4100 = vmatmul.msk.bf16.gmra.mxu1 %vm1207_vm13, %v4694_v18  ;;  %4080 = vmatmul.msk.bf16.gmra.mxu3 %vm1207_vm13, %v4690_v20 }
 0x281   : > { %1692 = vmatmul.bf16.vlgmr.msra.gmra.mxu2 %v6146_v19 }
 0x28e   : > { %1953 = vmatmul.bf16.vlgmr.msrb.gmra.mxu1 %v6146_v19  ;;  %1779 = vmatmul.bf16.vlgmr.msrb.gmra.mxu3 %v6146_v19 }
 0x291   : > { %1697 = vmatmul.bf16.gmra.mxu2 %v6151_v29 }
 0x29e   : > { %1958 = vmatmul.bf16.gmra.mxu1 %v6151_v29  ;;  %1784 = vmatmul.bf16.gmra.mxu3 %v6151_v29 }
 0x2bb   : > { %v1223_v21 = vpop.f32.mrf.mxu1 }
 0x2bc   : > { %v1237_v26 = vmul.f32 %v6178_v22, %v1223_v21 }
 0x2bd   : > { %v6180_v24 = vpop.f32.mrf.mxu0 }
 0x2be   : > { %v1555_v21 = vmul.f32 %v6232_v12, %v6180_v24 }
 0x2c1   : > { %v1228_v27 = vpop.f32.mrf.mxu3 }
 0x2c2   : > { %v1239_v36 = vmul.f32 %v6178_v22, %v1228_v27 }
 0x2c3   : > { %v6186_v31 = vpop.f32.mrf.mxu1 }
 0x2c4   : > { %v1275_v28 = vpop.f32.mrf.mxu2 }
 0x2c5   : > { %v1290_v30 = vmul.f32 %v6182_v25, %v1275_v28  ;;  %v6188_v32 = vpop.f32.mrf.mxu0 }
 0x2c7   : > { %v1294_v19 = vadd.f32 %v1290_v30, %v1237_v26 }
 0x2c9   : > { %v6190_v33 = vpop.f32.mrf.mxu3 }
 0x2cb   : > { %v1381_v34 = vpop.f32.mrf.mxu1 }
 0x2cc   : > { %v6192_v29 = vpop.f32.mrf.mxu2  ;;  %v1396_v39 = vmul.f32 %v6196_v35, %v1381_v34 }
 0x2cd   : > { %v6194_v23 = vpop.f32.mrf.mxu0 }
 0x2d1   : > { %v1328_v38 = vpop.f32.mrf.mxu3 }
 0x2d2   : > { %v1343_v41 = vmul.f32 %v6198_v15, %v1328_v38 }
 0x2d3   : > { %v6204_v42 = vpop.f32.mrf.mxu1 }
 0x2d4   : > { %v1280_v37 = vpop.f32.mrf.mxu2  ;;  %v1347_v44 = vadd.f32 %v1343_v41, %v1294_v19 }
 0x2d5   : > { %v1292_v40 = vmul.f32 %v6182_v25, %v1280_v37  ;;  %v6206_v45 = vpop.f32.mrf.mxu0 }
 0x2d6   : > { %v1400_v46 = vadd.f32 %v1396_v39, %v1347_v44 }
 0x2d7   : > { %v1296_v43 = vadd.f32 %v1292_v40, %v1239_v36 }
 0x2d9   : > { %v6210_v48 = vpop.f32.mrf.mxu3 }
 0x2db   : > { %v1386_v49 = vpop.f32.mrf.mxu1 }
 0x2dc   : > { %v6208_v47 = vpop.f32.mrf.mxu2  ;;  %v1398_v56 = vmul.f32 %v6196_v35, %v1386_v49 }
 0x2dd   : > { %v1867_v50 = vpop.f32.mrf.mxu0 }
 0x2de   : > { %v1868_v53 = vadd.f32 %v5051_v51, %v1867_v50 }
 0x2e0   : > { %v2048_v63 = vpack.c.bf16 %v1868_v53, %v1868_v53  ;;  %v5055_v53 = vld [vmem:[#allocation14] ss:$0 sm:$0xff] }
 0x2e1   : > { %v1333_v54 = vpop.f32.mrf.mxu3 }
 0x2e2   : > { %v1345_v57 = vmul.f32 %v6198_v15, %v1333_v54  ;;  %v2077_v3 = vunpack.c.l.b16 %v2048_v63 }
 0x2e3   : > { %v6220_v61 = vpop.f32.mrf.mxu1 }
 0x2e4   : > { %v1434_v55 = vpop.f32.mrf.mxu2  ;;  %v1349_v59 = vadd.f32 %v1345_v57, %v1296_v43 }
 0x2e5   : > { %v1449_v58 = vmul.f32 %v6215_v52, %v1434_v55  ;;  %v1869_v62 = vpop.f32.mrf.mxu0  ;;  %v1557_v55 = vmul.f32 %v6232_v12, %v6194_v23 }
 0x2e6   : > { %v1870_v0 = vadd.f32 %v5051_v51, %v1869_v62  ;;  %v1402_v1 = vadd.f32 %v1398_v56, %v1349_v59 }
 0x2e7   : > { %v1453_v60 = vadd.f32 %v1449_v58, %v1400_v46 }
 0x2e8   : > { %v2049_v2 = vpack.c.bf16 %v1870_v0, %v1870_v0 }
 0x2e9   : > { %v6222_v5 = vpop.f32.mrf.mxu3 }
 0x2ea   : > { %v2078_v4 = vunpack.c.l.b16 %v2049_v2 }
 0x2eb   : > { %v1593_v9 = vpop.f32.mrf.mxu1 }
 0x2ec   : > { %v6224_v6 = vpop.f32.mrf.mxu2  ;;  %v6226_v7 = vpack.c.b16 %v2078_v4, %v2077_v3  ;;  %v1608_v26 = vmul.f32 %v6234_v13, %v1593_v9 }
 0x2ed   : > { %v1872_v8 = vpop.f32.mrf.mxu0 }
 0x2ee   : > { %2161 = vrot.lane.b32.xlu0 %v6226_v7, %s5735_s29  ;;  %v1873_v14 = vadd.f32 %v5051_v51, %v1872_v8  ;;  %v2090_v58 = vsel %vm1207_vm13, %v6226_v7, 0 }
 0x2f0   : > { %v2050_v19 = vpack.c.bf16 %v1873_v14, %v1873_v14 }
 0x2f1   : > { %v1487_v16 = vpop.f32.mrf.mxu3 }
 0x2f2   : > { %v1502_v20 = vmul.f32 %v6230_v11, %v1487_v16  ;;  %v2079_v40 = vunpack.c.l.b16 %v2050_v19 }
 0x2f3   : > { %v6243_v38 = vpop.f32.mrf.mxu1 }
 0x2f4   : > { %v1439_v17 = vpop.f32.mrf.mxu2  ;;  %v1506_v28 = vadd.f32 %v1502_v20, %v1453_v60 }
 0x2f5   : > { %v1451_v18 = vmul.f32 %v6215_v52, %v1439_v17  ;;  %v1874_v30 = vpop.f32.mrf.mxu0 }
 0x2f6   : > { %v1875_v34 = vadd.f32 %v5051_v51, %v1874_v30  ;;  %2237 = vrot.lane.b32.xlu0 %v6226_v7, %s5736_s4  ;;  %v1559_v36 = vadd.f32 %v1555_v21, %v1506_v28  ;;  %v5057_v21 = vld [vmem:[#allocation17] ss:$0 sm:$0xff] }
 0x2f7   : > { %v1455_v27 = vadd.f32 %v1451_v18, %v1402_v1 }
 0x2f8   : > { %v2051_v37 = vpack.c.bf16 %v1875_v34, %v1875_v34  ;;  %v6245_v39 = vadd.f32 %v1608_v26, %v1559_v36 }
 0x2f9   : > { %v6249_v43 = vpop.f32.mrf.mxu3 }
 0x2fa   : > { %v2080_v41 = vunpack.c.l.b16 %v2051_v37 }
 0x2fb   : > { %v1598_v54 = vpop.f32.mrf.mxu1 }
 0x2fc   : > { %v6247_v24 = vpop.f32.mrf.mxu2  ;;  %v2082_v44 = vpack.c.b16 %v2080_v41, %v2079_v40  ;;  %v1610_v56 = vmul.f32 %v6234_v13, %v1598_v54 }
 0x2fe   : > { %2163 = vrot.lane.b32.xlu2 %v2082_v44, %s5735_s29  ;;  %v2093_v46 = vsel %vm1207_vm13, %v2082_v44, 0 }
 0x2ff   : > { %2101 = vmatpush.bf16.xpose.msrb.mxu2 %v2093_v46 }
 0x301   : > { %v1492_v49 = vpop.f32.mrf.mxu3 }
 0x302   : > { %v1504_v51 = vmul.f32 %v6230_v11, %v1492_v49 }
 0x304   : > { %v1693_v50 = vpop.f32.mrf.mxu2  ;;  %v1508_v57 = vadd.f32 %v1504_v51, %v1455_v27 }
 0x305   : > { %v1694_v60 = vadd.f32 %v5055_v53, %v1693_v50 }
 0x306   : > { %2239 = vrot.lane.b32.xlu2 %v2082_v44, %s5736_s4  ;;  %v1561_v59 = vadd.f32 %v1557_v55, %v1508_v57 }
 0x307   : > { %2102 = vmatpush.bf16.xpose.msrb.mxu2 %v2090_v58  ;;  %v2040_v1 = vpack.c.bf16 %v1694_v60, %v1694_v60 }
 0x308   : > { %v6260_v62 = vadd.f32 %v1610_v56, %v1561_v59 }
 0x309   : > { %v6262_v63 = vpop.f32.mrf.mxu3  ;;  %v2067_v23 = vunpack.c.l.b16 %v2040_v1 }
 0x30c   : > { %v1695_v0 = vpop.f32.mrf.mxu2 }
 0x30d   : > { %v1696_v2 = vadd.f32 %v5055_v53, %v1695_v0 }
 0x30f   : > { %v2041_v3 = vpack.c.bf16 %v1696_v2, %v1696_v2 }
 0x311   : > { %v2068_v4 = vunpack.c.l.b16 %v2041_v3  ;;  %v1780_v14 = vpop.f32.mrf.mxu3 }
 0x312   : > { %v1781_v19 = vadd.f32 %v5057_v21, %v1780_v14 }
 0x313   : > { %v2071_v8 = vpack.c.b16 %v2068_v4, %v2067_v23 }
 0x314   : > { %v1698_v9 = vpop.f32.mrf.mxu2  ;;  %v2044_v41 = vpack.c.bf16 %v1781_v19, %v1781_v19 }
 0x315   : > { %2233 = vrot.lane.b32.xlu0 %v2071_v8, %s5736_s4  ;;  %2157 = vrot.lane.b32.xlu1 %v2071_v8, %s5735_s29  ;;  %v1699_v17 = vadd.f32 %v5055_v53, %v1698_v9 }
 0x316   : > { %4233 = vmatmul.msk.bf16.vlgmr.msrb.gmra.mxu2 %vm1207_vm13, %v2071_v8  ;;  %v2124_v49 = vunpack.c.l.b16 %v2044_v41 }
 0x317   : > { %v2042_v20 = vpack.c.bf16 %v1699_v17, %v1699_v17 }
 0x319   : > { %v1782_v18 = vpop.f32.mrf.mxu3  ;;  %v2069_v30 = vunpack.c.l.b16 %v2042_v20  ;;  %v2052_v20 = vlaneseq }
 0x31a   : > { %v1783_v28 = vadd.f32 %v5057_v21, %v1782_v18 }
 0x31b   : > { %v6293_v19 = vand.u32 127, %v2052_v20 }
 0x31c   : > { %v1700_v16 = vpop.f32.mrf.mxu2  ;;  %v2045_v37 = vpack.c.bf16 %v1783_v28, %v1783_v28  ;;  %v6290_v28 = vshrl.u32 %v2052_v20, 7 }
 0x31d   : > { %v1701_v26 = vadd.f32 %v5055_v53, %v1700_v16  ;;  %2315 = vrot.lane.b32.xlu1 %v2082_v44, %s5737_s13 }
 0x31e   : > { %v2125_v46 = vunpack.c.l.b16 %v2045_v37  ;;  %vm2059_vm14 = vcmp.le.s32.totalorder %v6293_v19, %v6290_v28 }
 0x31f   : > { %v2043_v27 = vpack.c.bf16 %v1701_v26, %v1701_v26 }
 0x320   : > { %v2128_v50 = vpack.c.b16 %v2125_v46, %v2124_v49 }
 0x321   : > { %v2070_v34 = vunpack.c.l.b16 %v2043_v27  ;;  %v1785_v40 = vpop.f32.mrf.mxu3 }
 0x322   : > { %v1786_v44 = vadd.f32 %v5057_v21, %v1785_v40 }
 0x323   : > { %v2072_v36 = vpack.c.b16 %v2070_v34, %v2069_v30  ;;  %v2056_v34 = vadd.s32 8, %v6290_v28 }
 0x324   : > { %v2046_v53 = vpack.c.bf16 %v1786_v44, %v1786_v44 }
 0x325   : > { %2159 = vrot.lane.b32.xlu2 %v2072_v36, %s5735_s29  ;;  %2235 = vrot.lane.b32.xlu0 %v2072_v36, %s5736_s4  ;;  %vm2060_vm15 = vcmp.le.s32.totalorder %v6293_v19, %v2056_v34 }
 0x326   : > { %2309 = vrot.lane.b32.xlu1 %v2071_v8, %s5737_s13  ;;  %4234 = vmatmul.msk.bf16.gmra.mxu2 %vm1207_vm13, %v2072_v36  ;;  %v2126_v56 = vunpack.c.l.b16 %v2046_v53  ;;  %v2058_v53 = vadd.s32 24, %v6290_v28 }
 0x328   : > { %vm2062_vm1 = vcmp.le.s32.totalorder %v6293_v19, %v2058_v53 }
 0x329   : > { %v1787_v51 = vpop.f32.mrf.mxu3 }
 0x32a   : > { %v1788_v54 = vadd.f32 %v5057_v21, %v1787_v51  ;;  %v2057_v51 = vadd.s32 16, %v6290_v28 }
 0x32c   : > { %v2047_v55 = vpack.c.bf16 %v1788_v54, %v1788_v54  ;;  %vm2061_vm0 = vcmp.le.s32.totalorder %v6293_v19, %v2057_v51 }
 0x32d   : > { %2313 = vrot.lane.b32.xlu2 %v6226_v7, %s5737_s13  ;;  %2202 = vrot.lane.b32.xlu0 %v2128_v50, %s5735_s29 }
 0x32e   : > { %v2127_v57 = vunpack.c.l.b16 %v2047_v55 }
 0x330   : > { %v2129_v58 = vpack.c.b16 %v2127_v57, %v2126_v56 }
 0x332   : > { %2204 = vrot.lane.b32.xlu1 %v2129_v58, %s5735_s29  ;;  %2144 = vmatpush.bf16.msra.mxu3 %v2129_v58 }
 0x335   : > { %2311 = vrot.lane.b32.xlu2 %v2072_v36, %s5737_s13  ;;  %2356 = vrot.lane.b32.xlu0 %v2129_v58, %s5737_s13 }
 0x336   : > { %2145 = vmatpush.bf16.msra.mxu3 %v2128_v50 }
 0x33a   : > { %2278 = vrot.lane.b32.xlu1 %v2128_v50, %s5736_s4 }
 0x33d   : > { %2280 = vrot.lane.b32.xlu2 %v2129_v58, %s5736_s4 }
 0x345   : > { %2354 = vrot.lane.b32.xlu2 %v2128_v50, %s5737_s13 }
 0x358   : > { %v2164_v7 = vpop.permute.xlu2 %2163 }
 0x359   : > { %v2175_v59 = vsel %vm1207_vm13, %v2164_v7, 0 }
 0x35a   : > { %2183 = vmatpush.bf16.xpose.msrb.mxu0 %v2175_v59 }
 0x360   : > { %v2240_v60 = vpop.permute.xlu2 %2239  ;;  %v2162_v0 = vpop.permute.xlu0 %2161 }
 0x361   : > { %v2251_v1 = vsel %vm1207_vm13, %v2240_v60, 0  ;;  %v2172_v2 = vsel %vm1207_vm13, %v2162_v0, 0 }
 0x362   : > { %2184 = vmatpush.bf16.xpose.msrb.mxu0 %v2172_v2  ;;  %2259 = vmatpush.bf16.xpose.msra.mxu2 %v2251_v1 }
 0x368   : > { %v2238_v3 = vpop.permute.xlu0 %2237 }
 0x369   : > { %v2248_v23 = vsel %vm1207_vm13, %v2238_v3, 0 }
 0x36a   : > { %2260 = vmatpush.bf16.xpose.msra.mxu2 %v2248_v23 }
 0x37f   : > { %v2160_v4 = vpop.permute.xlu2 %2159 }
 0x387   : > { %v2314_v8 = vpop.permute.xlu2 %2313  ;;  %v2234_v9 = vpop.permute.xlu0 %2233 }
 0x388   : > { %v2158_v14 = vpop.permute.xlu1 %2157  ;;  %4241 = vmatmul.msk.bf16.vlgmr.msra.gmra.mxu2 %vm1207_vm13, %v2234_v9  ;;  %v2324_v27 = vsel %vm1207_vm13, %v2314_v8, 0 }
 0x389   : > { %4237 = vmatmul.msk.bf16.vlgmr.msrb.gmra.mxu0 %vm1207_vm13, %v2158_v14 }
 0x38f   : > { %v2312_v17 = vpop.permute.xlu2 %2311 }
 0x390   : > { %v2316_v16 = vpop.permute.xlu1 %2315 }
 0x391   : > { %v2327_v18 = vsel %vm1207_vm13, %v2316_v16, 0 }
 0x392   : > { %2335 = vmatpush.bf16.xpose.msra.mxu0 %v2327_v18 }
 0x397   : > { %v2236_v21 = vpop.permute.xlu0 %2235  ;;  %v2281_v26 = vpop.permute.xlu2 %2280 }
 0x398   : > { %4242 = vmatmul.msk.bf16.gmra.mxu2 %vm1207_vm13, %v2236_v21  ;;  %2296 = vmatpush.bf16.msrb.mxu3 %v2281_v26  ;;  %v2310_v36 = vpop.permute.xlu1 %2309 }
 0x399   : > { %v2104_v30 = vpop.f32.mrf.mxu2  ;;  %4238 = vmatmul.msk.bf16.gmra.mxu0 %vm1207_vm13, %v2160_v4 }
 0x39a   : > { %2336 = vmatpush.bf16.xpose.msra.mxu0 %v2324_v27  ;;  %v2114_v40 = vsel %vm2059_vm14, %v2104_v30, 0.0 }
 0x39f   : > { %v2203_v41 = vpop.permute.xlu0 %2202  ;;  %v2355_v56 = vpop.permute.xlu2 %2354 }
 0x3a1   : > { %v2106_v37 = vpop.f32.mrf.mxu2 }
 0x3a2   : > { %v2115_v46 = vsel %vm2060_vm15, %v2106_v37, 0.0 }
 0x3a3   : > { %v2118_v49 = vpack.c.bf16 %v2115_v46, %v2114_v40 }
 0x3a4   : > { %v2205_v44 = vpop.permute.xlu1 %2204 }
 0x3a5   : > { %4235 = vmatmul.msk.bf16.vlgmr.msra.gmra.mxu3 %vm1207_vm13, %v2118_v49  ;;  %2220 = vmatpush.bf16.msra.mxu1 %v2205_v44 }
 0x3a7   : > { %v2357_v54 = vpop.permute.xlu0 %2356 }
 0x3a9   : > { %v2109_v50 = vpop.f32.mrf.mxu2  ;;  %4245 = vmatmul.msk.bf16.vlgmr.msra.gmra.mxu0 %vm1207_vm13, %v2310_v36  ;;  %2221 = vmatpush.bf16.msra.mxu1 %v2203_v41 }
 0x3aa   : > { %v2116_v58 = vsel %vm2061_vm0, %v2109_v50, 0.0 }
 0x3ac   : > { %v2279_v55 = vpop.permute.xlu1 %2278 }
 0x3ad   : > { %2372 = vmatpush.bf16.msrb.mxu1 %v2357_v54  ;;  %2297 = vmatpush.bf16.msrb.mxu3 %v2279_v55 }
 0x3b1   : > { %v2111_v57 = vpop.f32.mrf.mxu2  ;;  %2373 = vmatpush.bf16.msrb.mxu1 %v2355_v56 }
 0x3b2   : > { %v2117_v7 = vsel %vm2062_vm1, %v2111_v57, 0.0 }
 0x3b3   : > { %v2119_v59 = vpack.c.bf16 %v2117_v7, %v2116_v58  ;;  %v6349_v58 = vpop.f32.mrf.mxu1 }
 0x3b5   : > { %4236 = vmatmul.msk.bf16.gmra.mxu3 %vm1207_vm13, %v2119_v59 }
 0x3b9   : > { %4246 = vmatmul.msk.bf16.gmra.mxu0 %vm1207_vm13, %v2312_v17 }
 0x3bb   : > { %v1954_v28 = vpop.f32.mrf.mxu1 }
 0x3c3   : > { %v1956_v7 = vpop.f32.mrf.mxu1 }
 0x3cb   : > { %v1959_v59 = vpop.f32.mrf.mxu1 }
 0x406   : > { %v2186_v60 = vpop.f32.mrf.mxu0 }
 0x407   : > { %v2196_v2 = vsel %vm2059_vm14, %v2186_v60, 0.0 }
 0x40b   : > { %v2262_v0 = vpop.f32.mrf.mxu2 }
 0x40c   : > { %v2272_v8 = vsel %vm2059_vm14, %v2262_v0, 0.0  ;;  %v1961_v0 = vpop.f32.mrf.mxu1 }
 0x40e   : > { %v2188_v1 = vpop.f32.mrf.mxu0 }
 0x40f   : > { %v2197_v3 = vsel %vm2060_vm15, %v2188_v1, 0.0 }
 0x410   : > { %v2200_v23 = vpack.c.bf16 %v2197_v3, %v2196_v2 }
 0x412   : > { %4239 = vmatmul.msk.bf16.vlgmr.msra.gmra.mxu1 %vm1207_vm13, %v2200_v23 }
 0x413   : > { %v2264_v4 = vpop.f32.mrf.mxu2 }
 0x414   : > { %v2273_v9 = vsel %vm2060_vm15, %v2264_v4, 0.0 }
 0x415   : > { %v2276_v14 = vpack.c.bf16 %v2273_v9, %v2272_v8 }
 0x416   : > { %v2191_v17 = vpop.f32.mrf.mxu0 }
 0x417   : > { %4243 = vmatmul.msk.bf16.vlgmr.msrb.gmra.mxu3 %vm1207_vm13, %v2276_v14  ;;  %v2198_v20 = vsel %vm2061_vm0, %v2191_v17, 0.0 }
 0x41b   : > { %v2267_v16 = vpop.f32.mrf.mxu2 }
 0x41c   : > { %v2274_v30 = vsel %vm2061_vm0, %v2267_v16, 0.0 }
 0x41e   : > { %v2193_v18 = vpop.f32.mrf.mxu0 }
 0x41f   : > { %v2199_v21 = vsel %vm2062_vm1, %v2193_v18, 0.0 }
 0x420   : > { %v2201_v26 = vpack.c.bf16 %v2199_v21, %v2198_v20  ;;  %v4734_v20 = vld [vmem:[#allocation22 + $0x38] sm:$0xff]  ;;  %v4733_v21 = vld [vmem:[#allocation22 + $0x30] sm:$0xff] }
 0x421   : > { %2529 = vmatpush.bf16.msrb.mxu2 %v4734_v20 }
 0x422   : > { %4240 = vmatmul.msk.bf16.gmra.mxu1 %vm1207_vm13, %v2201_v26  ;;  %v5056_v26 = vld [vmem:[%s6909_s17] ss:$0 sm:$0xff] }
 0x423   : > { %v2269_v27 = vpop.f32.mrf.mxu2 }
 0x424   : > { %v2275_v36 = vsel %vm2062_vm1, %v2269_v27, 0.0  ;;  %v1957_v27 = vadd.f32 %v5056_v26, %v1956_v7 }
 0x425   : > { %v2277_v37 = vpack.c.bf16 %v2275_v36, %v2274_v30  ;;  %2530 = vmatpush.bf16.msrb.mxu2 %v4733_v21  ;;  %v4732_v30 = vld [vmem:[#allocation22 + $0x28] sm:$0xff]  ;;  %v1955_v36 = vadd.f32 %v5056_v26, %v1954_v28 }
 0x426   : > { %v2338_v40 = vpop.f32.mrf.mxu0 }
 0x427   : > { %4244 = vmatmul.msk.bf16.gmra.mxu3 %vm1207_vm13, %v2277_v37  ;;  %v2348_v46 = vsel %vm2059_vm14, %v2338_v40, 0.0  ;;  %v4230_v37 = vmul.f32 -1.442695, %v1957_v27  ;;  %v4731_v40 = vld [vmem:[#allocation22 + $0x20] sm:$0xff] }
 0x428   : > { %v6351_v34 = vpop.f32.mrf.mxu3 }
 0x429   : > { %2531 = vmatpush.bf16.msrb.mxu2 %v4732_v30  ;;  %5072 = vpow2.f32 %v4230_v37 }
 0x42d   : > { %2532 = vmatpush.bf16.msrb.mxu2 %v4731_v40  ;;  %v1556_v40 = vmul.f32 %v6232_v12, %v6188_v32 }
 0x42e   : > { %v2340_v41 = vpop.f32.mrf.mxu0 }
 0x42f   : > { %v2349_v49 = vsel %vm2060_vm15, %v2340_v41, 0.0  ;;  %v4229_v41 = vmul.f32 -1.442695, %v1955_v36 }
 0x430   : > { %v2352_v44 = vpack.c.bf16 %v2349_v49, %v2348_v46  ;;  %v6353_v60 = vpop.f32.mrf.mxu3  ;;  %v4730_v46 = vld [vmem:[#allocation22 + $0x18] sm:$0xff]  ;;  %v4729_v49 = vld [vmem:[#allocation22 + $0x10] sm:$0xff] }
 0x431   : > { %5074 = vpow2.f32 %v4229_v41  ;;  %2533 = vmatpush.bf16.msrb.mxu2 %v4730_v46  ;;  %v1240_v41 = vmul.f32 %v6178_v22, %v6190_v33 }
 0x432   : > { %4247 = vmatmul.msk.bf16.vlgmr.msrb.gmra.mxu1 %vm1207_vm13, %v2352_v44  ;;  %v5073_v44 = vpop.eup %5072 }
 0x435   : > { %2534 = vmatpush.bf16.msrb.mxu2 %v4729_v49  ;;  %v1346_v49 = vmul.f32 %v6198_v15, %v6222_v5 }
 0x436   : > { %v2343_v50 = vpop.f32.mrf.mxu0 }
 0x437   : > { %v2350_v55 = vsel %vm2061_vm0, %v2343_v50, 0.0  ;;  %v5075_v50 = vpop.eup %5074 }
 0x438   : > { %v6355_v1 = vpop.f32.mrf.mxu3  ;;  %v6376_v7 = vadd.f32 1.0, %v5075_v50 }
 0x43a   : > { %vm1985_vm8 = vweird.f32 %v6376_v7 }
 0x43e   : > { %v2345_v54 = vpop.f32.mrf.mxu0 }
 0x43f   : > { %v2351_v56 = vsel %vm2062_vm1, %v2345_v54, 0.0  ;;  %v1962_v54 = vadd.f32 %v5056_v26, %v1961_v0  ;;  %v1344_v0 = vmul.f32 %v6198_v15, %v6210_v48  ;;  %v1399_v15 = vmul.f32 %v6196_v35, %v6220_v61 }
 0x440   : > { %v2353_v57 = vpack.c.bf16 %v2351_v56, %v2350_v55  ;;  %v6358_v19 = vpop.f32.mrf.mxu3  ;;  %v6374_v55 = vadd.f32 1.0, %v5073_v44  ;;  %v4728_v56 = vld [vmem:[#allocation22 + $0x8] sm:$0xff]  ;;  %v1609_v44 = vmul.f32 %v6234_v13, %v6243_v38  ;;  %v1452_v61 = vmul.f32 %v6215_v52, %v6247_v24 }
 0x441   : > { %2535 = vmatpush.bf16.msrb.mxu2 %v4728_v56  ;;  %v4232_v28 = vmul.f32 -1.442695, %v1962_v54 }
 0x442   : > { %4248 = vmatmul.msk.bf16.gmra.mxu1 %vm1207_vm13, %v2353_v57  ;;  %v1960_v57 = vadd.f32 %v5056_v26, %v1959_v59  ;;  %5076 = vrcp.f32 %v6374_v55  ;;  %vm2000_vm5 = vweird.f32 %v6374_v55 }
 0x443   : > { %5078 = vrcp.f32 %v6376_v7 }
 0x444   : > { %5080 = vpow2.f32 %v4232_v28 }
 0x48f   : > { %v2223_v51 = vpop.f32.mrf.mxu1 }
 0x490   : > { %2389 = vrot.lane.b32.xlu1 %v2223_v51, %s5737_s13  ;;  %v1238_v51 = vmul.f32 %v6178_v22, %v6186_v31  ;;  %v1397_v31 = vmul.f32 %v6196_v35, %v6204_v42 }
 0x497   : > { %v2225_v53 = vpop.f32.mrf.mxu1 }
 0x498   : > { %2391 = vrot.lane.b32.xlu0 %v2225_v53, %s5737_s13  ;;  %v1291_v53 = vmul.f32 %v6182_v25, %v6192_v29 }
 0x49a   : > { %v2299_v2 = vpop.f32.mrf.mxu3  ;;  %v1295_v59 = vadd.f32 %v1291_v53, %v1238_v51  ;;  %v2004_v51 = vand.u32 2147483647, %v6374_v55 }
 0x49b   : > { %2405 = vrot.lane.b32.xlu2 %v2299_v2, %s5736_s4  ;;  %v4727_v2 = vld [vmem:[#allocation22] sm:$0xff] }
 0x49c   : > { %2536 = vmatpush.bf16.msrb.mxu2 %v4727_v2  ;;  %vm2005_vm10 = vcmp.eq.f32.partialorder %v2004_v51, 8.507059e+37 }
 0x49f   : > { %v2228_v3 = vpop.f32.mrf.mxu1 }
 0x4a2   : > { %v2301_v23 = vpop.f32.mrf.mxu3 }
 0x4a3   : > { %2407 = vrot.lane.b32.xlu1 %v2301_v23, %s5736_s4  ;;  %v6386_v23 = vpop.eup %5076 }
 0x4a4   : > { %v6390_v29 = vpop.eup %5078  ;;  %v1996_v48 = vmul.f32 %v6386_v23, %v6374_v55  ;;  %vm2001_vm4 = vweird.f32 %v6386_v23 }
 0x4a5   : > { %v1981_v42 = vmul.f32 %v6390_v29, %v6376_v7  ;;  %vm1986_vm6 = vweird.f32 %v6390_v29  ;;  %vm6439_vm7 = vmor %vm2000_vm5, %vm2001_vm4 }
 0x4a6   : > { %v1997_v27 = vsub.f32 1.0, %v1996_v48  ;;  %vm6455_vm9 = vmor %vm1985_vm8, %vm1986_vm6 }
 0x4a7   : > { %v2230_v4 = vpop.f32.mrf.mxu1  ;;  %v1982_v36 = vsub.f32 1.0, %v1981_v42 }
 0x4a8   : > { %v1998_v54 = vmul.f32 %v6386_v23, %v1997_v27 }
 0x4a9   : > { %v1983_v32 = vmul.f32 %v6390_v29, %v1982_v36 }
 0x4aa   : > { %v2304_v8 = vpop.f32.mrf.mxu3 }
 0x4ab   : > { %2393 = vrot.lane.b32.xlu1 %v2228_v3, %s5737_s13  ;;  %v4231_v3 = vmul.f32 -1.442695, %v1960_v57  ;;  %v1984_v53 = vadd.f32 %v6390_v29, %v1983_v32 }
 0x4ad   : > { %5082 = vpow2.f32 %v4231_v3 }
 0x4af   : > { %v2375_v9 = vpop.f32.mrf.mxu1 }
 0x4b0   : > { %2421 = vrot.lane.b32.xlu0 %v2375_v9, %s5735_s29 }
 0x4b2   : > { %v2306_v14 = vpop.f32.mrf.mxu3 }
 0x4b3   : > { %2411 = vrot.lane.b32.xlu1 %v2306_v14, %s5736_s4  ;;  %v5081_v14 = vpop.eup %5080 }
 0x4b4   : > { %v5083_v20 = vpop.eup %5082  ;;  %v6400_v26 = vadd.f32 1.0, %v5081_v14 }
 0x4b6   : > { %5084 = vrcp.f32 %v6400_v26  ;;  %vm2030_vm15 = vweird.f32 %v6400_v26 }
 0x4b7   : > { %v2377_v17 = vpop.f32.mrf.mxu1 }
 0x4b8   : > { %2395 = vrot.lane.b32.xlu0 %v2230_v4, %s5737_s13  ;;  %2423 = vrot.lane.b32.xlu2 %v2377_v17, %s5735_s29  ;;  %v1348_v4 = vadd.f32 %v1344_v0, %v1295_v59 }
 0x4bc   : > { %v6425_v5 = vpop.eup %5084 }
 0x4bd   : > { %v2026_v0 = vmul.f32 %v6425_v5, %v6400_v26  ;;  %vm2031_vm12 = vweird.f32 %v6425_v5 }
 0x4be   : > { %vm2032_vm0 = vmor %vm2030_vm15, %vm2031_vm12 }
 0x4bf   : > { %v2380_v16 = vpop.f32.mrf.mxu1  ;;  %v2027_v42 = vsub.f32 1.0, %v2026_v0 }
 0x4c0   : > { %2409 = vrot.lane.b32.xlu2 %v2304_v8, %s5736_s4  ;;  %2425 = vrot.lane.b32.xlu0 %v2380_v16, %s5735_s29  ;;  %v1450_v8 = vmul.f32 %v6215_v52, %v6224_v6  ;;  %v1401_v16 = vadd.f32 %v1397_v31, %v1348_v4  ;;  %v6402_v6 = vadd.f32 1.0, %v5083_v20  ;;  %v1989_v52 = vand.u32 2147483647, %v6376_v7  ;;  %s3731_s4 = sshll.u32 %s6794_s10, 4  ;;  %s3732_s4 = int_to_ptr.vmem [resolvable:$true] %s3731_s4 }
 0x4c2   : > { %v1454_v21 = vadd.f32 %v1450_v8, %v1401_v16  ;;  %5086 = vrcp.f32 %v6402_v6  ;;  %vm1990_vm11 = vcmp.eq.f32.partialorder %v1989_v52, 8.507059e+37  ;;  %vm2015_vm1 = vweird.f32 %v6402_v6 }
 0x4c7   : > { %v2382_v18 = vpop.f32.mrf.mxu1 }
 0x4c8   : > { %2427 = vrot.lane.b32.xlu2 %v2382_v18, %s5735_s29  ;;  %v1503_v18 = vmul.f32 %v6230_v11, %v6249_v43  ;;  %v1293_v43 = vmul.f32 %v6182_v25, %v6208_v47  ;;  %v1999_v47 = vadd.f32 %v6386_v23, %v1998_v54  ;;  %v6433_v35 = vpop.eup %5086  ;;  %s6918_s29 = sld [smem:[#allocation54_spill]] }
 0x4c9   : > { %v2011_v14 = vmul.f32 %v6433_v35, %v6402_v6  ;;  %vm2016_vm14 = vweird.f32 %v6433_v35 }
 0x4ca   : > { %v1507_v30 = vadd.f32 %v1503_v18, %v1454_v21  ;;  %v1297_v33 = vadd.f32 %v1293_v43, %v1240_v41  ;;  %v2003_v59 = vsel %vm6439_vm7, %v6386_v23, %v1999_v47  ;;  %v2028_v43 = vmul.f32 %v6425_v5, %v2027_v42  ;;  %vm2017_vm4 = vmor %vm2015_vm1, %vm2016_vm14 }
 0x4cb   : > { %v2019_v47 = vand.u32 2147483647, %v6402_v6 }
 0x4cc   : > { %v1560_v56 = vadd.f32 %v1556_v40, %v1507_v30  ;;  %v1350_v38 = vadd.f32 %v1346_v49, %v1297_v33 }
 0x4ce   : > { %v1613_v57 = vadd.f32 %v1609_v44, %v1560_v56  ;;  %v1403_v24 = vadd.f32 %v1399_v15, %v1350_v38  ;;  %v2021_v15 = vand.u32 2147483648, %v6402_v6 }
 0x4f5   : > { %v2406_v17 = vpop.permute.xlu2 %2405 }
 0x502   : > { %v2390_v9 = vpop.permute.xlu1 %2389 }
 0x503   : > { %v2433_v2 = vsel %vm1207_vm13, %v6351_v34, %v2390_v9  ;;  %v1505_v34 = vmul.f32 %v6230_v11, %v6262_v63  ;;  %v1988_v11 = vsel %vm6455_vm9, %v6390_v29, %v1984_v53  ;;  %v1456_v63 = vadd.f32 %v1452_v61, %v1403_v24  ;;  %v5128_v24 = vld [vmem:[%s6076_s24] sm:$0xff]  ;;  %v5129_v9 = vld [vmem:[%s6076_s24 + $0x8] sm:$0xff] }
 0x504   : > { %v2438_v48 = vsel %vm2437_vm2, %v2433_v2, %v2406_v17  ;;  %v1558_v17 = vmul.f32 %v6232_v12, %v6206_v45  ;;  %v2029_v12 = vadd.f32 %v6425_v5, %v2028_v43 }
 0x505   : > { %v1509_v30 = vadd.f32 %v1505_v34, %v1456_v63 }
 0x506   : > { %v2033_v38 = vsel %vm2032_vm0, %v6425_v5, %v2029_v12  ;;  %v4403_v12 = vld [vmem:[#allocation23 + $0xe8] sm:$0xf] }
 0x507   : > { %v1562_v49 = vadd.f32 %v1558_v17, %v1509_v30 }
 0x50a   : > { %v2392_v37 = vpop.permute.xlu0 %2391 }
 0x50b   : > { %v2434_v22 = vsel %vm1207_vm13, %v6353_v60, %v2392_v37  ;;  %v2006_v60 = vand.u32 2147483648, %v6374_v55  ;;  %v1991_v55 = vand.u32 2147483648, %v6376_v7  ;;  %v2012_v37 = vsub.f32 1.0, %v2011_v14 }
 0x50d   : > { %v2007_v4 = vor.u32 1.1754944e-38, %v2006_v60  ;;  %v1992_v18 = vor.u32 1.1754944e-38, %v1991_v55  ;;  %v2013_v54 = vmul.f32 %v6433_v35, %v2012_v37 }
 0x50f   : > { %v2008_v16 = vsel %vm2005_vm10, %v2007_v4, %v2003_v59  ;;  %v1993_v36 = vsel %vm1990_vm11, %v1992_v18, %v1988_v11  ;;  %v2014_v32 = vadd.f32 %v6433_v35, %v2013_v54  ;;  %v4395_v54 = vld [vmem:[#allocation23 + $0xe0] sm:$0xf] }
 0x512   : > { %v2424_v50 = vpop.permute.xlu2 %2423 }
 0x515   : > { %v2408_v46 = vpop.permute.xlu1 %2407 }
 0x516   : > { %v2439_v25 = vsel %vm2437_vm2, %v2434_v22, %v2408_v46  ;;  %v1611_v46 = vmul.f32 %v6234_v13, %v6349_v58  ;;  %v2036_v58 = vand.u32 2147483648, %v6400_v26 }
 0x517   : > { %v2444_v28 = vsel %vm2442_vm3, %v2439_v25, %v2424_v50 }
 0x518   : > { %v2448_v31 = vsub.f32 %v2444_v28, %v1613_v57  ;;  %v1615_v13 = vadd.f32 %v1611_v46, %v1562_v49  ;;  %v2037_v60 = vor.u32 1.1754944e-38, %v2036_v58 }
 0x51a   : > { %v2410_v23 = vpop.permute.xlu2 %2409  ;;  %v2452_v21 = vmul.f32 %v2448_v31, %v2008_v16  ;;  %v5131_v16 = vld [vmem:[%s6076_s24 + $0x18] sm:$0xff] }
 0x51c   : > { %v2456_v41 = vadd.f32 %v2452_v21, %v1613_v57 }
 0x51d   : > { %v2394_v8 = vpop.permute.xlu1 %2393 }
 0x51e   : > { %v2435_v33 = vsel %vm1207_vm13, %v6355_v1, %v2394_v8  ;;  %v2022_v1 = vor.u32 1.1754944e-38, %v2021_v15  ;;  %v4379_v15 = vld [vmem:[#allocation23 + $0xc0] sm:$0xf] }
 0x51f   : > { %v2440_v28 = vsel %vm2437_vm2, %v2435_v33, %v2410_v23 }
 0x522   : > { %v2422_v7 = vpop.permute.xlu0 %2421  ;;  %v2428_v25 = vpop.permute.xlu2 %2427 }
 0x523   : > { %v2443_v20 = vsel %vm2442_vm3, %v2438_v48, %v2422_v7  ;;  %v5130_v48 = vld [vmem:[%s6076_s24 + $0x10] sm:$0xff]  ;;  %s6917_s24 = sld [smem:[#allocation53_spill]] }
 0x524   : > { %v2447_v27 = vsub.f32 %v2443_v20, %v6245_v39 }
 0x525   : > { %v2412_v56 = vpop.permute.xlu1 %2411 }
 0x526   : > { %v2451_v40 = vmul.f32 %v2447_v27, %v1993_v36 }
 0x528   : > { %v2455_v29 = vadd.f32 %v2451_v40, %v6245_v39 }
 0x52a   : > { %v2396_v44 = vpop.permute.xlu0 %2395  ;;  %v2459_v50 = vpack.c.bf16 %v2456_v41, %v2455_v29 }
 0x52b   : > { %v2436_v22 = vsel %vm1207_vm13, %v6358_v19, %v2396_v44  ;;  %v2034_v19 = vand.u32 2147483647, %v6400_v26  ;;  %v2018_v26 = vsel %vm2017_vm4, %v6433_v35, %v2014_v32  ;;  %vm2020_vm13 = vcmp.eq.f32.partialorder %v2019_v47, 8.507059e+37  ;;  %v5058_v35 = vld [vmem:[%s6914_s19] ss:$0 sm:$0xff] }
 0x52c   : > { %v2441_v45 = vsel %vm2437_vm2, %v2436_v22, %v2412_v56  ;;  %2537 = vmatmul.bf16.vlgmr.msrb.gmra.mxu2 %v2459_v50  ;;  %v2023_v5 = vsel %vm2020_vm13, %v2022_v1, %v2018_v26  ;;  %v4765_v56 = vld [vmem:[#allocation23 + $0xec] sm:$0xf0]  ;;  %v4763_v22 = vld [vmem:[#allocation23 + $0xe4] sm:$0xf]  ;;  %v4764_v32 = vld [vmem:[#allocation23 + $0xec] sm:$0xf] }
 0x52d   : > { %v2446_v39 = vsel %vm2442_vm3, %v2441_v45, %v2428_v25  ;;  %vm2035_vm5 = vcmp.eq.f32.partialorder %v2034_v19, 8.507059e+37  ;;  %v4396_v25 = vor.u32 %v4765_v56, %v4395_v54  ;;  %v4397_v45 = vld [vmem:[#allocation23 + $0xf0] sm:$0xf0]  ;;  %v4405_v19 = vld [vmem:[#allocation23 + $0xf8] sm:$0xf0] }
 0x52e   : > { %v2450_v57 = vsub.f32 %v2446_v39, %v1615_v13  ;;  %v2038_v61 = vsel %vm2035_vm5, %v2037_v60, %v2033_v38  ;;  %v4766_v39 = vld [vmem:[#allocation23 + $0xf4] sm:$0xf0]  ;;  %v4408_v33 = vor.u32 %v4764_v32, %v4405_v19  ;;  %v4761_v47 = vld [vmem:[#allocation23 + $0xcc] sm:$0xf0]  ;;  %v4759_v38 = vld [vmem:[#allocation23 + $0xc4] sm:$0xf] }
 0x52f   : > { %v4404_v58 = vor.u32 %v4766_v39, %v4403_v12  ;;  %2852 = vmatpush.bf16.msra.mxu3 %v4396_v25  ;;  %v4381_v60 = vld [vmem:[#allocation23 + $0xd0] sm:$0xf0]  ;;  %v4341_v25 = vld [vmem:[#allocation23 + $0x78] sm:$0xf0]  ;;  %v4315_v12 = vld [vmem:[#allocation23 + $0x40] sm:$0xf] }
 0x530   : > { %v2454_v6 = vmul.f32 %v2450_v57, %v2038_v61  ;;  %2909 = vmatpush.bf16.msra.mxu2 %v4408_v33  ;;  %v4380_v57 = vor.u32 %v4761_v47, %v4379_v15  ;;  %v4384_v26 = vor.u32 %v4759_v38, %v4381_v60  ;;  %v4389_v61 = vld [vmem:[#allocation23 + $0xd8] sm:$0xf0]  ;;  %v4745_v39 = vld [vmem:[#allocation23 + $0x4c] sm:$0xf0]  ;;  %v4317_v32 = vld [vmem:[#allocation23 + $0x50] sm:$0xf0] }
 0x531   : > { %2890 = vmatpush.bf16.msra.mxu1 %v4404_v58  ;;  %v4316_v58 = vor.u32 %v4745_v39, %v4315_v12  ;;  %v4323_v19 = vld [vmem:[#allocation23 + $0x48] sm:$0xf]  ;;  %v4746_v33 = vld [vmem:[#allocation23 + $0x54] sm:$0xf0]  ;;  %v4744_v38 = vld [vmem:[#allocation23 + $0x4c] sm:$0xf] }
 0x532   : > { %v2426_v51 = vpop.permute.xlu0 %2425  ;;  %v2458_v0 = vadd.f32 %v2454_v6, %v1615_v13  ;;  %v4400_v13 = vor.u32 %v4763_v22, %v4397_v45  ;;  %v4363_v6 = vld [vmem:[#allocation23 + $0xa0] sm:$0xf]  ;;  %v4748_v22 = vld [vmem:[#allocation23 + $0x6c] sm:$0xf]  ;;  %v4324_v47 = vor.u32 %v4746_v33, %v4323_v19  ;;  %v4791_v12 = vld [vmem:[#allocation25 + $0xc4] sm:$0xf] }
 0x533   : > { %v2445_v53 = vsel %vm2442_vm3, %v2440_v28, %v2426_v51  ;;  %v4387_v28 = vld [vmem:[#allocation23 + $0xc8] sm:$0xf]  ;;  %v4762_v51 = vld [vmem:[#allocation23 + $0xd4] sm:$0xf0]  ;;  %2853 = vmatpush.bf16.msra.mxu3 %v4380_v57  ;;  %v4344_v45 = vor.u32 %v4748_v22, %v4341_v25  ;;  %v4325_v57 = vld [vmem:[#allocation23 + $0x58] sm:$0xf0] }
 0x534   : > { %v2449_v2 = vsub.f32 %v2445_v53, %v6260_v62  ;;  %2871 = vmatpush.bf16.msrb.mxu0 %v4400_v13  ;;  %v4388_v1 = vor.u32 %v4762_v51, %v4387_v28  ;;  %v4760_v53 = vld [vmem:[#allocation23 + $0xcc] sm:$0xf]  ;;  %v4743_v13 = vld [vmem:[#allocation23 + $0x44] sm:$0xf]  ;;  %v4328_v60 = vor.u32 %v4744_v38, %v4325_v57  ;;  %v4299_v28 = vld [vmem:[#allocation23 + $0x20] sm:$0xf] }
 0x535   : > { %v4320_v15 = vor.u32 %v4743_v13, %v4317_v32  ;;  %v4741_v51 = vld [vmem:[#allocation23 + $0x2c] sm:$0xf0]  ;;  %v4507_v25 = vld [vmem:[#allocation25 + $0xc0] sm:$0xf]  ;;  %v4509_v32 = vld [vmem:[#allocation25 + $0xd0] sm:$0xf0] }
 0x536   : > { %v2453_v3 = vmul.f32 %v2449_v2, %v2023_v5  ;;  %v4392_v2 = vor.u32 %v4760_v53, %v4389_v61  ;;  %2891 = vmatpush.bf16.msra.mxu1 %v4388_v1  ;;  %v4757_v5 = vld [vmem:[#allocation23 + $0xac] sm:$0xf0]  ;;  %v4300_v1 = vor.u32 %v4741_v51, %v4299_v28  ;;  %v4301_v53 = vld [vmem:[#allocation23 + $0x30] sm:$0xf0]  ;;  %v4307_v61 = vld [vmem:[#allocation23 + $0x28] sm:$0xf] }
 0x537   : > { %v4515_v19 = vld [vmem:[#allocation25 + $0xc8] sm:$0xf]  ;;  %v4792_v38 = vld [vmem:[#allocation25 + $0xcc] sm:$0xf]  ;;  %v4517_v57 = vld [vmem:[#allocation25 + $0xd8] sm:$0xf0] }
 0x538   : > { %v2457_v55 = vadd.f32 %v2453_v3, %v6260_v62  ;;  %2872 = vmatpush.bf16.msrb.mxu0 %v4384_v26  ;;  %v4755_v3 = vld [vmem:[#allocation23 + $0xa4] sm:$0xf]  ;;  %2910 = vmatpush.bf16.msra.mxu2 %v4392_v2  ;;  %v4742_v2 = vld [vmem:[#allocation23 + $0x34] sm:$0xf0]  ;;  %v4520_v28 = vor.u32 %v4792_v38, %v4517_v57  ;;  %v6576_v38 = vld [vmem:[%s6917_s24] ss:$0 sm:$0xff] }
 0x539   : > { %v4739_v26 = vld [vmem:[#allocation23 + $0x24] sm:$0xf] }
 0x53a   : > { %v2460_v59 = vpack.c.bf16 %v2458_v0, %v2457_v55  ;;  %v4364_v55 = vor.u32 %v4757_v5, %v4363_v6  ;;  %v4365_v0 = vld [vmem:[#allocation23 + $0xb0] sm:$0xf0]  ;;  %v4304_v6 = vor.u32 %v4739_v26, %v4301_v53  ;;  %v4308_v5 = vor.u32 %v4742_v2, %v4307_v61  ;;  %v4491_v26 = vld [vmem:[#allocation25 + $0xa0] sm:$0xf]  ;;  %v4787_v53 = vld [vmem:[#allocation25 + $0xa4] sm:$0xf] }
 0x53b   : > { %v4493_v2 = vld [vmem:[#allocation25 + $0xb0] sm:$0xf0] }
 0x53c   : > { %2542 = vmatmul.bf16.gmra.mxu2 %v2460_v59  ;;  %v4371_v59 = vld [vmem:[#allocation23 + $0xa8] sm:$0xf]  ;;  %2854 = vmatpush.bf16.msra.mxu3 %v4364_v55  ;;  %v4309_v55 = vld [vmem:[#allocation23 + $0x38] sm:$0xf0] }
 0x5af   : > { %v2538_v31 = vpop.f32.mrf.mxu2 }
 0x5b0   : > { %v2539_v52 = vadd.f32 %v5058_v35, %v2538_v31  ;;  %v4368_v31 = vor.u32 %v4755_v3, %v4365_v0  ;;  %v4740_v3 = vld [vmem:[#allocation23 + $0x2c] sm:$0xf] }
 0x5b2   : > { %v6500_v34 = vadd.f32 %v5128_v24, %v2539_v52  ;;  %v4756_v24 = vld [vmem:[#allocation23 + $0xac] sm:$0xf]  ;;  %2873 = vmatpush.bf16.msrb.mxu0 %v4368_v31  ;;  %v4283_v31 = vld [vmem:[#allocation23] sm:$0xf] }
 0x5b4   : > { %2554 = vadd.xlane.f32.xlu1 %v6500_v34 }
 0x5b7   : > { %v2540_v4 = vpop.f32.mrf.mxu2 }
 0x5b8   : > { %v2541_v8 = vadd.f32 %v5058_v35, %v2540_v4  ;;  %v4373_v4 = vld [vmem:[#allocation23 + $0xb8] sm:$0xf0] }
 0x5ba   : > { %v6504_v62 = vadd.f32 %v5129_v9, %v2541_v8  ;;  %v4376_v8 = vor.u32 %v4756_v24, %v4373_v4  ;;  %v4347_v9 = vld [vmem:[#allocation23 + $0x80] sm:$0xf]  ;;  %v4735_v24 = vld [vmem:[#allocation23 + $0x4] sm:$0xf] }
 0x5bc   : > { %2556 = vadd.xlane.f32.xlu0 %v6504_v62  ;;  %2911 = vmatpush.bf16.msra.mxu2 %v4376_v8  ;;  %v4285_v8 = vld [vmem:[#allocation23 + $0x10] sm:$0xf0] }
 0x5bf   : > { %v2543_v14 = vpop.f32.mrf.mxu2 }
 0x5c0   : > { %v2544_v23 = vadd.f32 %v5058_v35, %v2543_v14  ;;  %v4753_v14 = vld [vmem:[#allocation23 + $0x8c] sm:$0xf0] }
 0x5c2   : > { %v6508_v7 = vadd.f32 %v5130_v48, %v2544_v23  ;;  %v4751_v23 = vld [vmem:[#allocation23 + $0x84] sm:$0xf]  ;;  %v4348_v48 = vor.u32 %v4753_v14, %v4347_v9  ;;  %v4291_v9 = vld [vmem:[#allocation23 + $0x8] sm:$0xf]  ;;  %v4738_v14 = vld [vmem:[#allocation23 + $0x14] sm:$0xf0] }
 0x5c4   : > { %2558 = vadd.xlane.f32.xlu2 %v6508_v7  ;;  %2855 = vmatpush.bf16.msra.mxu3 %v4348_v48  ;;  %v4288_v48 = vor.u32 %v4735_v24, %v4285_v8  ;;  %v4475_v8 = vld [vmem:[#allocation25 + $0x80] sm:$0xf] }
 0x5c7   : > { %v2545_v11 = vpop.f32.mrf.mxu2 }
 0x5c8   : > { %v2546_v63 = vadd.f32 %v5058_v35, %v2545_v11  ;;  %v4758_v35 = vld [vmem:[#allocation23 + $0xb4] sm:$0xf0]  ;;  %v4349_v11 = vld [vmem:[#allocation23 + $0x90] sm:$0xf0] }
 0x5c9   : > { %v4372_v52 = vor.u32 %v4758_v35, %v4371_v59  ;;  %v4312_v59 = vor.u32 %v4740_v3, %v4309_v55 }
 0x5ca   : > { %v6512_v18 = vadd.f32 %v5131_v16, %v2546_v63  ;;  %v4355_v63 = vld [vmem:[#allocation23 + $0x88] sm:$0xf]  ;;  %v4754_v16 = vld [vmem:[#allocation23 + $0x94] sm:$0xf0] }
 0x5cb   : > { %2892 = vmatpush.bf16.msra.mxu1 %v4372_v52  ;;  %v4737_v52 = vld [vmem:[#allocation23 + $0xc] sm:$0xf0] }
 0x5cc   : > { %2560 = vadd.xlane.f32.xlu1 %v6512_v18  ;;  %v4284_v4 = vor.u32 %v4737_v52, %v4283_v31  ;;  %v4501_v31 = vld [vmem:[#allocation25 + $0xb8] sm:$0xf0] }
 0x627   : > { %v2555_v20 = vpop.xlane.xlu1 %2554 }
 0x628   : > { %v2562_v42 = vmul.f32 %v2555_v20, %v6118_v10  ;;  %v4352_v20 = vor.u32 %v4751_v23, %v4349_v11  ;;  %v4292_v11 = vor.u32 %v4738_v14, %v4291_v9  ;;  %v4785_v9 = vld [vmem:[#allocation25 + $0x8c] sm:$0xf0] }
 0x62a   : > { %v6517_v21 = vsub.f32 %v6500_v34, %v2562_v42  ;;  %v4356_v42 = vor.u32 %v4754_v16, %v4355_v63  ;;  %2874 = vmatpush.bf16.msrb.mxu0 %v4352_v20  ;;  %v4736_v63 = vld [vmem:[#allocation23 + $0xc] sm:$0xf]  ;;  %v4293_v16 = vld [vmem:[#allocation23 + $0x18] sm:$0xf0] }
 0x62b   : > { %v4296_v20 = vor.u32 %v4736_v63, %v4293_v16  ;;  %v4783_v63 = vld [vmem:[#allocation25 + $0x84] sm:$0xf]  ;;  %v4477_v16 = vld [vmem:[#allocation25 + $0x90] sm:$0xf0] }
 0x62c   : > { %v2570_v27 = vmul.f32 %v6517_v21, %v6517_v21  ;;  %2893 = vmatpush.bf16.msra.mxu1 %v4356_v42  ;;  %v4523_v42 = vld [vmem:[#allocation25 + $0xe0] sm:$0xf] }
 0x62e   : > { %2574 = vadd.xlane.f32.xlu0 %v2570_v27  ;;  %v4752_v27 = vld [vmem:[#allocation23 + $0x8c] sm:$0xf] }
 0x62f   : > { %v2557_v30 = vpop.xlane.xlu0 %2556 }
 0x630   : > { %v2563_v36 = vmul.f32 %v2557_v30, %v6118_v10  ;;  %v4357_v30 = vld [vmem:[#allocation23 + $0x98] sm:$0xf0] }
 0x632   : > { %v6523_v37 = vsub.f32 %v6504_v62, %v2563_v36  ;;  %v4360_v36 = vor.u32 %v4752_v27, %v4357_v30  ;;  %v4797_v27 = vld [vmem:[#allocation25 + $0xec] sm:$0xf0]  ;;  %v4795_v30 = vld [vmem:[#allocation25 + $0xe4] sm:$0xf] }
 0x634   : > { %v2571_v40 = vmul.f32 %v6523_v37, %v6523_v37  ;;  %2912 = vmatpush.bf16.msra.mxu2 %v4360_v36  ;;  %v4524_v36 = vor.u32 %v4797_v27, %v4523_v42  ;;  %v4480_v27 = vor.u32 %v4783_v63, %v4477_v16 }
 0x636   : > { %2576 = vadd.xlane.f32.xlu2 %v2571_v40  ;;  %v4331_v40 = vld [vmem:[#allocation23 + $0x60] sm:$0xf] }
 0x637   : > { %v2559_v17 = vpop.xlane.xlu2 %2558 }
 0x638   : > { %v2564_v41 = vmul.f32 %v2559_v17, %v6118_v10  ;;  %v4749_v17 = vld [vmem:[#allocation23 + $0x6c] sm:$0xf0]  ;;  %2913 = vmatpush.bf16.msra.mxu2 %v4344_v45 }
 0x639   : > { %v4793_v45 = vld [vmem:[#allocation25 + $0xcc] sm:$0xf0] }
 0x63a   : > { %v6529_v29 = vsub.f32 %v6508_v7, %v2564_v41  ;;  %v4747_v41 = vld [vmem:[#allocation23 + $0x64] sm:$0xf] }
 0x63c   : > { %v2572_v43 = vmul.f32 %v6529_v29, %v6529_v29  ;;  %2914 = vmatpush.bf16.msra.mxu2 %v4328_v60 }
 0x63e   : > { %2578 = vadd.xlane.f32.xlu1 %v2572_v43  ;;  %v4332_v43 = vor.u32 %v4749_v17, %v4331_v40  ;;  %v4525_v40 = vld [vmem:[#allocation25 + $0xf0] sm:$0xf0]  ;;  %v4531_v17 = vld [vmem:[#allocation25 + $0xe8] sm:$0xf] }
 0x63f   : > { %v2561_v46 = vpop.xlane.xlu1 %2560 }
 0x640   : > { %v2565_v49 = vmul.f32 %v2561_v46, %v6118_v10  ;;  %v4333_v46 = vld [vmem:[#allocation23 + $0x70] sm:$0xf0]  ;;  %2856 = vmatpush.bf16.msra.mxu3 %v4332_v43  ;;  %2915 = vmatpush.bf16.msra.mxu2 %v4312_v59 }
 0x641   : > { %v4336_v54 = vor.u32 %v4747_v41, %v4333_v46  ;;  %v4798_v41 = vld [vmem:[#allocation25 + $0xf4] sm:$0xf0]  ;;  %v4528_v46 = vor.u32 %v4795_v30, %v4525_v40  ;;  %v4483_v30 = vld [vmem:[#allocation25 + $0x88] sm:$0xf]  ;;  %v4784_v40 = vld [vmem:[#allocation25 + $0x8c] sm:$0xf] }
 0x642   : > { %v6535_v44 = vsub.f32 %v6512_v18, %v2565_v49  ;;  %v4339_v49 = vld [vmem:[#allocation23 + $0x68] sm:$0xf] }
 0x643   : > { %2875 = vmatpush.bf16.msrb.mxu0 %v4336_v54  ;;  %v4533_v54 = vld [vmem:[#allocation25 + $0xf8] sm:$0xf0] }
 0x644   : > { %v2573_v50 = vmul.f32 %v6535_v44, %v6535_v44  ;;  %2857 = vmatpush.bf16.msra.mxu3 %v4316_v58  ;;  %2916 = vmatpush.bf16.msra.mxu2 %v4296_v20  ;;  %v4508_v58 = vor.u32 %v4793_v45, %v4507_v25  ;;  %v4467_v25 = vld [vmem:[#allocation25 + $0x68] sm:$0xf]  ;;  %v4782_v45 = vld [vmem:[#allocation25 + $0x74] sm:$0xf0] }
 0x646   : > { %2580 = vadd.xlane.f32.xlu0 %v2573_v50  ;;  %v4750_v50 = vld [vmem:[#allocation23 + $0x74] sm:$0xf0] }
 0x647   : > { %v4340_v56 = vor.u32 %v4750_v50, %v4339_v49  ;;  %2876 = vmatpush.bf16.msrb.mxu0 %v4320_v15  ;;  %v4532_v49 = vor.u32 %v4798_v41, %v4531_v17  ;;  %v4796_v50 = vld [vmem:[#allocation25 + $0xec] sm:$0xf]  ;;  %v4512_v15 = vor.u32 %v4791_v12, %v4509_v32  ;;  %v4437_v17 = vld [vmem:[#allocation25 + $0x38] sm:$0xf0] }
 0x648   : > { %2858 = vmatpush.bf16.msra.mxu3 %v4300_v1  ;;  %v4536_v22 = vor.u32 %v4796_v50, %v4533_v54  ;;  %v4789_v1 = vld [vmem:[#allocation25 + $0xac] sm:$0xf0]  ;;  %v4779_v54 = vld [vmem:[#allocation25 + $0x64] sm:$0xf] }
 0x649   : > { %2894 = vmatpush.bf16.msra.mxu1 %v4340_v56  ;;  %v4492_v61 = vor.u32 %v4789_v1, %v4491_v26  ;;  %v4781_v50 = vld [vmem:[#allocation25 + $0x6c] sm:$0xf0]  ;;  %v4775_v26 = vld [vmem:[#allocation25 + $0x44] sm:$0xf] }
 0x64a   : > { %3187 = vmatpush.bf16.msrb.mxu2 %v4536_v22  ;;  %v4461_v22 = vld [vmem:[#allocation25 + $0x70] sm:$0xf0] }
 0x64b   : > { %2877 = vmatpush.bf16.msrb.mxu0 %v4304_v6  ;;  %v4499_v6 = vld [vmem:[#allocation25 + $0xa8] sm:$0xf] }
 0x64c   : > { %2859 = vmatpush.bf16.msra.mxu3 %v4284_v4 }
 0x64d   : > { %2895 = vmatpush.bf16.msra.mxu1 %v4324_v47  ;;  %v4794_v47 = vld [vmem:[#allocation25 + $0xd4] sm:$0xf0] }
 0x64e   : > { %v4516_v60 = vor.u32 %v4794_v47, %v4515_v19  ;;  %3188 = vmatpush.bf16.msrb.mxu2 %v4520_v28  ;;  %v4464_v19 = vor.u32 %v4779_v54, %v4461_v22  ;;  %v4469_v47 = vld [vmem:[#allocation25 + $0x78] sm:$0xf0]  ;;  %v4443_v28 = vld [vmem:[#allocation25 + $0x40] sm:$0xf]  ;;  %v4770_v22 = vld [vmem:[#allocation25 + $0x14] sm:$0xf0] }
 0x64f   : > { %2878 = vmatpush.bf16.msrb.mxu0 %v4288_v48 }
 0x650   : > { %3130 = vmatpush.bf16.msrb.mxu3 %v4524_v36  ;;  %v4786_v36 = vld [vmem:[#allocation25 + $0x94] sm:$0xf0] }
 0x651   : > { %2896 = vmatpush.bf16.msra.mxu1 %v4308_v5  ;;  %v4790_v5 = vld [vmem:[#allocation25 + $0xb4] sm:$0xf0]  ;;  %v4484_v41 = vor.u32 %v4786_v36, %v4483_v30 }
 0x652   : > { %v4500_v59 = vor.u32 %v4790_v5, %v4499_v6 }
 0x653   : > { %3149 = vmatpush.bf16.msra.mxu0 %v4528_v46 }
 0x654   : > { %3131 = vmatpush.bf16.msrb.mxu3 %v4508_v58 }
 0x655   : > { %2897 = vmatpush.bf16.msra.mxu1 %v4292_v11  ;;  %v4476_v11 = vor.u32 %v4785_v9, %v4475_v8  ;;  %v4771_v8 = vld [vmem:[#allocation25 + $0x24] sm:$0xf]  ;;  %v4429_v9 = vld [vmem:[#allocation25 + $0x30] sm:$0xf0] }
 0x656   : > { %v4432_v16 = vor.u32 %v4771_v8, %v4429_v9  ;;  %v4804_v9 = vld [vmem:[#allocation26 + $0x28] sm:$0xff] }
 0x657   : > { %3150 = vmatpush.bf16.msra.mxu0 %v4512_v15  ;;  %v4780_v15 = vld [vmem:[#allocation25 + $0x6c] sm:$0xf] }
 0x658   : > { %3132 = vmatpush.bf16.msrb.mxu3 %v4492_v61  ;;  %v4451_v61 = vld [vmem:[#allocation25 + $0x48] sm:$0xf] }
 0x659   : > { %3168 = vmatpush.bf16.msrb.mxu1 %v4532_v49  ;;  %v4459_v49 = vld [vmem:[#allocation25 + $0x60] sm:$0xf] }
 0x65c   : > { %3133 = vmatpush.bf16.msrb.mxu3 %v4476_v11 }
 0x65d   : > { %3169 = vmatpush.bf16.msrb.mxu1 %v4516_v60  ;;  %v4472_v60 = vor.u32 %v4780_v15, %v4469_v47 }
 0x661   : > { %3170 = vmatpush.bf16.msrb.mxu1 %v4500_v59 }
 0x665   : > { %3171 = vmatpush.bf16.msrb.mxu1 %v4484_v41  ;;  %v4411_v41 = vld [vmem:[#allocation25] sm:$0xf] }
 0x6a1   : > { %v2575_v0 = vpop.xlane.xlu0 %2574 }
 0x6a2   : > { %v2582_v35 = vmul.f32 %v2575_v0, %v6118_v10  ;;  %v4496_v0 = vor.u32 %v4787_v53, %v4493_v2  ;;  %v4445_v53 = vld [vmem:[#allocation25 + $0x50] sm:$0xf0] }
 0x6a4   : > { %v6540_v23 = vadd.f32 1e-05, %v2582_v35  ;;  %v4788_v35 = vld [vmem:[#allocation25 + $0xac] sm:$0xf]  ;;  %3151 = vmatpush.bf16.msra.mxu0 %v4496_v0 }
 0x6a5   : > { %v4504_v24 = vor.u32 %v4788_v35, %v4501_v31  ;;  %v4453_v31 = vld [vmem:[#allocation25 + $0x58] sm:$0xf0] }
 0x6a6   : > { %5088 = vrsqrt.f32 %v6540_v23  ;;  %vm2596_vm3 = vweird.f32 %v6540_v23 }
 0x6a7   : > { %3189 = vmatpush.bf16.msrb.mxu2 %v4504_v24  ;;  %v4773_v24 = vld [vmem:[#allocation25 + $0x2c] sm:$0xf0] }
 0x6a8   : > { %3152 = vmatpush.bf16.msra.mxu0 %v4480_v27  ;;  %v4772_v27 = vld [vmem:[#allocation25 + $0x2c] sm:$0xf] }
 0x6a9   : > { %v2577_v43 = vpop.xlane.xlu2 %2576 }
 0x6aa   : > { %v2583_v56 = vmul.f32 %v2577_v43, %v6118_v10  ;;  %v4485_v43 = vld [vmem:[#allocation25 + $0x98] sm:$0xf0] }
 0x6ab   : > { %v4488_v46 = vor.u32 %v4784_v40, %v4485_v43  ;;  %v4769_v43 = vld [vmem:[#allocation25 + $0xc] sm:$0xf0] }
 0x6ac   : > { %v6544_v39 = vpop.eup %5088  ;;  %v6546_v13 = vadd.f32 1e-05, %v2583_v56  ;;  %v4460_v56 = vor.u32 %v4781_v50, %v4459_v49  ;;  %3153 = vmatpush.bf16.msra.mxu0 %v4464_v19  ;;  %v4413_v49 = vld [vmem:[#allocation25 + $0x10] sm:$0xf0]  ;;  %v4412_v54 = vor.u32 %v4769_v43, %v4411_v41 }
 0x6ad   : > { %v2591_v33 = vmul.f32 %v6544_v39, %v6540_v23  ;;  %vm2597_vm2 = vweird.f32 %v6544_v39  ;;  %3190 = vmatpush.bf16.msrb.mxu2 %v4488_v46  ;;  %v4440_v46 = vor.u32 %v4772_v27, %v4437_v17 }
 0x6ae   : > { %5090 = vrsqrt.f32 %v6546_v13  ;;  %vm6564_vm6 = vmor %vm2596_vm3, %vm2597_vm2  ;;  %3134 = vmatpush.bf16.msrb.mxu3 %v4460_v56  ;;  %vm2606_vm8 = vweird.f32 %v6546_v13  ;;  %v4419_v56 = vld [vmem:[#allocation25 + $0x8] sm:$0xf] }
 0x6af   : > { %v2592_v51 = vmul.f32 %v6544_v39, %v2591_v33  ;;  %v4468_v33 = vor.u32 %v4782_v45, %v4467_v25 }
 0x6b1   : > { %v2593_v3 = vmul.f32 0.5, %v2592_v51  ;;  %v2579_v55 = vpop.xlane.xlu1 %2578  ;;  %v4777_v51 = vld [vmem:[#allocation25 + $0x4c] sm:$0xf0]  ;;  %3172 = vmatpush.bf16.msrb.mxu1 %v4468_v33  ;;  %3191 = vmatpush.bf16.msrb.mxu2 %v4472_v60 }
 0x6b2   : > { %v2584_v52 = vmul.f32 %v2579_v55, %v6118_v10  ;;  %v4444_v1 = vor.u32 %v4777_v51, %v4443_v28  ;;  %v4776_v55 = vld [vmem:[#allocation25 + $0x4c] sm:$0xf] }
 0x6b3   : > { %v2594_v4 = vsub.f32 1.5, %v2593_v3  ;;  %v4778_v3 = vld [vmem:[#allocation25 + $0x54] sm:$0xf0] }
 0x6b4   : > { %v6554_v14 = vpop.eup %5090  ;;  %v6556_v48 = vadd.f32 1e-05, %v2584_v52  ;;  %v4452_v35 = vor.u32 %v4778_v3, %v4451_v61  ;;  %v4427_v52 = vld [vmem:[#allocation25 + $0x20] sm:$0xf]  ;;  %3135 = vmatpush.bf16.msrb.mxu3 %v4444_v1 }
 0x6b5   : > { %v2595_v20 = vmul.f32 %v6544_v39, %v2594_v4  ;;  %v2601_v42 = vmul.f32 %v6554_v14, %v6546_v13  ;;  %vm2607_vm7 = vweird.f32 %v6554_v14  ;;  %v4456_v13 = vor.u32 %v4776_v55, %v4453_v31  ;;  %v4820_v31 = vld [vmem:[#allocation26 + $0xa8] sm:$0xff] }
 0x6b6   : > { %5092 = vrsqrt.f32 %v6556_v48  ;;  %vm2608_vm9 = vmor %vm2606_vm8, %vm2607_vm7  ;;  %v4428_v4 = vor.u32 %v4773_v24, %v4427_v52  ;;  %3173 = vmatpush.bf16.msrb.mxu1 %v4452_v35  ;;  %vm2616_vm11 = vweird.f32 %v6556_v48  ;;  %v4812_v35 = vld [vmem:[#allocation26 + $0x68] sm:$0xff]  ;;  %v4805_v52 = vld [vmem:[#allocation26 + $0x30] sm:$0xff] }
 0x6b7   : > { %v2602_v23 = vmul.f32 %v6554_v14, %v2601_v42  ;;  %v2599_v12 = vsel %vm6564_vm6, %v6544_v39, %v2595_v20  ;;  %v4435_v20 = vld [vmem:[#allocation25 + $0x28] sm:$0xf]  ;;  %v4774_v42 = vld [vmem:[#allocation25 + $0x34] sm:$0xf0]  ;;  %3192 = vmatpush.bf16.msrb.mxu2 %v4456_v13  ;;  %v4829_v24 = vld [vmem:[#allocation26 + $0xf0] sm:$0xff] }
 0x6b8   : > { %v2630_v6 = vmul.f32 %v2599_v12, %v6517_v21  ;;  %v6592_v21 = vld [vmem:[%s6918_s29] ss:$0 sm:$0xff]  ;;  %v4436_v40 = vor.u32 %v4774_v42, %v4435_v20  ;;  %3136 = vmatpush.bf16.msrb.mxu3 %v4428_v4  ;;  %v4421_v12 = vld [vmem:[#allocation25 + $0x18] sm:$0xf0]  ;;  %v4811_v13 = vld [vmem:[#allocation26 + $0x60] sm:$0xff]  ;;  %s3730_s29 = scalar_lea.hbm %s6922_s0, %s4831_s1 }
 0x6b9   : > { %v2603_v58 = vmul.f32 0.5, %v2602_v23  ;;  %v2581_v32 = vpop.xlane.xlu0 %2580  ;;  %v4819_v4 = vld [vmem:[#allocation26 + $0xa0] sm:$0xff]  ;;  %v4818_v20 = vld [vmem:[#allocation26 + $0x98] sm:$0xff]  ;;  %s3733_s13 = sshll.u32 %s3730_s29, 4  ;;  %s3734_s13 = int_to_ptr.hbm [resolvable:$true] %s3733_s13 }
 0x6ba   : > { %v2585_v57 = vmul.f32 %v2581_v32, %v6118_v10  ;;  %v4448_v10 = vor.u32 %v4775_v26, %v4445_v53  ;;  %v2637_v30 = vmul.f32 %v6576_v38, %v2630_v6  ;;  %3174 = vmatpush.bf16.msrb.mxu1 %v4436_v40  ;;  %v4827_v40 = vld [vmem:[#allocation26 + $0xe0] sm:$0xff] }
 0x6bb   : > { %v2604_v39 = vsub.f32 1.5, %v2603_v58  ;;  %3193 = vmatpush.bf16.msrb.mxu2 %v4440_v46  ;;  %v4817_v46 = vld [vmem:[#allocation26 + $0x90] sm:$0xff] }
 0x6bc   : > { %v6580_v2 = vpop.eup %5092  ;;  %v6583_v5 = vadd.f32 1e-05, %v2585_v57  ;;  %3154 = vmatpush.bf16.msra.mxu0 %v4448_v10  ;;  %v2644_v32 = vadd.f32 %v6592_v21, %v2637_v30  ;;  %3137 = vmatpush.bf16.msrb.mxu3 %v4412_v54  ;;  %v4420_v57 = vor.u32 %v4770_v22, %v4419_v56  ;;  %v4802_v54 = vld [vmem:[#allocation26 + $0x18] sm:$0xff] }
 0x6bd   : > { %v2605_v0 = vmul.f32 %v6554_v14, %v2604_v39  ;;  %v2611_v59 = vmul.f32 %v6580_v2, %v6556_v48  ;;  %vm2617_vm10 = vweird.f32 %v6580_v2  ;;  %v4826_v56 = vld [vmem:[#allocation26 + $0xd8] sm:$0xff] }
 0x6be   : > { %5094 = vrsqrt.f32 %v6583_v5  ;;  %vm2618_vm12 = vmor %vm2616_vm11, %vm2617_vm10  ;;  %3175 = vmatpush.bf16.msrb.mxu1 %v4420_v57  ;;  %vm2626_vm15 = vweird.f32 %v6583_v5 }
 0x6bf   : > { %v2609_v11 = vsel %vm2608_vm9, %v6554_v14, %v2605_v0  ;;  %v2612_v63 = vmul.f32 %v6580_v2, %v2611_v59  ;;  %v4767_v14 = vld [vmem:[#allocation25 + $0x4] sm:$0xf]  ;;  %v4806_v0 = vld [vmem:[#allocation26 + $0x38] sm:$0xff] }
 0x6c0   : > { %v2631_v36 = vmul.f32 %v2609_v11, %v6523_v37  ;;  %3155 = vmatpush.bf16.msra.mxu0 %v4432_v16  ;;  %v4416_v45 = vor.u32 %v4767_v14, %v4413_v49  ;;  %v4768_v37 = vld [vmem:[#allocation25 + $0xc] sm:$0xf]  ;;  %v4830_v59 = vld [vmem:[#allocation26 + $0xf8] sm:$0xff] }
 0x6c1   : > { %v2613_v23 = vmul.f32 0.5, %v2612_v63  ;;  %v4424_v60 = vor.u32 %v4768_v37, %v4421_v12  ;;  %v4828_v11 = vld [vmem:[#allocation26 + $0xe8] sm:$0xff]  ;;  %v4810_v16 = vld [vmem:[#allocation26 + $0x58] sm:$0xff] }
 0x6c2   : > { %v2638_v50 = vmul.f32 %v6576_v38, %v2631_v36  ;;  %v4803_v36 = vld [vmem:[#allocation26 + $0x20] sm:$0xff] }
 0x6c3   : > { %v2614_v25 = vsub.f32 1.5, %v2613_v23  ;;  %3194 = vmatpush.bf16.msrb.mxu2 %v4424_v60  ;;  %v4809_v23 = vld [vmem:[#allocation26 + $0x50] sm:$0xff] }
 0x6c4   : > { %v5095_v58 = vpop.eup %5094  ;;  %v2645_v19 = vadd.f32 %v6592_v21, %v2638_v50  ;;  %3156 = vmatpush.bf16.msra.mxu0 %v4416_v45 }
 0x6c5   : > { %v2615_v33 = vmul.f32 %v6580_v2, %v2614_v25  ;;  %v2621_v15 = vmul.f32 %v5095_v58, %v6583_v5  ;;  %vm2627_vm14 = vweird.f32 %v5095_v58  ;;  %v4821_v5 = vld [vmem:[#allocation26 + $0xb0] sm:$0xff] }
 0x6c6   : > { %v2648_v47 = vpack.c.bf16 %v2645_v19, %v2644_v32  ;;  %vm2628_vm0 = vmor %vm2626_vm15, %vm2627_vm14 }
 0x6c7   : > { %v2622_v28 = vmul.f32 %v5095_v58, %v2621_v15  ;;  %v2619_v51 = vsel %vm2618_vm12, %v6580_v2, %v2615_v33  ;;  %v4808_v33 = vld [vmem:[#allocation26 + $0x48] sm:$0xff] }
 0x6c8   : > { %2860 = vmatmul.bf16.vlgmr.msra.gmra.mxu3 %v2648_v47  ;;  %2879 = vmatmul.bf16.vlgmr.msrb.gmra.mxu0 %v2648_v47  ;;  %v2632_v1 = vmul.f32 %v2619_v51, %v6529_v29  ;;  %v4814_v29 = vld [vmem:[#allocation26 + $0x78] sm:$0xff]  ;;  %v4816_v15 = vld [vmem:[#allocation26 + $0x88] sm:$0xff] }
 0x6c9   : > { %v2623_v26 = vmul.f32 0.5, %v2622_v28  ;;  %2898 = vmatmul.bf16.vlgmr.msra.gmra.mxu1 %v2648_v47  ;;  %2917 = vmatmul.bf16.vlgmr.msra.gmra.mxu2 %v2648_v47 }
 0x6ca   : > { %v2639_v61 = vmul.f32 %v6576_v38, %v2632_v1  ;;  %3653 = vmatpush.bf16.msrb.mxu0 %v4814_v29  ;;  %3634 = vmatpush.bf16.msra.mxu3 %v4806_v0 }
 0x6cb   : > { %v2624_v39 = vsub.f32 1.5, %v2623_v26  ;;  %3691 = vmatpush.bf16.msra.mxu2 %v4830_v59  ;;  %v4801_v26 = vld [vmem:[#allocation26 + $0x10] sm:$0xff] }
 0x6cc   : > { %v2646_v10 = vadd.f32 %v6592_v21, %v2639_v61 }
 0x6cd   : > { %v2625_v53 = vmul.f32 %v5095_v58, %v2624_v39  ;;  %v4825_v39 = vld [vmem:[#allocation26 + $0xd0] sm:$0xff] }
 0x6ce   : > { %3635 = vmatpush.bf16.msra.mxu3 %v4805_v52 }
 0x6cf   : > { %v2629_v48 = vsel %vm2628_vm0, %v5095_v58, %v2625_v53  ;;  %3692 = vmatpush.bf16.msra.mxu2 %v4829_v24 }
 0x6d0   : > { %v2633_v6 = vmul.f32 %v2629_v48, %v6535_v44  ;;  %v4822_v44 = vld [vmem:[#allocation26 + $0xb8] sm:$0xff] }
 0x6d1   : > { %3672 = vmatpush.bf16.msra.mxu1 %v4822_v44 }
 0x6d2   : > { %v2640_v2 = vmul.f32 %v6576_v38, %v2633_v6  ;;  %v4813_v38 = vld [vmem:[#allocation26 + $0x70] sm:$0xff]  ;;  %3636 = vmatpush.bf16.msra.mxu3 %v4804_v9 }
 0x6d3   : > { %3654 = vmatpush.bf16.msrb.mxu0 %v4813_v38  ;;  %3693 = vmatpush.bf16.msra.mxu2 %v4828_v11 }
 0x6d4   : > { %v2647_v3 = vadd.f32 %v6592_v21, %v2640_v2  ;;  %v2682_v21 = vld [vmem:[%s6919_s21] sm:$0xf]  ;;  %v4807_v2 = vld [vmem:[#allocation26 + $0x40] sm:$0xff]  ;;  %s5626_s21 = sshra.s32 %s3734_s13, 4  ;;  %s5627_s21 = int_to_ptr.hbm [resolvable:$true] %s5626_s21 }
 0x6d5   : > { %3673 = vmatpush.bf16.msra.mxu1 %v4821_v5  ;;  %v6619_v8 = vperm.slane %v2682_v21, 1  ;;  %v6621_v63 = vperm.slane %v2682_v21, 2  ;;  %v6630_v43 = vperm.slane %v2682_v21, 0  ;;  %v6633_v49 = vperm.slane %v2682_v21, 3  ;;  %s5628_s23 = scalar_lea.hbm %s5627_s21, 32  ;;  %p5633_p12 = scmp.lt.s32.totalorder %s5627_s21, %s6922_s0 }
 0x6d6   : > { %v2649_v55 = vpack.c.bf16 %v2647_v3, %v2646_v10  ;;  %3637 = vmatpush.bf16.msra.mxu3 %v4803_v36  ;;  %p5629_p1 = scmp.ne.s32.totalorder %s5627_s21, %s5628_s23  ;;  %p5634_p7 = scmp.lt.s32.totalorder %s5632_s2, %s5628_s23 }
 0x6d7   : > { %3655 = vmatpush.bf16.msrb.mxu0 %v4812_v35  ;;  %3694 = vmatpush.bf16.msra.mxu2 %v4827_v40 }
 0x6d8   : > { %2865 = vmatmul.bf16.gmra.mxu3 %v2649_v55  ;;  %2884 = vmatmul.bf16.gmra.mxu0 %v2649_v55  ;;  %p5630_p3 = pnand %p5629_p1, %p6039_p5  ;;  %p5635_p8 = por %p5634_p7, %p5633_p12 }
 0x6d9   : > { %2903 = vmatmul.bf16.gmra.mxu1 %v2649_v55  ;;  %2922 = vmatmul.bf16.gmra.mxu2 %v2649_v55 }
 0x6da   : > { %3674 = vmatpush.bf16.msra.mxu1 %v4820_v31  ;;  %3638 = vmatpush.bf16.msra.mxu3 %v4802_v54  ;;  %v4799_v54 = vld [vmem:[#allocation26] sm:$0xff]  ;;  %p5631_p4 = pneg %p5630_p3 }
 0x6db   : > { %3656 = vmatpush.bf16.msrb.mxu0 %v4811_v13  ;;  %3695 = vmatpush.bf16.msra.mxu2 %v4826_v56  ;;  %v4823_v56 = vld [vmem:[#allocation26 + $0xc0] sm:$0xff] }
 0x6dc   : > { %p5636_p9 = pnand %p5635_p8, %p5631_p4 }
 0x6de   : > { %3675 = vmatpush.bf16.msra.mxu1 %v4819_v4  ;;  %3639 = vmatpush.bf16.msra.mxu3 %v4801_v26 }
 0x6df   : > { %3657 = vmatpush.bf16.msrb.mxu0 %v4810_v16  ;;  %3696 = vmatpush.bf16.msra.mxu2 %v4825_v39 }
 0x6e2   : > { %3676 = vmatpush.bf16.msra.mxu1 %v4818_v20 }
 0x6e3   : > { %3658 = vmatpush.bf16.msrb.mxu0 %v4809_v23 }
 0x6e6   : > { %3677 = vmatpush.bf16.msra.mxu1 %v4817_v46 }
 0x6e7   : > { %3659 = vmatpush.bf16.msrb.mxu0 %v4808_v33 }
 0x6e8   : > { %3138 = vmatmul.bf16.vlgmr.msrb.gmra.mxu3 %v2648_v47  ;;  %3157 = vmatmul.bf16.vlgmr.msra.gmra.mxu0 %v2648_v47 }
 0x6e9   : > { %3176 = vmatmul.bf16.vlgmr.msrb.gmra.mxu1 %v2648_v47  ;;  %3195 = vmatmul.bf16.vlgmr.msrb.gmra.mxu2 %v2648_v47 }
 0x6ea   : > { %3678 = vmatpush.bf16.msra.mxu1 %v4816_v15 }
 0x6eb   : > { %3660 = vmatpush.bf16.msrb.mxu0 %v4807_v2 }
 0x6f8   : > { %3143 = vmatmul.bf16.gmra.mxu3 %v2649_v55  ;;  %3162 = vmatmul.bf16.gmra.mxu0 %v2649_v55 }
 0x6f9   : > { %3181 = vmatmul.bf16.gmra.mxu1 %v2649_v55  ;;  %3200 = vmatmul.bf16.gmra.mxu2 %v2649_v55  ;;  %v4815_v55 = vld [vmem:[#allocation26 + $0x80] sm:$0xff] }
 0x6fa   : > { %3679 = vmatpush.bf16.msra.mxu1 %v4815_v55 }
 0x745   : > { %v2880_v42 = vpop.f32.mrf.mxu0 }
 0x746   : > { %v6624_v27 = vadd.f32 %v2880_v42, %v6619_v8  ;;  %v2899_v30 = vpop.f32.mrf.mxu1  ;;  %v4800_v42 = vld [vmem:[#allocation26 + $0x8] sm:$0xff] }
 0x747   : > { %v6627_v17 = vadd.f32 %v2899_v30, %v6621_v63  ;;  %v4824_v30 = vld [vmem:[#allocation26 + $0xc8] sm:$0xff]  ;;  %3640 = vmatpush.bf16.msra.mxu3 %v4800_v42 }
 0x748   : > { %v3223_v41 = vmul.f32 0.044715, %v6624_v27  ;;  %3697 = vmatpush.bf16.msra.mxu2 %v4824_v30  ;;  %v3207_v55 = vmul.f32 0.5, %v6624_v27 }
 0x749   : > { %v3224_v14 = vmul.f32 0.044715, %v6627_v17 }
 0x74a   : > { %v3239_v50 = vmul.f32 %v3223_v41, %v6624_v27  ;;  %v2960_v41 = vld [vmem:[%s6920_s6] sm:$0xf] }
 0x74b   : > { %v3240_v22 = vmul.f32 %v3224_v14, %v6627_v17  ;;  %v2861_v25 = vpop.f32.mrf.mxu3  ;;  %3641 = vmatpush.bf16.msra.mxu3 %v4799_v54 }
 0x74c   : > { %v6638_v45 = vadd.f32 %v2861_v25, %v6630_v43  ;;  %v2918_v37 = vpop.f32.mrf.mxu2  ;;  %v3255_v12 = vmul.f32 %v3239_v50, %v6624_v27  ;;  %3698 = vmatpush.bf16.msra.mxu2 %v4823_v56 }
 0x74d   : > { %v6642_v58 = vadd.f32 %v2918_v37, %v6633_v49  ;;  %v2882_v32 = vpop.f32.mrf.mxu0  ;;  %v3256_v19 = vmul.f32 %v3240_v22, %v6627_v17 }
 0x74e   : > { %v3222_v47 = vmul.f32 0.044715, %v6638_v45  ;;  %v6647_v57 = vadd.f32 %v2882_v32, %v6619_v8  ;;  %v2901_v60 = vpop.f32.mrf.mxu1  ;;  %v3271_v53 = vadd.f32 %v3255_v12, %v6624_v27  ;;  %v6689_v12 = vperm.slane %v2960_v41, 1 }
 0x74f   : > { %v3225_v28 = vmul.f32 0.044715, %v6642_v58  ;;  %v6651_v51 = vadd.f32 %v2901_v60, %v6621_v63  ;;  %v3272_v6 = vadd.f32 %v3256_v19, %v6627_v17 }
 0x750   : > { %v3227_v1 = vmul.f32 0.044715, %v6647_v57  ;;  %v3238_v48 = vmul.f32 %v3222_v47, %v6638_v45  ;;  %v3287_v0 = vmul.f32 0.7978846, %v3271_v53  ;;  %v6696_v47 = vperm.slane %v2960_v41, 2 }
 0x751   : > { %v3228_v61 = vmul.f32 0.044715, %v6651_v51  ;;  %v3241_v10 = vmul.f32 %v3225_v28, %v6642_v58  ;;  %v3288_v52 = vmul.f32 0.7978846, %v3272_v6 }
 0x752   : > { %v3243_v3 = vmul.f32 %v3227_v1, %v6647_v57  ;;  %v3254_v24 = vmul.f32 %v3238_v48, %v6638_v45  ;;  %5096 = vtanh.f32 %v3287_v0 }
 0x753   : > { %v3244_v29 = vmul.f32 %v3228_v61, %v6651_v51  ;;  %v2863_v44 = vpop.f32.mrf.mxu3  ;;  %v3257_v11 = vmul.f32 %v3241_v10, %v6642_v58  ;;  %5098 = vtanh.f32 %v3288_v52  ;;  %v6718_v52 = vperm.slane %v2960_v41, 3 }
 0x754   : > { %v6662_v38 = vadd.f32 %v2863_v44, %v6630_v43  ;;  %v2920_v5 = vpop.f32.mrf.mxu2  ;;  %v3259_v59 = vmul.f32 %v3243_v3, %v6647_v57  ;;  %v3270_v50 = vadd.f32 %v3254_v24, %v6638_v45  ;;  %v6710_v44 = vperm.slane %v2960_v41, 0 }
 0x755   : > { %v6666_v35 = vadd.f32 %v2920_v5, %v6633_v49  ;;  %v2885_v31 = vpop.f32.mrf.mxu0  ;;  %v3260_v21 = vmul.f32 %v3244_v29, %v6651_v51  ;;  %v3273_v22 = vadd.f32 %v3257_v11, %v6642_v58  ;;  %v3208_v29 = vmul.f32 0.5, %v6627_v17 }
 0x756   : > { %v3226_v13 = vmul.f32 0.044715, %v6662_v38  ;;  %v6672_v4 = vadd.f32 %v2885_v31, %v6619_v8  ;;  %v2904_v9 = vpop.f32.mrf.mxu1  ;;  %v3275_v16 = vadd.f32 %v3259_v59, %v6647_v57  ;;  %v3286_v1 = vmul.f32 0.7978846, %v3270_v50 }
 0x757   : > { %v3229_v20 = vmul.f32 0.044715, %v6666_v35  ;;  %v6679_v40 = vadd.f32 %v2904_v9, %v6621_v63  ;;  %v3276_v23 = vadd.f32 %v3260_v21, %v6651_v51  ;;  %v3289_v6 = vmul.f32 0.7978846, %v3273_v22 }
 0x758   : > { %v3242_v36 = vmul.f32 %v3226_v13, %v6662_v38  ;;  %v3231_v14 = vmul.f32 0.044715, %v6672_v4  ;;  %v3291_v25 = vmul.f32 0.7978846, %v3275_v16  ;;  %v5097_v10 = vpop.eup %5096  ;;  %v6723_v24 = vmul.f32 0.5, %v6638_v45 }
 0x759   : > { %v3245_v46 = vmul.f32 %v3229_v20, %v6666_v35  ;;  %v3232_v19 = vmul.f32 0.044715, %v6679_v40  ;;  %v3292_v60 = vmul.f32 0.7978846, %v3276_v23  ;;  %v5099_v5 = vpop.eup %5098  ;;  %v3319_v9 = vadd.f32 1.0, %v5097_v10 }
 0x75a   : > { %v3258_v32 = vmul.f32 %v3242_v36, %v6662_v38  ;;  %v3247_v28 = vmul.f32 %v3231_v14, %v6672_v4  ;;  %5100 = vtanh.f32 %v3291_v25  ;;  %v3320_v11 = vadd.f32 1.0, %v5099_v5 }
 0x75b   : > { %v2866_v37 = vpop.f32.mrf.mxu3  ;;  %v3261_v53 = vmul.f32 %v3245_v46, %v6666_v35  ;;  %v3248_v0 = vmul.f32 %v3232_v19, %v6679_v40  ;;  %5102 = vtanh.f32 %v3292_v60  ;;  %v6727_v16 = vmul.f32 0.5, %v6642_v58 }
 0x75c   : > { %v6694_v33 = vadd.f32 %v2866_v37, %v6630_v43  ;;  %v2923_v15 = vpop.f32.mrf.mxu2  ;;  %v3274_v2 = vadd.f32 %v3258_v32, %v6662_v38  ;;  %5104 = vtanh.f32 %v3286_v1  ;;  %v3263_v27 = vmul.f32 %v3247_v28, %v6672_v4 }
 0x75d   : > { %v6700_v26 = vadd.f32 %v2923_v15, %v6633_v49  ;;  %v2887_v39 = vpop.f32.mrf.mxu0  ;;  %v3277_v59 = vadd.f32 %v3261_v53, %v6666_v35  ;;  %5106 = vtanh.f32 %v3289_v6  ;;  %v3264_v45 = vmul.f32 %v3248_v0, %v6679_v40 }
 0x75e   : > { %v6704_v48 = vadd.f32 %v2887_v39, %v6619_v8  ;;  %v2906_v61 = vpop.f32.mrf.mxu1  ;;  %v3230_v3 = vmul.f32 0.044715, %v6694_v33  ;;  %v3290_v21 = vmul.f32 0.7978846, %v3274_v2  ;;  %v3211_v14 = vmul.f32 0.5, %v6647_v57 }
 0x75f   : > { %v6714_v8 = vadd.f32 %v2906_v61, %v6621_v63  ;;  %v3233_v31 = vmul.f32 0.044715, %v6700_v26  ;;  %v3293_v41 = vmul.f32 0.7978846, %v3277_v59  ;;  %v3212_v50 = vmul.f32 0.5, %v6651_v51 }
 0x760   : > { %v3235_v17 = vmul.f32 0.044715, %v6704_v48  ;;  %v3246_v63 = vmul.f32 %v3230_v3, %v6694_v33  ;;  %v5101_v20 = vpop.eup %5100  ;;  %v3279_v58 = vadd.f32 %v3263_v27, %v6672_v4  ;;  %5108 = vtanh.f32 %v3290_v21 }
 0x761   : > { %v3236_v42 = vmul.f32 0.044715, %v6714_v8  ;;  %v3249_v23 = vmul.f32 %v3233_v31, %v6700_v26  ;;  %v5103_v54 = vpop.eup %5102  ;;  %v3335_v32 = vmul.f32 %v3319_v9, %v3207_v55  ;;  %v3336_v19 = vmul.f32 %v3320_v11, %v3208_v29 }
 0x762   : > { %v3251_v56 = vmul.f32 %v3235_v17, %v6704_v48  ;;  %v5105_v37 = vpop.eup %5104  ;;  %v3323_v15 = vadd.f32 1.0, %v5101_v20  ;;  %v3210_v57 = vmul.f32 0.5, %v6662_v38  ;;  %5110 = vtanh.f32 %v3293_v41 }
 0x763   : > { %v2868_v13 = vpop.f32.mrf.mxu3  ;;  %v5107_v60 = vpop.eup %5106  ;;  %v3252_v51 = vmul.f32 %v3236_v42, %v6714_v8  ;;  %v3280_v28 = vadd.f32 %v3264_v45, %v6679_v40  ;;  %v3262_v39 = vmul.f32 %v3246_v63, %v6694_v33  ;;  %v3324_v53 = vadd.f32 1.0, %v5103_v54 }
 0x764   : > { %v6731_v30 = vadd.f32 %v2868_v13, %v6630_v43  ;;  %v2925_v36 = vpop.f32.mrf.mxu2  ;;  %v3295_v61 = vmul.f32 0.7978846, %v3279_v58  ;;  %v3265_v38 = vmul.f32 %v3249_v23, %v6700_v26  ;;  %v3267_v10 = vmul.f32 %v3251_v56, %v6704_v48 }
 0x765   : > { %v3158_v46 = vpop.f32.mrf.mxu0  ;;  %v6741_v43 = vadd.f32 %v2925_v36, %v6633_v49  ;;  %v3318_v55 = vadd.f32 1.0, %v5105_v37  ;;  %v3321_v29 = vadd.f32 1.0, %v5107_v60  ;;  %v3339_v5 = vmul.f32 %v3323_v15, %v3211_v14 }
 0x766   : > { %v3234_v22 = vmul.f32 0.044715, %v6731_v30  ;;  %v3177_v25 = vpop.f32.mrf.mxu1  ;;  %v3159_v49 = vadd.f32 %v3158_v46, %v6689_v12  ;;  %v3213_v0 = vmul.f32 0.5, %v6666_v35  ;;  %v5109_v59 = vpop.eup %5108  ;;  %v3296_v27 = vmul.f32 0.7978846, %v3280_v28 }
 0x767   : > { %v3237_v6 = vmul.f32 0.044715, %v6741_v43  ;;  %v3178_v2 = vadd.f32 %v3177_v25, %v6696_v47  ;;  %v3278_v17 = vadd.f32 %v3262_v39, %v6694_v33  ;;  %v3283_v21 = vadd.f32 %v3267_v10, %v6704_v48 }
 0x768   : > { %v3250_v1 = vmul.f32 %v3234_v22, %v6731_v30  ;;  %v3268_v63 = vmul.f32 %v3252_v51, %v6714_v8  ;;  %v3351_v13 = vmul.f32 %v3335_v32, %v3159_v49  ;;  %v3340_v11 = vmul.f32 %v3324_v53, %v3212_v50  ;;  %v5111_v42 = vpop.eup %5110 }
 0x769   : > { %5112 = vtanh.f32 %v3295_v61  ;;  %v3253_v36 = vmul.f32 %v3237_v6, %v6741_v43  ;;  %v3352_v41 = vmul.f32 %v3336_v19, %v3178_v2  ;;  %v3281_v23 = vadd.f32 %v3265_v38, %v6700_v26 }
 0x76a   : > { %v3266_v20 = vmul.f32 %v3250_v1, %v6731_v30  ;;  %v3322_v14 = vadd.f32 1.0, %v5109_v59  ;;  %v3299_v58 = vmul.f32 0.7978846, %v3283_v21  ;;  %v3284_v54 = vadd.f32 %v3268_v63, %v6714_v8 }
 0x76b   : > { %v3139_v3 = vpop.f32.mrf.mxu3  ;;  %5114 = vtanh.f32 %v3296_v27  ;;  %v3294_v50 = vmul.f32 0.7978846, %v3278_v17  ;;  %v3325_v37 = vadd.f32 1.0, %v5111_v42  ;;  %v3297_v60 = vmul.f32 0.7978846, %v3281_v23 }
 0x76c   : > { %v3196_v31 = vpop.f32.mrf.mxu2  ;;  %v3282_v22 = vadd.f32 %v3266_v20, %v6731_v30  ;;  %5116 = vtanh.f32 %v3299_v58  ;;  %v3300_v32 = vmul.f32 0.7978846, %v3284_v54  ;;  %v3140_v19 = vadd.f32 %v3139_v3, %v6710_v44 }
 0x76d   : > { %v3160_v9 = vpop.f32.mrf.mxu0  ;;  %v3269_v51 = vmul.f32 %v3253_v36, %v6741_v43  ;;  %v3197_v39 = vadd.f32 %v3196_v31, %v6718_v52  ;;  %v3334_v61 = vmul.f32 %v3318_v55, %v6723_v24  ;;  %v3338_v2 = vmul.f32 %v3322_v14, %v3210_v57 }
 0x76e   : > { %v3161_v35 = vadd.f32 %v3160_v9, %v6689_v12  ;;  %v3179_v45 = vpop.f32.mrf.mxu1  ;;  %5118 = vtanh.f32 %v3300_v32  ;;  %v3298_v53 = vmul.f32 0.7978846, %v3282_v22  ;;  %v3337_v3 = vmul.f32 %v3321_v29, %v6727_v16 }
 0x76f   : > { %v3180_v46 = vadd.f32 %v3179_v45, %v6696_v47  ;;  %v5113_v28 = vpop.eup %5112  ;;  %v3285_v10 = vadd.f32 %v3269_v51, %v6741_v43  ;;  %v3341_v59 = vmul.f32 %v3325_v37, %v3213_v0  ;;  %5120 = vtanh.f32 %v3294_v50 }
 0x770   : > { %v3355_v56 = vmul.f32 %v3339_v5, %v3161_v35  ;;  %v3350_v17 = vmul.f32 %v3334_v61, %v3140_v19  ;;  %5122 = vtanh.f32 %v3297_v60  ;;  %v3353_v57 = vmul.f32 %v3337_v3, %v3197_v39 }
 0x771   : > { %v3356_v25 = vmul.f32 %v3340_v11, %v3180_v46  ;;  %v5115_v27 = vpop.eup %5114  ;;  %v3301_v24 = vmul.f32 0.7978846, %v3285_v10  ;;  %5124 = vtanh.f32 %v3298_v53  ;;  %v3327_v29 = vadd.f32 1.0, %v5113_v28 }
 0x772   : > { %v3367_v15 = vpack.c.bf16 %v3355_v56, %v3351_v13  ;;  %v5117_v55 = vpop.eup %5116  ;;  %v3328_v42 = vadd.f32 1.0, %v5115_v27  ;;  %v3215_v23 = vmul.f32 0.5, %v6672_v4  ;;  %v3219_v14 = vmul.f32 0.5, %v6704_v48 }
 0x773   : > { %v3368_v1 = vpack.c.bf16 %v3356_v25, %v3352_v41  ;;  %v3141_v49 = vpop.f32.mrf.mxu3  ;;  %5126 = vtanh.f32 %v3301_v24  ;;  %v3331_v0 = vadd.f32 1.0, %v5117_v55  ;;  %v3216_v56 = vmul.f32 0.5, %v6679_v40 }
 0x774   : > { %v3142_v6 = vadd.f32 %v3141_v49, %v6710_v44  ;;  %v3198_v38 = vpop.f32.mrf.mxu2  ;;  %3661 = vmatmul.bf16.vlgmr.msrb.gmra.mxu0 %v3367_v15  ;;  %v5119_v11 = vpop.eup %5118  ;;  %v3220_v22 = vmul.f32 0.5, %v6714_v8  ;;  %v3343_v37 = vmul.f32 %v3327_v29, %v3215_v23  ;;  %v3221_v3 = vmul.f32 0.5, %v6741_v43 }
 0x775   : > { %v3199_v5 = vadd.f32 %v3198_v38, %v6718_v52  ;;  %3680 = vmatmul.bf16.vlgmr.msra.gmra.mxu1 %v3368_v1  ;;  %v3163_v31 = vpop.f32.mrf.mxu0  ;;  %v5121_v20 = vpop.eup %5120  ;;  %v3332_v41 = vadd.f32 1.0, %v5119_v11  ;;  %v3347_v19 = vmul.f32 %v3331_v0, %v3219_v14  ;;  %v3344_v60 = vmul.f32 %v3328_v42, %v3216_v56 }
 0x776   : > { %v3354_v21 = vmul.f32 %v3338_v2, %v3142_v6  ;;  %v3182_v63 = vpop.f32.mrf.mxu1  ;;  %v5123_v35 = vpop.eup %5122  ;;  %v3164_v45 = vadd.f32 %v3163_v31, %v6689_v12  ;;  %v3326_v48 = vadd.f32 1.0, %v5121_v20  ;;  %v3214_v6 = vmul.f32 0.5, %v6694_v33 }
 0x777   : > { %v3357_v13 = vmul.f32 %v3341_v59, %v3199_v5  ;;  %v5125_v58 = vpop.eup %5124  ;;  %v3183_v54 = vadd.f32 %v3182_v63, %v6696_v47  ;;  %v3348_v51 = vmul.f32 %v3332_v41, %v3220_v22  ;;  %v3329_v53 = vadd.f32 1.0, %v5123_v35 }
 0x778   : > { %v3366_v9 = vpack.c.bf16 %v3354_v21, %v3350_v17  ;;  %v3359_v28 = vmul.f32 %v3343_v37, %v3164_v45  ;;  %v3330_v1 = vadd.f32 1.0, %v5125_v58  ;;  %v3342_v59 = vmul.f32 %v3326_v48, %v3214_v6 }
 0x779   : > { %v3369_v16 = vpack.c.bf16 %v3357_v13, %v3353_v57  ;;  %v5127_v25 = vpop.eup %5126  ;;  %v3360_v49 = vmul.f32 %v3344_v60, %v3183_v54 }
 0x77a   : > { %3642 = vmatmul.bf16.vlgmr.msra.gmra.mxu3 %v3366_v9  ;;  %v3333_v61 = vadd.f32 1.0, %v5127_v25 }
 0x77b   : > { %3699 = vmatmul.bf16.vlgmr.msra.gmra.mxu2 %v3369_v16  ;;  %v3144_v36 = vpop.f32.mrf.mxu3 }
 0x77c   : > { %v3201_v46 = vpop.f32.mrf.mxu2  ;;  %v3145_v8 = vadd.f32 %v3144_v36, %v6710_v44  ;;  %v3349_v63 = vmul.f32 %v3333_v61, %v3221_v3 }
 0x77d   : > { %v3165_v50 = vpop.f32.mrf.mxu0  ;;  %v3202_v38 = vadd.f32 %v3201_v46, %v6718_v52 }
 0x77e   : > { %v3166_v32 = vadd.f32 %v3165_v50, %v6689_v12  ;;  %v3184_v15 = vpop.f32.mrf.mxu1  ;;  %v3218_v12 = vmul.f32 0.5, %v6731_v30  ;;  %v3358_v30 = vmul.f32 %v3342_v59, %v3145_v8 }
 0x77f   : > { %v3185_v4 = vadd.f32 %v3184_v15, %v6696_v47  ;;  %v3217_v47 = vmul.f32 0.5, %v6700_v26 }
 0x780   : > { %v3363_v39 = vmul.f32 %v3347_v19, %v3166_v32  ;;  %v3346_v27 = vmul.f32 %v3330_v1, %v3218_v12 }
 0x781   : > { %v3364_v40 = vmul.f32 %v3348_v51, %v3185_v4  ;;  %v3345_v21 = vmul.f32 %v3329_v53, %v3217_v47 }
 0x782   : > { %v3371_v2 = vpack.c.bf16 %v3363_v39, %v3359_v28 }
 0x783   : > { %v3146_v10 = vpop.f32.mrf.mxu3  ;;  %v3372_v5 = vpack.c.bf16 %v3364_v40, %v3360_v49  ;;  %v3361_v55 = vmul.f32 %v3345_v21, %v3202_v38 }
 0x784   : > { %v3147_v31 = vadd.f32 %v3146_v10, %v6710_v44  ;;  %v3203_v17 = vpop.f32.mrf.mxu2  ;;  %3666 = vmatmul.bf16.gmra.mxu0 %v3371_v2  ;;  %v5061_v44 = vld [vmem:[%s6921_s9] ss:$0 sm:$0xff] }
 0x785   : > { %v3204_v33 = vadd.f32 %v3203_v17, %v6718_v52  ;;  %3685 = vmatmul.bf16.gmra.mxu1 %v3372_v5 }
 0x786   : > { %v3362_v24 = vmul.f32 %v3346_v27, %v3147_v31 }
 0x787   : > { %v3365_v57 = vmul.f32 %v3349_v63, %v3204_v33 }
 0x788   : > { %v3370_v26 = vpack.c.bf16 %v3362_v24, %v3358_v30 }
 0x789   : > { %v3373_v13 = vpack.c.bf16 %v3365_v57, %v3361_v55 }
 0x78a   : > { %3647 = vmatmul.bf16.gmra.mxu3 %v3370_v26 }
 0x78b   : > { %3704 = vmatmul.bf16.gmra.mxu2 %v3373_v13 }
 0x7f1   : > { %v3662_v43 = vpop.f32.mrf.mxu0 }
 0x7f2   : > { %v3681_v9 = vpop.f32.mrf.mxu1 }
 0x7f9   : > { %v3664_v20 = vpop.f32.mrf.mxu0 }
 0x7fa   : > { %v3683_v36 = vpop.f32.mrf.mxu1 }
 0x7fd   : > { %v3643_v11 = vpop.f32.mrf.mxu3 }
 0x7fe   : > { %v3644_v16 = vadd.f32 %v5061_v44, %v3643_v11  ;;  %v3700_v52 = vpop.f32.mrf.mxu2 }
 0x800   : > { %v3663_v29 = vadd.f32 %v3662_v43, %v3644_v16 }
 0x801   : > { %v3667_v54 = vpop.f32.mrf.mxu0 }
 0x802   : > { %v3682_v0 = vadd.f32 %v3681_v9, %v3663_v29 }
 0x804   : > { %v3701_v42 = vadd.f32 %v3700_v52, %v3682_v0 }
 0x805   : > { %v3645_v41 = vpop.f32.mrf.mxu3 }
 0x806   : > { %v3710_v35 = vadd.f32 %v3701_v42, %v6500_v34  ;;  %v3646_v45 = vadd.f32 %v5061_v44, %v3645_v41  ;;  %v3702_v23 = vpop.f32.mrf.mxu2  ;;  %v3686_v34 = vpop.f32.mrf.mxu1 }
 0x808   : > { %3714 = vst [vmem:[%s6794_s10] sm:$0xff] %v3710_v35  ;;  %v3665_v46 = vadd.f32 %v3664_v20, %v3646_v45 }
 0x809   : > { %v3669_v51 = vpop.f32.mrf.mxu0 }
 0x80a   : > { %v3684_v14 = vadd.f32 %v3683_v36, %v3665_v46 }
 0x80c   : > { %v3703_v58 = vadd.f32 %v3702_v23, %v3684_v14 }
 0x80d   : > { %v3648_v56 = vpop.f32.mrf.mxu3 }
 0x80e   : > { %v3711_v50 = vadd.f32 %v3703_v58, %v6504_v62  ;;  %v3649_v22 = vadd.f32 %v5061_v44, %v3648_v56  ;;  %v3705_v37 = vpop.f32.mrf.mxu2  ;;  %v3688_v62 = vpop.f32.mrf.mxu1 }
 0x810   : > { %3715 = vst [vmem:[%s6794_s10 + $0x8] sm:$0xff] %v3711_v50  ;;  %v3668_v25 = vadd.f32 %v3667_v54, %v3649_v22 }
 0x812   : > { %v3687_v32 = vadd.f32 %v3686_v34, %v3668_v25 }
 0x814   : > { %v3706_v19 = vadd.f32 %v3705_v37, %v3687_v32 }
 0x815   : > { %v3650_v15 = vpop.f32.mrf.mxu3 }
 0x816   : > { %v3712_v60 = vadd.f32 %v3706_v19, %v6508_v7  ;;  %v3651_v4 = vadd.f32 %v5061_v44, %v3650_v15  ;;  %v3707_v39 = vpop.f32.mrf.mxu2 }
 0x818   : > { %3716 = vst [vmem:[%s6794_s10 + $0x10] sm:$0xff] %v3712_v60  ;;  %v3670_v28 = vadd.f32 %v3669_v51, %v3651_v4 }
 0x81a   : > { %v3689_v48 = vadd.f32 %v3688_v62, %v3670_v28 }
 0x81c   : > { %v3708_v1 = vadd.f32 %v3707_v39, %v3689_v48 }
 0x81e   : > { %v3713_v49 = vadd.f32 %v3708_v1, %v6512_v18 }
 0x820   : > { %3717 = vst [vmem:[%s6794_s10 + $0x18] sm:$0xff] %v3713_v49 }
 0x821   : > { %5639 = shalt.err (!%p5636_p9)
}
 0x822   : > { %s5738_s15 = smov 128   ;;  %s5739_s10 = smov 8  }
 0x823   : > { %4896 = dma.vmem_to_hbm [thread:$0]  (%p6039_p5), %s3732_s4, 512, %s3734_s13, %s3719_s7, %s5738_s15, %s5738_s15, %s5739_s10  }
 0x824 PF: > { %s3748_s1 = sand.u32 1, %s5698_s5   ;;  %p6923_p10 = scmp.ge.s32.totalorder %s5710_s28, 2 }
 0x825   : > { %s3749_s24 = scalar_lea.sflag [#allocation4], %s3748_s1 }
 0x826   : > { %p4949_p13 = pnand %p6923_p10, %p6043_p6 }
 0x828   : > { %p4950_p11 = pneg %p4949_p13 }
 0x82a   : > { %5693 = dma.done.wait (%p4950_p11), %s3749_s24, 512  }
 0x82b   : > { %5695 = vsyncadd (%p4950_p11), %s3749_s24, 4294966784  ;;  %p45_p0 = scmp.ge.s32.totalorder %s6013_s12, 4   ;;  %s6924_s5 = smov %s5702_s26 }
 0x82c   : > { %s6925_s26 = smov %s5706_s27  ;;  %s6926_s27 = smov %s6024_s25 }
 0x82d   : > { %s6927_s28 = smov %s6013_s12  ;;  %47 = sbr.rel (!%p45_p0) target bundleno = 34 (0x22), region = 235 }
 0x832   :  { %3755 = vsyncpa [#allocation3], 1 }
 0x833   :  { %3757 = vsyncpa [#allocation3 + $0x1], 1 }
 0x834   :  { %3758 = vsyncpa [#allocation6], 1 }
 0x835   :  { %3759 = vsyncpa [#allocation9], 1 }
 0x836   :  { %3760 = vsyncpa [#allocation12], 1 }
 0x837   :  { %3761 = vsyncpa [#allocation15], 1 }
 0x838   :  { %3762 = vsyncpa [#allocation18], 1 }
 0x839   :  { %3763 = vsyncpa [#allocation21], 1 }
 0x83a   :  { %3764 = vsyncpa [#allocation24], 1 }
 0x83b   :  { %3765 = vsyncpa [#allocation27], 1 }
 0x83c   :  { %3766 = vsyncpa [#allocation4], 1 }
 0x83d   :  { %3768 = vsyncpa [#allocation4 + $0x1], 1 }

</bundles_post_ra>
